<compile_context>
chip_gen: v7x
topology: tpu7x:2x2x1
jax: 0.10.0
libtpu: 0.0.40
codegen_flags: <defaults>
</compile_context>

<pallas_src>
import jax
import jax.numpy as jnp
from jax.experimental import pallas as pl
from jax.experimental.pallas import tpu as pltpu

EPS = 1e-5
LANES = 128
# Set to jnp.bfloat16 to feed the MXU its native input dtype (and halve the
# weight-slab VMEM).  Kept f32 here so the result matches the f32 PyTorch
# reference to ~1e-6 (bf16 taps would loosen it to ~1e-2).
MATMUL_DTYPE = jnp.float32


# --------------------------------------------------------------------------
# conv (+ optional fused BN+ReLU of its input) kernel
# --------------------------------------------------------------------------
def _make_conv_kernel(H, W, TH, cin_p, cout_p, fuse_bn_relu):
    """Kernel for one (batch, row-tile) grid step.

    Reads a (TH+2, W+2, cin_p) halo window of the spatially zero-padded input
    via manual DMA, optionally applies the previous layer's folded BN + ReLU
    (re-zeroing the global padding ring), performs the full 3x3 conv as a
    single im2col matmul, writes the conv+bias tile and its per-channel
    [sum, sum_of_squares] for the two-pass BatchNorm.
    """

    def body(xp_hbm, w_ref, b_ref, scale_ref, shift_ref, y_ref, stats_ref,
             xbuf, sem):
        n = pl.program_id(0)
        i = pl.program_id(1)
        row0 = pl.multiple_of(i * TH, TH)

        # ---- 1-row-halo DMA: padded rows [i*TH, i*TH + TH + 2) of image n ----
        cp = pltpu.make_async_copy(xp_hbm.at[n, pl.ds(row0, TH + 2)], xbuf, sem)
        cp.start()
        cp.wait()
        x = xbuf[...]                                     # (TH+2, W+2, cin_p)

        if fuse_bn_relu:
            # Previous conv's BN + ReLU folded into a per-channel affine,
            # applied on the fly; then re-zero the *global* padding ring so
            # conv padding acts on the post-ReLU activation (bn(0) != 0).
            h = jnp.maximum(x * scale_ref[...] + shift_ref[...], 0.0)
            r = jax.lax.broadcasted_iota(jnp.int32, (TH + 2, W + 2, 1), 0) + row0
            c = jax.lax.broadcasted_iota(jnp.int32, (TH + 2, W + 2, 1), 1)
            interior = (r > 0) & (r < H + 1) & (c > 0) & (c < W + 1)
            x = jnp.where(interior, h, 0.0)

        # ---- im2col: all 9 taps fused into one lane-dense slab -> 1 matmul ----
        taps = [x[ky:ky + TH, kx:kx + W, :] for ky in range(3) for kx in range(3)]
        patches = jnp.concatenate(taps, axis=-1).reshape(TH * W, 9 * cin_p)
        y = jnp.dot(patches.astype(w_ref.dtype), w_ref[...],
                    preferred_element_type=jnp.float32) + b_ref[...]

        y_ref[...] = y.reshape(1, TH, W, cout_p)

        # ---- per-tile per-channel stats for exact two-pass BatchNorm ----
        s1 = jnp.sum(y, axis=0, keepdims=True)            # (1, cout_p)
        s2 = jnp.sum(y * y, axis=0, keepdims=True)        # (1, cout_p)
        stats_ref[...] = jnp.concatenate([s1, s2], axis=0).reshape(1, 1, 2, cout_p)

    if fuse_bn_relu:
        return body

    def body_nofuse(xp_hbm, w_ref, b_ref, y_ref, stats_ref, xbuf, sem):
        return body(xp_hbm, w_ref, b_ref, None, None, y_ref, stats_ref, xbuf, sem)

    return body_nofuse


def _conv_stage(xp, w_flat, b, scale=None, shift=None, *, H, W, TH):
    """3x3 conv (+ optional fused BN+ReLU of the input) over a (N, H//TH) grid.

    xp     : (N, H+2, W+2, cin_p) spatially zero-padded, channel-padded input.
    w_flat : (9*cin_p, cout_p) im2col-packed weights.
    b      : (cout_p,) bias.
    scale/shift : optional (cin_p,) folded BN affine applied (with ReLU) to the
                  input before the conv (used to fuse BN1+ReLU into conv2).
    Returns (y, stats): y = conv+bias (N, H, W, cout_p); stats (N, gR, 2, cout_p)
    per-tile per-channel [sum, sum-of-squares] of y.
    """
    N, _, _, cin_p = xp.shape
    cout_p = w_flat.shape[1]
    assert H % TH == 0
    gR = H // TH
    fuse = scale is not None

    in_specs = [
        pl.BlockSpec(memory_space=pl.ANY),                        # input stays in HBM
        pl.BlockSpec((9 * cin_p, cout_p), lambda n, i: (0, 0)),   # packed weights
        pl.BlockSpec((1, cout_p), lambda n, i: (0, 0)),           # bias
    ]
    args = [xp, w_flat, b.reshape(1, cout_p)]
    if fuse:
        in_specs += [pl.BlockSpec((1, 1, cin_p), lambda n, i: (0, 0, 0)),
                     pl.BlockSpec((1, 1, cin_p), lambda n, i: (0, 0, 0))]
        args += [scale.reshape(1, 1, cin_p), shift.reshape(1, 1, cin_p)]

    out_shape = (jax.ShapeDtypeStruct((N, H, W, cout_p), jnp.float32),
                 jax.ShapeDtypeStruct((N, gR, 2, cout_p), jnp.float32))
    out_specs = (pl.BlockSpec((1, TH, W, cout_p), lambda n, i: (n, i, 0, 0)),
                 pl.BlockSpec((1, 1, 2, cout_p), lambda n, i: (n, i, 0, 0)))

    kernel = _make_conv_kernel(H, W, TH, cin_p, cout_p, fuse)
    return pl.pallas_call(
        kernel,
        grid_spec=pltpu.PrefetchScalarGridSpec(
            num_scalar_prefetch=0,
            grid=(N, gR),
            in_specs=in_specs,
            out_specs=out_specs,
            scratch_shapes=[pltpu.VMEM((TH + 2, W + 2, cin_p), jnp.float32),
                            pltpu.SemaphoreType.DMA],
        ),
        out_shape=out_shape,
        compiler_params=pltpu.CompilerParams(
            dimension_semantics=("parallel", "parallel")),
    )(*args)


# --------------------------------------------------------------------------
# final BN + ReLU (elementwise, lane-dense, gridded)
# --------------------------------------------------------------------------
def _bn_relu_kernel(y_ref, scale_ref, shift_ref, o_ref):
    o_ref[...] = jnp.maximum(y_ref[...] * scale_ref[...] + shift_ref[...], 0.0)


def _bn_relu_stage(y, scale, shift, *, TH):
    N, H, W, cp = y.shape
    gR = H // TH
    tile = pl.BlockSpec((1, TH, W, cp), lambda n, i: (n, i, 0, 0))
    vec = pl.BlockSpec((1, 1, 1, cp), lambda n, i: (0, 0, 0, 0))
    return pl.pallas_call(
        _bn_relu_kernel,
        grid_spec=pltpu.PrefetchScalarGridSpec(
            num_scalar_prefetch=0,
            grid=(N, gR),
            in_specs=[tile, vec, vec],
            out_specs=tile,
        ),
        out_shape=jax.ShapeDtypeStruct((N, H, W, cp), jnp.float32),
        compiler_params=pltpu.CompilerParams(
            dimension_semantics=("parallel", "parallel")),
    )(y, scale.reshape(1, 1, 1, cp), shift.reshape(1, 1, 1, cp))


# --------------------------------------------------------------------------
# wrapper (layout plumbing + tiny cross-tile BN reductions)
# --------------------------------------------------------------------------
def _round_up(x, m):
    return (x + m - 1) // m * m


def _pack_weight(w_oihw, cin_p, cout_p):
    """PyTorch OIHW (Cout, Cin, 3, 3) -> im2col-packed (9*cin_p, cout_p)."""
    cout, cin = w_oihw.shape[0], w_oihw.shape[1]
    w = jnp.transpose(w_oihw, (2, 3, 1, 0)).astype(jnp.float32)        # HWIO
    w = jnp.pad(w, ((0, 0), (0, 0), (0, cin_p - cin), (0, cout_p - cout)))
    return w.reshape(9 * cin_p, cout_p).astype(MATMUL_DTYPE)


def _pad_vec(v, cp):
    return jnp.pad(v.astype(jnp.float32), (0, cp - v.shape[0]))


def _bn_affine(stats, gamma, beta, count):
    """Fold exact training-mode batch statistics into a per-channel affine."""
    s = jnp.sum(stats, axis=(0, 1))                    # (2, Cp): [sum, sumsq]
    mean = s[0] / count
    var = jnp.maximum(s[1] / count - mean * mean, 0.0)  # biased variance
    scale = jax.lax.rsqrt(var + EPS) * gamma            # padded gamma==0 -> 0
    shift = beta - mean * scale
    return scale, shift


def conv_block_forward(x_nchw, params, *, tile_h=8):
    """Pallas-backed conv_block forward: (N, Cin, H, W) -> (N, Cout, H, W)."""
    N, cin, H, W = x_nchw.shape
    cout = params["w1"].shape[0]
    cin_p = _round_up(cin, LANES)
    cout_p = _round_up(cout, LANES)
    TH = tile_h if H % tile_h == 0 else H

    # NCHW -> NHWC, channel pad to a lane-dense multiple of 128, spatial pad.
    # TODO(synk): fold these layout/padding passes into the kernels' halo DMA
    # (and keep NHWC end-to-end) to cut the wrapper HBM round-trips.
    x = jnp.transpose(x_nchw, (0, 2, 3, 1)).astype(jnp.float32)
    xp = jnp.pad(x, ((0, 0), (1, 1), (1, 1), (0, cin_p - cin)))

    w1 = _pack_weight(params["w1"], cin_p, cout_p)
    w2 = _pack_weight(params["w2"], cout_p, cout_p)
    b1 = _pad_vec(params["b1"], cout_p)
    b2 = _pad_vec(params["b2"], cout_p)
    g1 = _pad_vec(params["g1"], cout_p)
    g2 = _pad_vec(params["g2"], cout_p)
    be1 = _pad_vec(params["be1"], cout_p)
    be2 = _pad_vec(params["be2"], cout_p)

    count = N * H * W

    # conv1 + bias, with per-tile BN1 statistics.
    y1, st1 = _conv_stage(xp, w1, b1, H=H, W=W, TH=TH)
    scale1, shift1 = _bn_affine(st1, g1, be1, count)

    # BN1 + ReLU fused into the conv2 pass (reads y1 with a 1-pixel halo).
    y1p = jnp.pad(y1, ((0, 0), (1, 1), (1, 1), (0, 0)))
    y2, st2 = _conv_stage(y1p, w2, b2, scale1, shift1, H=H, W=W, TH=TH)
    scale2, shift2 = _bn_affine(st2, g2, be2, count)

    # BN2 + ReLU.
    out = _bn_relu_stage(y2, scale2, shift2, TH=TH)

    # Drop channel padding, NHWC -> NCHW.
    return jnp.transpose(out[..., :cout], (0, 3, 1, 2))


# --------------------------------------------------------------------------
# pure-JAX reference (matches PyTorch training-mode forward)
# --------------------------------------------------------------------------
def _reference_forward(x, p):
    def conv(x, w, b):
        y = jax.lax.conv_general_dilated(
            x, w, window_strides=(1, 1), padding=((1, 1), (1, 1)),
            dimension_numbers=("NCHW", "OIHW", "NCHW"))
        return y + b.reshape(1, -1, 1, 1)

    def bn_relu(y, g, be):
        m = jnp.mean(y, axis=(0, 2, 3), keepdims=True)
        v = jnp.mean((y - m) ** 2, axis=(0, 2, 3), keepdims=True)
        yn = (y - m) / jnp.sqrt(v + EPS) * g.reshape(1, -1, 1, 1) + be.reshape(1, -1, 1, 1)
        return jnp.maximum(yn, 0.0)

    y = bn_relu(conv(x, p["w1"], p["b1"]), p["g1"], p["be1"])
    y = bn_relu(conv(y, p["w2"], p["b2"]), p["g2"], p["be2"])
    return y


def init_params(key, ch_in, ch_out):
    k1, k2, k3, k4 = jax.random.split(key, 4)
    return {
        "w1": 0.1 * jax.random.normal(k1, (ch_out, ch_in, 3, 3), jnp.float32),
        "b1": 0.05 * jax.random.normal(k2, (ch_out,), jnp.float32),
        "g1": jnp.ones((ch_out,), jnp.float32),    # BatchNorm weight (default)
        "be1": jnp.zeros((ch_out,), jnp.float32),  # BatchNorm bias   (default)
        "w2": 0.1 * jax.random.normal(k3, (ch_out, ch_out, 3, 3), jnp.float32),
        "b2": 0.05 * jax.random.normal(k4, (ch_out,), jnp.float32),
        "g2": jnp.ones((ch_out,), jnp.float32),
        "be2": jnp.zeros((ch_out,), jnp.float32),
    }


if __name__ == "__main__":
    key = jax.random.PRNGKey(0)
    kx, kp = jax.random.split(key)

    N, CH_IN, CH_OUT, H, W = 2, 4, 8, 16, 16
    x = jax.random.normal(kx, (N, CH_IN, H, W), jnp.float32)
    params = init_params(kp, CH_IN, CH_OUT)

    fwd = jax.jit(conv_block_forward)
    out = jax.block_until_ready(fwd(x, params))

    ref = _reference_forward(x, params)
    assert out.shape == (N, CH_OUT, H, W), out.shape
    max_err = float(jnp.max(jnp.abs(out - ref)))
    assert jnp.allclose(out, ref, atol=1e-3, rtol=1e-3), max_err

    print("KERNEL_OK")
</pallas_src>

<mosaic_0001>
module attributes {stable_mosaic.version = 11 : i64} {
  func.func @body_nofuse(%arg0: i32, %arg1: i32, %arg2: memref<2x18x18x128xf32, #tpu.memory_space<any>>, %arg3: memref<1152x128xf32, #tpu.memory_space<vmem>>, %arg4: memref<1x128xf32, #tpu.memory_space<vmem>>, %arg5: memref<1x8x16x128xf32, #tpu.memory_space<vmem>>, %arg6: memref<1x1x2x128xf32, #tpu.memory_space<vmem>>, %arg7: memref<10x18x128xf32, #tpu.memory_space<vmem>>, %arg8: memref<!tpu.dma_semaphore, #tpu.memory_space<semaphore_mem>>) attributes {dimension_semantics = [#tpu.dimension_semantics<parallel>, #tpu.dimension_semantics<parallel>], iteration_bounds = array<i64: 2, 2>, scalar_prefetch = 0 : i64, scratch_operands = 2 : i64, tpu.core_type = #tpu.core_type<tc>, window_params = [{}, {pipeline_mode = #tpu.pipeline_mode<synchronous>, transform_indices = @transform_1, window_bounds = array<i64: 1152, 128>}, {pipeline_mode = #tpu.pipeline_mode<synchronous>, transform_indices = @transform_2, window_bounds = array<i64: 1, 128>}, {transform_indices = @transform_3, window_bounds = array<i64: 1, 8, 16, 128>}, {transform_indices = @transform_4, window_bounds = array<i64: 1, 1, 2, 128>}]} {
    %c8_i32 = arith.constant 8 : i32
    %0 = arith.muli %arg1, %c8_i32 : i32
    %1 = tpu.assume_multiple %0, 8 : i32
    %c0_i32 = arith.constant 0 : i32
    %c0_i32_0 = arith.constant 0 : i32
    %2 = tpu.memref_slice %arg2[%arg0, %1, %c0_i32, %c0_i32_0] : memref<2x18x18x128xf32, #tpu.memory_space<any>> -> memref<1x10x18x128xf32, #tpu.memory_space<any>>
    %3 = tpu.memref_squeeze %2 : memref<1x10x18x128xf32, #tpu.memory_space<any>> -> memref<10x18x128xf32, #tpu.memory_space<any>>
    tpu.enqueue_dma source(%3 : memref<10x18x128xf32, #tpu.memory_space<any>>) target(%arg7 : memref<10x18x128xf32, #tpu.memory_space<vmem>>) target_semaphore(%arg8 : memref<!tpu.dma_semaphore, #tpu.memory_space<semaphore_mem>>)
    %c0_i32_1 = arith.constant 0 : i32
    %c0_i32_2 = arith.constant 0 : i32
    %4 = tpu.memref_slice %arg2[%arg0, %1, %c0_i32_1, %c0_i32_2] : memref<2x18x18x128xf32, #tpu.memory_space<any>> -> memref<1x10x18x128xf32, #tpu.memory_space<any>>
    %5 = tpu.memref_squeeze %4 : memref<1x10x18x128xf32, #tpu.memory_space<any>> -> memref<10x18x128xf32, #tpu.memory_space<any>>
    tpu.wait_dma2 semaphore(%arg8 : memref<!tpu.dma_semaphore, #tpu.memory_space<semaphore_mem>>) src(%5 : memref<10x18x128xf32, #tpu.memory_space<any>>) dst(%arg7 : memref<10x18x128xf32, #tpu.memory_space<vmem>>)
    %c0 = arith.constant 0 : index
    %c0_3 = arith.constant 0 : index
    %c0_4 = arith.constant 0 : index
    %6 = vector.load %arg7[%c0, %c0_3, %c0_4] : memref<10x18x128xf32, #tpu.memory_space<vmem>>, vector<10x18x128xf32>
    %7 = vector.extract_strided_slice %6 {offsets = [0, 0, 0], sizes = [8, 16, 128], strides = [1, 1, 1]} : vector<10x18x128xf32> to vector<8x16x128xf32>
    %8 = vector.extract_strided_slice %6 {offsets = [0, 1, 0], sizes = [8, 16, 128], strides = [1, 1, 1]} : vector<10x18x128xf32> to vector<8x16x128xf32>
    %9 = vector.extract_strided_slice %6 {offsets = [0, 2, 0], sizes = [8, 16, 128], strides = [1, 1, 1]} : vector<10x18x128xf32> to vector<8x16x128xf32>
    %10 = vector.extract_strided_slice %6 {offsets = [1, 0, 0], sizes = [8, 16, 128], strides = [1, 1, 1]} : vector<10x18x128xf32> to vector<8x16x128xf32>
    %11 = vector.extract_strided_slice %6 {offsets = [1, 1, 0], sizes = [8, 16, 128], strides = [1, 1, 1]} : vector<10x18x128xf32> to vector<8x16x128xf32>
    %12 = vector.extract_strided_slice %6 {offsets = [1, 2, 0], sizes = [8, 16, 128], strides = [1, 1, 1]} : vector<10x18x128xf32> to vector<8x16x128xf32>
    %13 = vector.extract_strided_slice %6 {offsets = [2, 0, 0], sizes = [8, 16, 128], strides = [1, 1, 1]} : vector<10x18x128xf32> to vector<8x16x128xf32>
    %14 = vector.extract_strided_slice %6 {offsets = [2, 1, 0], sizes = [8, 16, 128], strides = [1, 1, 1]} : vector<10x18x128xf32> to vector<8x16x128xf32>
    %15 = vector.extract_strided_slice %6 {offsets = [2, 2, 0], sizes = [8, 16, 128], strides = [1, 1, 1]} : vector<10x18x128xf32> to vector<8x16x128xf32>
    %16 = tpu.concatenate %7, %8, %9, %10, %11, %12, %13, %14, %15 in 2 : vector<8x16x128xf32>, vector<8x16x128xf32>, vector<8x16x128xf32>, vector<8x16x128xf32>, vector<8x16x128xf32>, vector<8x16x128xf32>, vector<8x16x128xf32>, vector<8x16x128xf32>, vector<8x16x128xf32> -> vector<8x16x1152xf32>
    %17 = vector.shape_cast %16 : vector<8x16x1152xf32> to vector<128x1152xf32>
    %c0_5 = arith.constant 0 : index
    %c0_6 = arith.constant 0 : index
    %18 = vector.load %arg3[%c0_5, %c0_6] : memref<1152x128xf32, #tpu.memory_space<vmem>>, vector<1152x128xf32>
    %cst = arith.constant dense<0.000000e+00> : vector<128x128xf32>
    %19 = tpu.matmul %17, %18, %cst {dimension_numbers = #tpu.dot_dimension_numbers<[1], [0], [0], [1], [0, 0, 1, 1], [], []>} : vector<128x1152xf32>, vector<1152x128xf32>, vector<128x128xf32> -> vector<128x128xf32>
    %c0_7 = arith.constant 0 : index
    %c0_8 = arith.constant 0 : index
    %20 = vector.load %arg4[%c0_7, %c0_8] : memref<1x128xf32, #tpu.memory_space<vmem>>, vector<1x128xf32>
    %21 = vector.broadcast %20 : vector<1x128xf32> to vector<128x128xf32>
    %22 = arith.addf %19, %21 : vector<128x128xf32>
    %23 = vector.shape_cast %22 : vector<128x128xf32> to vector<1x8x16x128xf32>
    %c0_9 = arith.constant 0 : index
    %c0_10 = arith.constant 0 : index
    %c0_11 = arith.constant 0 : index
    %c0_12 = arith.constant 0 : index
    %24 = vector.load %arg5[%c0_9, %c0_10, %c0_11, %c0_12] : memref<1x8x16x128xf32, #tpu.memory_space<vmem>>, vector<1x8x16x128xf32>
    tpu.vector_store %arg5[%c0_9, %c0_10, %c0_11, %c0_12], %23 {strides = array<i32>} : memref<1x8x16x128xf32, #tpu.memory_space<vmem>>, vector<1x8x16x128xf32>,
    %cst_13 = arith.constant dense<0.000000e+00> : vector<128xf32>
    %25 = vector.multi_reduction <add>, %22, %cst_13 [0] : vector<128x128xf32> to vector<128xf32>
    %26 = vector.shape_cast %25 : vector<128xf32> to vector<1x128xf32>
    %27 = arith.mulf %22, %22 : vector<128x128xf32>
    %cst_14 = arith.constant dense<0.000000e+00> : vector<128xf32>
    %28 = vector.multi_reduction <add>, %27, %cst_14 [0] : vector<128x128xf32> to vector<128xf32>
    %29 = vector.shape_cast %28 : vector<128xf32> to vector<1x128xf32>
    %30 = tpu.concatenate %26, %29 in 0 : vector<1x128xf32>, vector<1x128xf32> -> vector<2x128xf32>
    %31 = vector.shape_cast %30 : vector<2x128xf32> to vector<1x1x2x128xf32>
    %c0_15 = arith.constant 0 : index
    %c0_16 = arith.constant 0 : index
    %c0_17 = arith.constant 0 : index
    %c0_18 = arith.constant 0 : index
    %32 = vector.load %arg6[%c0_15, %c0_16, %c0_17, %c0_18] : memref<1x1x2x128xf32, #tpu.memory_space<vmem>>, vector<1x1x2x128xf32>
    tpu.vector_store %arg6[%c0_15, %c0_16, %c0_17, %c0_18], %31 {strides = array<i32>} : memref<1x1x2x128xf32, #tpu.memory_space<vmem>>, vector<1x1x2x128xf32>,
    return
  }
  func.func @transform_1(%arg0: i32, %arg1: i32) -> (i32, i32) {
    %c0_i32 = arith.constant 0 : i32
    %c0_i32_0 = arith.constant 0 : i32
    %c0_i32_1 = arith.constant 0 : i32
    return %c0_i32, %c0_i32_0 : i32, i32
  }
  func.func @transform_2(%arg0: i32, %arg1: i32) -> (i32, i32) {
    %c0_i32 = arith.constant 0 : i32
    %c0_i32_0 = arith.constant 0 : i32
    %c0_i32_1 = arith.constant 0 : i32
    return %c0_i32, %c0_i32_0 : i32, i32
  }
  func.func @transform_3(%arg0: i32, %arg1: i32) -> (i32, i32, i32, i32) {
    %c0_i32 = arith.constant 0 : i32
    %c0_i32_0 = arith.constant 0 : i32
    %c0_i32_1 = arith.constant 0 : i32
    return %arg0, %arg1, %c0_i32, %c0_i32_0 : i32, i32, i32, i32
  }
  func.func @transform_4(%arg0: i32, %arg1: i32) -> (i32, i32, i32, i32) {
    %c0_i32 = arith.constant 0 : i32
    %c0_i32_0 = arith.constant 0 : i32
    %c0_i32_1 = arith.constant 0 : i32
    return %arg0, %arg1, %c0_i32, %c0_i32_0 : i32, i32, i32, i32
  }
}

module attributes {stable_mosaic.version = 11 : i64} {
  func.func @_bn_relu_kernel(%arg0: i32, %arg1: i32, %arg2: memref<1x8x16x128xf32, #tpu.memory_space<vmem>>, %arg3: memref<1x1x1x128xf32, #tpu.memory_space<vmem>>, %arg4: memref<1x1x1x128xf32, #tpu.memory_space<vmem>>, %arg5: memref<1x8x16x128xf32, #tpu.memory_space<vmem>>) attributes {dimension_semantics = [#tpu.dimension_semantics<parallel>, #tpu.dimension_semantics<parallel>], iteration_bounds = array<i64: 2, 2>, scalar_prefetch = 0 : i64, scratch_operands = 0 : i64, tpu.core_type = #tpu.core_type<tc>, window_params = [{transform_indices = @transform_0, window_bounds = array<i64: 1, 8, 16, 128>}, {pipeline_mode = #tpu.pipeline_mode<synchronous>, transform_indices = @transform_1, window_bounds = array<i64: 1, 1, 1, 128>}, {pipeline_mode = #tpu.pipeline_mode<synchronous>, transform_indices = @transform_2, window_bounds = array<i64: 1, 1, 1, 128>}, {transform_indices = @transform_3, window_bounds = array<i64: 1, 8, 16, 128>}]} {
    %c0 = arith.constant 0 : index
    %c0_0 = arith.constant 0 : index
    %c0_1 = arith.constant 0 : index
    %c0_2 = arith.constant 0 : index
    %0 = vector.load %arg2[%c0, %c0_0, %c0_1, %c0_2] : memref<1x8x16x128xf32, #tpu.memory_space<vmem>>, vector<1x8x16x128xf32>
    %c0_3 = arith.constant 0 : index
    %c0_4 = arith.constant 0 : index
    %c0_5 = arith.constant 0 : index
    %c0_6 = arith.constant 0 : index
    %1 = vector.load %arg3[%c0_3, %c0_4, %c0_5, %c0_6] : memref<1x1x1x128xf32, #tpu.memory_space<vmem>>, vector<1x1x1x128xf32>
    %2 = vector.broadcast %1 : vector<1x1x1x128xf32> to vector<1x8x16x128xf32>
    %3 = arith.mulf %0, %2 : vector<1x8x16x128xf32>
    %c0_7 = arith.constant 0 : index
    %c0_8 = arith.constant 0 : index
    %c0_9 = arith.constant 0 : index
    %c0_10 = arith.constant 0 : index
    %4 = vector.load %arg4[%c0_7, %c0_8, %c0_9, %c0_10] : memref<1x1x1x128xf32, #tpu.memory_space<vmem>>, vector<1x1x1x128xf32>
    %5 = vector.broadcast %4 : vector<1x1x1x128xf32> to vector<1x8x16x128xf32>
    %6 = arith.addf %3, %5 : vector<1x8x16x128xf32>
    %cst = arith.constant 0.000000e+00 : f32
    %7 = vector.broadcast %cst : f32 to vector<1x8x16x128xf32>
    %8 = arith.maximumf %6, %7 : vector<1x8x16x128xf32>
    %c0_11 = arith.constant 0 : index
    %c0_12 = arith.constant 0 : index
    %c0_13 = arith.constant 0 : index
    %c0_14 = arith.constant 0 : index
    %9 = vector.load %arg5[%c0_11, %c0_12, %c0_13, %c0_14] : memref<1x8x16x128xf32, #tpu.memory_space<vmem>>, vector<1x8x16x128xf32>
    tpu.vector_store %arg5[%c0_11, %c0_12, %c0_13, %c0_14], %8 {strides = array<i32>} : memref<1x8x16x128xf32, #tpu.memory_space<vmem>>, vector<1x8x16x128xf32>,
    return
  }
  func.func @transform_0(%arg0: i32, %arg1: i32) -> (i32, i32, i32, i32) {
    %c0_i32 = arith.constant 0 : i32
    %c0_i32_0 = arith.constant 0 : i32
    %c0_i32_1 = arith.constant 0 : i32
    return %arg0, %arg1, %c0_i32, %c0_i32_0 : i32, i32, i32, i32
  }
  func.func @transform_1(%arg0: i32, %arg1: i32) -> (i32, i32, i32, i32) {
    %c0_i32 = arith.constant 0 : i32
    %c0_i32_0 = arith.constant 0 : i32
    %c0_i32_1 = arith.constant 0 : i32
    %c0_i32_2 = arith.constant 0 : i32
    %c0_i32_3 = arith.constant 0 : i32
    return %c0_i32, %c0_i32_0, %c0_i32_1, %c0_i32_2 : i32, i32, i32, i32
  }
  func.func @transform_2(%arg0: i32, %arg1: i32) -> (i32, i32, i32, i32) {
    %c0_i32 = arith.constant 0 : i32
    %c0_i32_0 = arith.constant 0 : i32
    %c0_i32_1 = arith.constant 0 : i32
    %c0_i32_2 = arith.constant 0 : i32
    %c0_i32_3 = arith.constant 0 : i32
    return %c0_i32, %c0_i32_0, %c0_i32_1, %c0_i32_2 : i32, i32, i32, i32
  }
  func.func @transform_3(%arg0: i32, %arg1: i32) -> (i32, i32, i32, i32) {
    %c0_i32 = arith.constant 0 : i32
    %c0_i32_0 = arith.constant 0 : i32
    %c0_i32_1 = arith.constant 0 : i32
    return %arg0, %arg1, %c0_i32, %c0_i32_0 : i32, i32, i32, i32
  }
}

module attributes {stable_mosaic.version = 11 : i64} {
  func.func @body(%arg0: i32, %arg1: i32, %arg2: memref<2x18x18x128xf32, #tpu.memory_space<any>>, %arg3: memref<1152x128xf32, #tpu.memory_space<vmem>>, %arg4: memref<1x128xf32, #tpu.memory_space<vmem>>, %arg5: memref<1x1x128xf32, #tpu.memory_space<vmem>>, %arg6: memref<1x1x128xf32, #tpu.memory_space<vmem>>, %arg7: memref<1x8x16x128xf32, #tpu.memory_space<vmem>>, %arg8: memref<1x1x2x128xf32, #tpu.memory_space<vmem>>, %arg9: memref<10x18x128xf32, #tpu.memory_space<vmem>>, %arg10: memref<!tpu.dma_semaphore, #tpu.memory_space<semaphore_mem>>) attributes {dimension_semantics = [#tpu.dimension_semantics<parallel>, #tpu.dimension_semantics<parallel>], iteration_bounds = array<i64: 2, 2>, scalar_prefetch = 0 : i64, scratch_operands = 2 : i64, tpu.core_type = #tpu.core_type<tc>, window_params = [{}, {pipeline_mode = #tpu.pipeline_mode<synchronous>, transform_indices = @transform_1, window_bounds = array<i64: 1152, 128>}, {pipeline_mode = #tpu.pipeline_mode<synchronous>, transform_indices = @transform_2, window_bounds = array<i64: 1, 128>}, {pipeline_mode = #tpu.pipeline_mode<synchronous>, transform_indices = @transform_3, window_bounds = array<i64: 1, 1, 128>}, {pipeline_mode = #tpu.pipeline_mode<synchronous>, transform_indices = @transform_4, window_bounds = array<i64: 1, 1, 128>}, {transform_indices = @transform_5, window_bounds = array<i64: 1, 8, 16, 128>}, {transform_indices = @transform_6, window_bounds = array<i64: 1, 1, 2, 128>}]} {
    %c8_i32 = arith.constant 8 : i32
    %0 = arith.muli %arg1, %c8_i32 : i32
    %1 = tpu.assume_multiple %0, 8 : i32
    %c0_i32 = arith.constant 0 : i32
    %c0_i32_0 = arith.constant 0 : i32
    %2 = tpu.memref_slice %arg2[%arg0, %1, %c0_i32, %c0_i32_0] : memref<2x18x18x128xf32, #tpu.memory_space<any>> -> memref<1x10x18x128xf32, #tpu.memory_space<any>>
    %3 = tpu.memref_squeeze %2 : memref<1x10x18x128xf32, #tpu.memory_space<any>> -> memref<10x18x128xf32, #tpu.memory_space<any>>
    tpu.enqueue_dma source(%3 : memref<10x18x128xf32, #tpu.memory_space<any>>) target(%arg9 : memref<10x18x128xf32, #tpu.memory_space<vmem>>) target_semaphore(%arg10 : memref<!tpu.dma_semaphore, #tpu.memory_space<semaphore_mem>>)
    %c0_i32_1 = arith.constant 0 : i32
    %c0_i32_2 = arith.constant 0 : i32
    %4 = tpu.memref_slice %arg2[%arg0, %1, %c0_i32_1, %c0_i32_2] : memref<2x18x18x128xf32, #tpu.memory_space<any>> -> memref<1x10x18x128xf32, #tpu.memory_space<any>>
    %5 = tpu.memref_squeeze %4 : memref<1x10x18x128xf32, #tpu.memory_space<any>> -> memref<10x18x128xf32, #tpu.memory_space<any>>
    tpu.wait_dma2 semaphore(%arg10 : memref<!tpu.dma_semaphore, #tpu.memory_space<semaphore_mem>>) src(%5 : memref<10x18x128xf32, #tpu.memory_space<any>>) dst(%arg9 : memref<10x18x128xf32, #tpu.memory_space<vmem>>)
    %c0 = arith.constant 0 : index
    %c0_3 = arith.constant 0 : index
    %c0_4 = arith.constant 0 : index
    %6 = vector.load %arg9[%c0, %c0_3, %c0_4] : memref<10x18x128xf32, #tpu.memory_space<vmem>>, vector<10x18x128xf32>
    %c0_5 = arith.constant 0 : index
    %c0_6 = arith.constant 0 : index
    %c0_7 = arith.constant 0 : index
    %7 = vector.load %arg5[%c0_5, %c0_6, %c0_7] : memref<1x1x128xf32, #tpu.memory_space<vmem>>, vector<1x1x128xf32>
    %8 = vector.broadcast %7 : vector<1x1x128xf32> to vector<10x18x128xf32>
    %9 = arith.mulf %6, %8 : vector<10x18x128xf32>
    %c0_8 = arith.constant 0 : index
    %c0_9 = arith.constant 0 : index
    %c0_10 = arith.constant 0 : index
    %10 = vector.load %arg6[%c0_8, %c0_9, %c0_10] : memref<1x1x128xf32, #tpu.memory_space<vmem>>, vector<1x1x128xf32>
    %11 = vector.broadcast %10 : vector<1x1x128xf32> to vector<10x18x128xf32>
    %12 = arith.addf %9, %11 : vector<10x18x128xf32>
    %cst = arith.constant 0.000000e+00 : f32
    %13 = vector.broadcast %cst : f32 to vector<10x18x128xf32>
    %14 = arith.maximumf %12, %13 : vector<10x18x128xf32>
    %15 = tpu.iota {dimensions = array<i32: 0>} : vector<10x18x1xi32>
    %16 = vector.broadcast %1 : i32 to vector<10x18x1xi32>
    %17 = arith.addi %15, %16 : vector<10x18x1xi32>
    %18 = tpu.iota {dimensions = array<i32: 1>} : vector<10x18x1xi32>
    %c0_i32_11 = arith.constant 0 : i32
    %19 = vector.broadcast %c0_i32_11 : i32 to vector<10x18x1xi32>
    %20 = arith.cmpi sgt, %17, %19 : vector<10x18x1xi32>
    %c17_i32 = arith.constant 17 : i32
    %21 = vector.broadcast %c17_i32 : i32 to vector<10x18x1xi32>
    %22 = arith.cmpi slt, %17, %21 : vector<10x18x1xi32>
    %23 = arith.andi %20, %22 : vector<10x18x1xi1>
    %c0_i32_12 = arith.constant 0 : i32
    %24 = vector.broadcast %c0_i32_12 : i32 to vector<10x18x1xi32>
    %25 = arith.cmpi sgt, %18, %24 : vector<10x18x1xi32>
    %26 = arith.andi %23, %25 : vector<10x18x1xi1>
    %c17_i32_13 = arith.constant 17 : i32
    %27 = vector.broadcast %c17_i32_13 : i32 to vector<10x18x1xi32>
    %28 = arith.cmpi slt, %18, %27 : vector<10x18x1xi32>
    %29 = arith.andi %26, %28 : vector<10x18x1xi1>
    %cst_14 = arith.constant 0.000000e+00 : f32
    %30 = vector.shape_cast %29 : vector<10x18x1xi1> to vector<10x18x1xi1>
    %31 = vector.broadcast %30 : vector<10x18x1xi1> to vector<10x18x128xi1>
    %32 = vector.broadcast %cst_14 : f32 to vector<10x18x128xf32>
    %33 = arith.select %31, %14, %32 : vector<10x18x128xi1>, vector<10x18x128xf32>
    %34 = vector.extract_strided_slice %33 {offsets = [0, 0, 0], sizes = [8, 16, 128], strides = [1, 1, 1]} : vector<10x18x128xf32> to vector<8x16x128xf32>
    %35 = vector.extract_strided_slice %33 {offsets = [0, 1, 0], sizes = [8, 16, 128], strides = [1, 1, 1]} : vector<10x18x128xf32> to vector<8x16x128xf32>
    %36 = vector.extract_strided_slice %33 {offsets = [0, 2, 0], sizes = [8, 16, 128], strides = [1, 1, 1]} : vector<10x18x128xf32> to vector<8x16x128xf32>
    %37 = vector.extract_strided_slice %33 {offsets = [1, 0, 0], sizes = [8, 16, 128], strides = [1, 1, 1]} : vector<10x18x128xf32> to vector<8x16x128xf32>
    %38 = vector.extract_strided_slice %33 {offsets = [1, 1, 0], sizes = [8, 16, 128], strides = [1, 1, 1]} : vector<10x18x128xf32> to vector<8x16x128xf32>
    %39 = vector.extract_strided_slice %33 {offsets = [1, 2, 0], sizes = [8, 16, 128], strides = [1, 1, 1]} : vector<10x18x128xf32> to vector<8x16x128xf32>
    %40 = vector.extract_strided_slice %33 {offsets = [2, 0, 0], sizes = [8, 16, 128], strides = [1, 1, 1]} : vector<10x18x128xf32> to vector<8x16x128xf32>
    %41 = vector.extract_strided_slice %33 {offsets = [2, 1, 0], sizes = [8, 16, 128], strides = [1, 1, 1]} : vector<10x18x128xf32> to vector<8x16x128xf32>
    %42 = vector.extract_strided_slice %33 {offsets = [2, 2, 0], sizes = [8, 16, 128], strides = [1, 1, 1]} : vector<10x18x128xf32> to vector<8x16x128xf32>
    %43 = tpu.concatenate %34, %35, %36, %37, %38, %39, %40, %41, %42 in 2 : vector<8x16x128xf32>, vector<8x16x128xf32>, vector<8x16x128xf32>, vector<8x16x128xf32>, vector<8x16x128xf32>, vector<8x16x128xf32>, vector<8x16x128xf32>, vector<8x16x128xf32>, vector<8x16x128xf32> -> vector<8x16x1152xf32>
    %44 = vector.shape_cast %43 : vector<8x16x1152xf32> to vector<128x1152xf32>
    %c0_15 = arith.constant 0 : index
    %c0_16 = arith.constant 0 : index
    %45 = vector.load %arg3[%c0_15, %c0_16] : memref<1152x128xf32, #tpu.memory_space<vmem>>, vector<1152x128xf32>
    %cst_17 = arith.constant dense<0.000000e+00> : vector<128x128xf32>
    %46 = tpu.matmul %44, %45, %cst_17 {dimension_numbers = #tpu.dot_dimension_numbers<[1], [0], [0], [1], [0, 0, 1, 1], [], []>} : vector<128x1152xf32>, vector<1152x128xf32>, vector<128x128xf32> -> vector<128x128xf32>
    %c0_18 = arith.constant 0 : index
    %c0_19 = arith.constant 0 : index
    %47 = vector.load %arg4[%c0_18, %c0_19] : memref<1x128xf32, #tpu.memory_space<vmem>>, vector<1x128xf32>
    %48 = vector.broadcast %47 : vector<1x128xf32> to vector<128x128xf32>
    %49 = arith.addf %46, %48 : vector<128x128xf32>
    %50 = vector.shape_cast %49 : vector<128x128xf32> to vector<1x8x16x128xf32>
    %c0_20 = arith.constant 0 : index
    %c0_21 = arith.constant 0 : index
    %c0_22 = arith.constant 0 : index
    %c0_23 = arith.constant 0 : index
    %51 = vector.load %arg7[%c0_20, %c0_21, %c0_22, %c0_23] : memref<1x8x16x128xf32, #tpu.memory_space<vmem>>, vector<1x8x16x128xf32>
    tpu.vector_store %arg7[%c0_20, %c0_21, %c0_22, %c0_23], %50 {strides = array<i32>} : memref<1x8x16x128xf32, #tpu.memory_space<vmem>>, vector<1x8x16x128xf32>,
    %cst_24 = arith.constant dense<0.000000e+00> : vector<128xf32>
    %52 = vector.multi_reduction <add>, %49, %cst_24 [0] : vector<128x128xf32> to vector<128xf32>
    %53 = vector.shape_cast %52 : vector<128xf32> to vector<1x128xf32>
    %54 = arith.mulf %49, %49 : vector<128x128xf32>
    %cst_25 = arith.constant dense<0.000000e+00> : vector<128xf32>
    %55 = vector.multi_reduction <add>, %54, %cst_25 [0] : vector<128x128xf32> to vector<128xf32>
    %56 = vector.shape_cast %55 : vector<128xf32> to vector<1x128xf32>
    %57 = tpu.concatenate %53, %56 in 0 : vector<1x128xf32>, vector<1x128xf32> -> vector<2x128xf32>
    %58 = vector.shape_cast %57 : vector<2x128xf32> to vector<1x1x2x128xf32>
    %c0_26 = arith.constant 0 : index
    %c0_27 = arith.constant 0 : index
    %c0_28 = arith.constant 0 : index
    %c0_29 = arith.constant 0 : index
    %59 = vector.load %arg8[%c0_26, %c0_27, %c0_28, %c0_29] : memref<1x1x2x128xf32, #tpu.memory_space<vmem>>, vector<1x1x2x128xf32>
    tpu.vector_store %arg8[%c0_26, %c0_27, %c0_28, %c0_29], %58 {strides = array<i32>} : memref<1x1x2x128xf32, #tpu.memory_space<vmem>>, vector<1x1x2x128xf32>,
    return
  }
  func.func @transform_1(%arg0: i32, %arg1: i32) -> (i32, i32) {
    %c0_i32 = arith.constant 0 : i32
    %c0_i32_0 = arith.constant 0 : i32
    %c0_i32_1 = arith.constant 0 : i32
    return %c0_i32, %c0_i32_0 : i32, i32
  }
  func.func @transform_2(%arg0: i32, %arg1: i32) -> (i32, i32) {
    %c0_i32 = arith.constant 0 : i32
    %c0_i32_0 = arith.constant 0 : i32
    %c0_i32_1 = arith.constant 0 : i32
    return %c0_i32, %c0_i32_0 : i32, i32
  }
  func.func @transform_3(%arg0: i32, %arg1: i32) -> (i32, i32, i32) {
    %c0_i32 = arith.constant 0 : i32
    %c0_i32_0 = arith.constant 0 : i32
    %c0_i32_1 = arith.constant 0 : i32
    %c0_i32_2 = arith.constant 0 : i32
    return %c0_i32, %c0_i32_0, %c0_i32_1 : i32, i32, i32
  }
  func.func @transform_4(%arg0: i32, %arg1: i32) -> (i32, i32, i32) {
    %c0_i32 = arith.constant 0 : i32
    %c0_i32_0 = arith.constant 0 : i32
    %c0_i32_1 = arith.constant 0 : i32
    %c0_i32_2 = arith.constant 0 : i32
    return %c0_i32, %c0_i32_0, %c0_i32_1 : i32, i32, i32
  }
  func.func @transform_5(%arg0: i32, %arg1: i32) -> (i32, i32, i32, i32) {
    %c0_i32 = arith.constant 0 : i32
    %c0_i32_0 = arith.constant 0 : i32
    %c0_i32_1 = arith.constant 0 : i32
    return %arg0, %arg1, %c0_i32, %c0_i32_0 : i32, i32, i32, i32
  }
  func.func @transform_6(%arg0: i32, %arg1: i32) -> (i32, i32, i32, i32) {
    %c0_i32 = arith.constant 0 : i32
    %c0_i32_0 = arith.constant 0 : i32
    %c0_i32_1 = arith.constant 0 : i32
    return %arg0, %arg1, %c0_i32, %c0_i32_0 : i32, i32, i32, i32
  }
}

</mosaic_0001>

<bundles_post_ra>
// kernel: conv_block_forward.5
= control target key start
LH: loop header
LB: loop body
LE: loop exit
PB: predicated region body
PF: predicated region fallthrough
CT: control target
= control target key end

     0   :  { %s525_s12 = smov 0   ;;  %s527_s13 = smov 0   ;;  %s654_s0 = inlined_call_operand.vmem [shape: f32[2,16,16,128], index: 0, kind: input, shape index: {}]   ;;  %s655_s1 = inlined_call_operand.vmem [shape: f32[1,1,1,128], index: 1, kind: input, shape index: {}]   ;;  %s656_s2 = inlined_call_operand.vmem [shape: f32[1,1,1,128], index: 2, kind: input, shape index: {}]   ;;  %s657_s3 = inlined_call_operand.vmem [shape: f32[2,16,16,128], index: 3, kind: output, shape index: {}]  }
   0x1   :  { %s529_s14 = smov 0   ;;  %s531_s15 = smov 0  }
   0x2   :  { %s533_s16 = smov 0  }
   0x3 LB: > { %s22_s17 = sadd.s32 1, %s495_s14  ;;  %s25_s18 = sadd.s32 1, %s499_s15  ;;  %s503_s16 = sphi %s533_s16, %s13_s16   ;;  %s499_s15 = sphi %s531_s15, %s661_s15   ;;  %s495_s14 = sphi %s529_s14, %s660_s14   ;;  %s491_s13 = sphi %s527_s13, %s659_s13   ;;  %s487_s12 = sphi %s525_s12, %s658_s12  }
   0x4   : > { %p23_p0 = scmp.ge.s32.totalorder %s22_s17, 2  ;;  %p412_p1 = scmp.ge.s32.totalorder %s503_s16, 1 }
   0x5   : > { %p159_p2 = scmp.lt.s32.totalorder %s503_s16, 5 }
   0x6   : > { %s663_s17 = smov (%p23_p0, %s22_s17), 0  ;;  %s665_s18 = smov (!%p23_p0, %s25_s18), %s499_s15 }
   0x7   : > { %p160_p3 = pnand %p412_p1, %p159_p2  ;;  %p27_p4 = scmp.ge.s32.totalorder %s665_s18, 2 }
   0x8   : > { %s413_s19 = sshll.u32 (!%p160_p3), %s487_s12, 3  ;;  %p194_p5 = scmp.lt.s32.totalorder (!%p160_p3), %s491_s13, 1  ;;  %v558_v0 = vld [vmem:[%s655_s1] ss:$0 sm:$0xff] (!%p160_p3) }
   0x9   : > { %s667_s18 = smov (%p27_p4, %s665_s18), 0  ;;  %163 = sbr.rel (%p160_p3) target bundleno = 39 (0x27), region = 32 }
   0xa   : > { %p196_p6 = scmp.lt.s32.totalorder (!%p160_p3), %s413_s19, 15  ;;  %v568_v1 = vld [vmem:[%s656_s2] ss:$0 sm:$0xff] (!%p160_p3) }
  0x10   : > { %s669_s13 = smov (!%p194_p5, %s491_s13), 1  ;;  %s671_s19 = smov (!%p196_p6, %s413_s19), 15 }
  0x11   : > { %s415_s20 = sshll.u32 %s669_s13, 5  ;;  %s414_s21 = sshll.u32 %s671_s19, 1 }
  0x12   : > { %s200_s22 = sadd.s32 %s415_s20, %s414_s21 }
  0x13   : > { %s416_s23 = sshll.u32 %s200_s22, 3 }
  0x14   : > { %s563_s28 = scalar_lea.vmem %s654_s0, %s416_s23  ;;  %s591_s6 = scalar_lea.vmem %s657_s3, %s416_s23 }
  0x15   : > { %v215_v2 = vld [vmem:[%s563_s28] sm:$0xff]  ;;  %v216_v3 = vld [vmem:[%s563_s28 + $0x8] sm:$0xff]  ;;  %v217_v4 = vld [vmem:[%s563_s28 + $0x10] sm:$0xff] }
  0x16   : > { %v238_v5 = vmul.f32 %v558_v0, %v215_v2  ;;  %v239_v6 = vmul.f32 %v558_v0, %v216_v3  ;;  %v240_v7 = vmul.f32 %v558_v0, %v217_v4  ;;  %v218_v8 = vld [vmem:[%s563_s28 + $0x18] sm:$0xff]  ;;  %v219_v9 = vld [vmem:[%s563_s28 + $0x20] sm:$0xff]  ;;  %v220_v10 = vld [vmem:[%s563_s28 + $0x28] sm:$0xff] }
  0x17   : > { %v241_v11 = vmul.f32 %v558_v0, %v218_v8  ;;  %v242_v12 = vmul.f32 %v558_v0, %v219_v9  ;;  %v243_v13 = vmul.f32 %v558_v0, %v220_v10  ;;  %v221_v14 = vld [vmem:[%s563_s28 + $0x30] sm:$0xff]  ;;  %v222_v15 = vld [vmem:[%s563_s28 + $0x38] sm:$0xff]  ;;  %v223_v24 = vld [vmem:[%s563_s28 + $0x40] sm:$0xff] }
  0x18   : > { %v261_v16 = vadd.f32 %v568_v1, %v238_v5  ;;  %v262_v17 = vadd.f32 %v568_v1, %v239_v6  ;;  %v263_v18 = vadd.f32 %v568_v1, %v240_v7  ;;  %v244_v19 = vmul.f32 %v558_v0, %v221_v14  ;;  %v224_v25 = vld [vmem:[%s563_s28 + $0x48] sm:$0xff]  ;;  %v225_v26 = vld [vmem:[%s563_s28 + $0x50] sm:$0xff]  ;;  %v226_v31 = vld [vmem:[%s563_s28 + $0x58] sm:$0xff] }
  0x19   : > { %v264_v20 = vadd.f32 %v568_v1, %v241_v11  ;;  %v265_v21 = vadd.f32 %v568_v1, %v242_v12  ;;  %v266_v22 = vadd.f32 %v568_v1, %v243_v13  ;;  %v245_v23 = vmul.f32 %v558_v0, %v222_v15  ;;  %v227_v32 = vld [vmem:[%s563_s28 + $0x60] sm:$0xff]  ;;  %v228_v33 = vld [vmem:[%s563_s28 + $0x68] sm:$0xff]  ;;  %v229_v38 = vld [vmem:[%s563_s28 + $0x70] sm:$0xff] }
  0x1a   : > { %v277_v27 = vmax.f32 %v261_v16, 0.0  ;;  %v278_v28 = vmax.f32 %v262_v17, 0.0  ;;  %v279_v29 = vmax.f32 %v263_v18, 0.0  ;;  %v267_v30 = vadd.f32 %v568_v1, %v244_v19  ;;  %v230_v43 = vld [vmem:[%s563_s28 + $0x78] sm:$0xff] }
  0x1b   : > { %v280_v34 = vmax.f32 %v264_v20, 0.0  ;;  %v281_v35 = vmax.f32 %v265_v21, 0.0  ;;  %v282_v36 = vmax.f32 %v266_v22, 0.0  ;;  %v268_v37 = vadd.f32 %v568_v1, %v245_v23 }
  0x1c   : > { %293 = vst [vmem:[%s591_s6] sm:$0xff] %v277_v27  ;;  %294 = vst [vmem:[%s591_s6 + $0x8] sm:$0xff] %v278_v28  ;;  %v283_v39 = vmax.f32 %v267_v30, 0.0  ;;  %v246_v40 = vmul.f32 %v558_v0, %v223_v24  ;;  %v247_v41 = vmul.f32 %v558_v0, %v224_v25  ;;  %v248_v42 = vmul.f32 %v558_v0, %v225_v26 }
  0x1d   : > { %295 = vst [vmem:[%s591_s6 + $0x10] sm:$0xff] %v279_v29  ;;  %296 = vst [vmem:[%s591_s6 + $0x18] sm:$0xff] %v280_v34  ;;  %v284_v44 = vmax.f32 %v268_v37, 0.0  ;;  %v249_v45 = vmul.f32 %v558_v0, %v226_v31  ;;  %v250_v46 = vmul.f32 %v558_v0, %v227_v32  ;;  %v251_v47 = vmul.f32 %v558_v0, %v228_v33 }
  0x1e   : > { %297 = vst [vmem:[%s591_s6 + $0x20] sm:$0xff] %v281_v35  ;;  %298 = vst [vmem:[%s591_s6 + $0x28] sm:$0xff] %v282_v36  ;;  %v269_v48 = vadd.f32 %v568_v1, %v246_v40  ;;  %v270_v49 = vadd.f32 %v568_v1, %v247_v41  ;;  %v271_v50 = vadd.f32 %v568_v1, %v248_v42 }
  0x1f   : > { %299 = vst [vmem:[%s591_s6 + $0x30] sm:$0xff] %v283_v39  ;;  %v252_v51 = vmul.f32 %v558_v0, %v229_v38  ;;  %300 = vst [vmem:[%s591_s6 + $0x38] sm:$0xff] %v284_v44  ;;  %v272_v52 = vadd.f32 %v568_v1, %v249_v45  ;;  %v273_v53 = vadd.f32 %v568_v1, %v250_v46 }
  0x20   : > { %v274_v54 = vadd.f32 %v568_v1, %v251_v47  ;;  %v253_v55 = vmul.f32 %v558_v0, %v230_v43  ;;  %v285_v56 = vmax.f32 %v269_v48, 0.0  ;;  %v286_v57 = vmax.f32 %v270_v49, 0.0 }
  0x21   : > { %v287_v58 = vmax.f32 %v271_v50, 0.0  ;;  %v275_v59 = vadd.f32 %v568_v1, %v252_v51  ;;  %v288_v60 = vmax.f32 %v272_v52, 0.0  ;;  %v289_v61 = vmax.f32 %v273_v53, 0.0 }
  0x22   : > { %v290_v62 = vmax.f32 %v274_v54, 0.0  ;;  %v276_v63 = vadd.f32 %v568_v1, %v253_v55  ;;  %301 = vst [vmem:[%s591_s6 + $0x40] sm:$0xff] %v285_v56  ;;  %302 = vst [vmem:[%s591_s6 + $0x48] sm:$0xff] %v286_v57 }
  0x23   : > { %303 = vst [vmem:[%s591_s6 + $0x50] sm:$0xff] %v287_v58  ;;  %v291_v2 = vmax.f32 %v275_v59, 0.0  ;;  %304 = vst [vmem:[%s591_s6 + $0x58] sm:$0xff] %v288_v60 }
  0x24   : > { %305 = vst [vmem:[%s591_s6 + $0x60] sm:$0xff] %v289_v61  ;;  %306 = vst [vmem:[%s591_s6 + $0x68] sm:$0xff] %v290_v62  ;;  %v292_v0 = vmax.f32 %v276_v63, 0.0 }
  0x25   : > { %307 = vst [vmem:[%s591_s6 + $0x70] sm:$0xff] %v291_v2 }
  0x26   : > { %308 = vst [vmem:[%s591_s6 + $0x78] sm:$0xff] %v292_v0 }
  0x27 PF: > { %s13_s16 = sadd.s32 1, %s503_s16   ;;  %s658_s12 = smov %s495_s14 }
  0x28   : > { %p10_p7 = scmp.ge.s32.totalorder %s13_s16, 6   ;;  %s659_s13 = smov %s499_s15 }
  0x29   : > { %s660_s14 = smov %s663_s17  ;;  %s661_s15 = smov %s667_s18 }
  0x2a   :  { %12 = sbr.rel (!%p10_p7) target bundleno = 3 (0x3), region = 62 }

// kernel: conv_block_forward.3
= control target key start
LH: loop header
LB: loop body
LE: loop exit
PB: predicated region body
PF: predicated region fallthrough
CT: control target
= control target key end

     0   :  { %s2356_s15 = smov 0   ;;  %s2358_s16 = smov 0   ;;  %s3320_s0 = inlined_call_operand.vmem [shape: f32[2,18,18,128], index: 0, kind: input, shape index: {}]   ;;  %s3321_s1 = inlined_call_operand.vmem [shape: f32[1152,128], index: 1, kind: input, shape index: {}]   ;;  %s3322_s2 = inlined_call_operand.vmem [shape: f32[1,128], index: 2, kind: input, shape index: {}]   ;;  %s3323_s3 = inlined_call_operand.vmem [shape: f32[2,16,16,128], index: 3, kind: output, shape index: {0}]   ;;  %s3324_s4 = inlined_call_operand.vmem [shape: f32[2,2,2,128], index: 4, kind: output, shape index: {1}]  }
   0x1   :  { %s2360_s17 = smov 0   ;;  %s2362_s18 = smov 0  }
   0x2   :  { %s2364_s19 = smov 0  }
   0x3 LB: > { %s24_s20 = sadd.s32 1, %s2321_s17  ;;  %s27_s21 = sadd.s32 1, %s2325_s18  ;;  %s2329_s19 = sphi %s2364_s19, %s15_s19   ;;  %s2325_s18 = sphi %s2362_s18, %s3328_s18   ;;  %s2321_s17 = sphi %s2360_s17, %s3327_s17   ;;  %s2317_s16 = sphi %s2358_s16, %s3326_s16   ;;  %s2313_s15 = sphi %s2356_s15, %s3325_s15  }
   0x4   : > { %p25_p0 = scmp.ge.s32.totalorder %s24_s20, 2  ;;  %p1642_p1 = scmp.ge.s32.totalorder %s2329_s19, 1 }
   0x5   : > { %p147_p2 = scmp.lt.s32.totalorder %s2329_s19, 5 }
   0x6   : > { %s3330_s20 = smov (%p25_p0, %s24_s20), 0  ;;  %s3332_s21 = smov (!%p25_p0, %s27_s21), %s2325_s18 }
   0x7   : > { %p148_p3 = pnand %p1642_p1, %p147_p2  ;;  %p29_p4 = scmp.ge.s32.totalorder %s3332_s21, 2 }
   0x8   : > { %s1643_s22 = sshll.u32 (!%p148_p3), %s2313_s15, 3  ;;  %p180_p5 = scmp.lt.s32.totalorder (!%p148_p3), %s2317_s16, 1 }
   0x9   : > { %s3334_s21 = smov (%p29_p4, %s3332_s21), 0  ;;  %151 = sbr.rel (%p148_p3) target bundleno = 462 (0x1ce), region = 28 }
   0xa   : > { %p182_p6 = scmp.lt.s32.totalorder (!%p148_p3), %s1643_s22, 15  ;;  %p192_p7 = scmp.lt.s32.totalorder (!%p148_p3), %s2313_s15, 1 }
   0xb   : > { %s1650_s26 = smul.u32 (!%p148_p3), 192, %s2313_s15 }
   0xc   : > { %s200_s28 = smul.u32 (!%p148_p3), 432, %s2317_s16 }
   0xe   : > { %s201_s8 = sadd.s32 (!%p148_p3), %s1650_s26, %s200_s28 }
   0xf   : > { %s2405_s11 = scalar_lea.vmem (!%p148_p3), %s3320_s0, %s201_s8 }
  0x10   : > { %s181_s23 = scalar_select %p180_p5, %s2317_s16, 1  ;;  %v258_v0 = vld [vmem:[%s2405_s11] sm:$0xff]  ;;  %v260_v1 = vld [vmem:[%s2405_s11 + $0x8] sm:$0xff]  ;;  %v262_v2 = vld [vmem:[%s2405_s11 + $0x18] sm:$0xff] }
  0x11   : > { %s3336_s22 = smov (!%p182_p6, %s1643_s22), 15  ;;  %s3338_s15 = smov (!%p192_p7, %s2313_s15), 1  ;;  %259 = vst [vmem:[#allocation2] sm:$0xff] %v258_v0  ;;  %261 = vst [vmem:[#allocation2 + $0x8] sm:$0xff] %v260_v1  ;;  %v264_v3 = vld [vmem:[%s2405_s11 + $0x20] sm:$0xff]  ;;  %v266_v4 = vld [vmem:[%s2405_s11 + $0x30] sm:$0xff] }
  0x12   : > { %s1645_s24 = sshll.u32 %s181_s23, 5  ;;  %s1644_s25 = sshll.u32 %s3336_s22, 1  ;;  %263 = vst [vmem:[#allocation2 + $0x18] sm:$0xff] %v262_v2  ;;  %v268_v5 = vld [vmem:[%s2405_s11 + $0x38] sm:$0xff]  ;;  %265 = vst [vmem:[#allocation2 + $0x20] sm:$0xff] %v264_v3  ;;  %v270_v6 = vld [vmem:[%s2405_s11 + $0x48] sm:$0xff] }
  0x13   : > { %s186_s27 = sadd.s32 %s1645_s24, %s1644_s25  ;;  %s1647_s30 = sshll.u32 %s181_s23, 1  ;;  %267 = vst [vmem:[#allocation2 + $0x30] sm:$0xff] %v266_v4  ;;  %269 = vst [vmem:[#allocation2 + $0x38] sm:$0xff] %v268_v5  ;;  %v272_v7 = vld [vmem:[%s2405_s11 + $0x50] sm:$0xff]  ;;  %v274_v8 = vld [vmem:[%s2405_s11 + $0x60] sm:$0xff] }
  0x14   : > { %s1646_s29 = sshll.u32 %s186_s27, 3  ;;  %s195_s12 = sadd.s32 %s1647_s30, %s3338_s15  ;;  %271 = vst [vmem:[#allocation2 + $0x48] sm:$0xff] %v270_v6  ;;  %273 = vst [vmem:[#allocation2 + $0x50] sm:$0xff] %v272_v7  ;;  %v276_v9 = vld [vmem:[%s2405_s11 + $0x68] sm:$0xff]  ;;  %v278_v10 = vld [vmem:[%s2405_s11 + $0x78] sm:$0xff] }
  0x15   : > { %s2399_s7 = scalar_lea.vmem %s3323_s3, %s1646_s29  ;;  %s1648_s13 = sshll.u32 %s195_s12, 1  ;;  %275 = vst [vmem:[#allocation2 + $0x60] sm:$0xff] %v274_v8  ;;  %v280_v11 = vld [vmem:[%s2405_s11 + $0x80] sm:$0xff]  ;;  %277 = vst [vmem:[#allocation2 + $0x68] sm:$0xff] %v276_v9  ;;  %v282_v12 = vld [vmem:[%s2405_s11 + $0x90] sm:$0xff] }
  0x16   : > { %s2416_s22 = scalar_lea.vmem %s3324_s4, %s1648_s13  ;;  %279 = vst [vmem:[#allocation2 + $0x78] sm:$0xff] %v278_v10  ;;  %281 = vst [vmem:[#allocation2 + $0x80] sm:$0xff] %v280_v11  ;;  %v284_v13 = vld [vmem:[%s2405_s11 + $0x98] sm:$0xff]  ;;  %v286_v14 = vld [vmem:[%s2405_s11 + $0xa8] sm:$0xff] }
  0x17   : > { %283 = vst [vmem:[#allocation2 + $0x90] sm:$0xff] %v282_v12  ;;  %285 = vst [vmem:[#allocation2 + $0x98] sm:$0xff] %v284_v13  ;;  %v288_v15 = vld [vmem:[%s2405_s11 + $0xb0] sm:$0xff]  ;;  %v290_v16 = vld [vmem:[%s2405_s11 + $0xc0] sm:$0xff] }
  0x18   : > { %287 = vst [vmem:[#allocation2 + $0xa8] sm:$0xff] %v286_v14  ;;  %v292_v17 = vld [vmem:[%s2405_s11 + $0xc8] sm:$0xff]  ;;  %289 = vst [vmem:[#allocation2 + $0xb0] sm:$0xff] %v288_v15  ;;  %v294_v18 = vld [vmem:[%s2405_s11 + $0xd8] sm:$0xff] }
  0x19   : > { %291 = vst [vmem:[#allocation2 + $0xc0] sm:$0xff] %v290_v16  ;;  %293 = vst [vmem:[#allocation2 + $0xc8] sm:$0xff] %v292_v17  ;;  %v296_v19 = vld [vmem:[%s2405_s11 + $0xe0] sm:$0xff]  ;;  %v1651_v20 = vld [vmem:[%s2405_s11 + $0x10] sm:$0x3] }
  0x1a   : > { %295 = vst [vmem:[#allocation2 + $0xd8] sm:$0xff] %v294_v18  ;;  %297 = vst [vmem:[#allocation2 + $0xe0] sm:$0xff] %v296_v19  ;;  %v1652_v21 = vld [vmem:[%s2405_s11 + $0x28] sm:$0x3]  ;;  %v1653_v22 = vld [vmem:[%s2405_s11 + $0x40] sm:$0x3] }
  0x1b   : > { %308 = vst [vmem:[#allocation2 + $0x10] sm:$0x3] %v1651_v20  ;;  %v1654_v23 = vld [vmem:[%s2405_s11 + $0x58] sm:$0x3]  ;;  %310 = vst [vmem:[#allocation2 + $0x28] sm:$0x3] %v1652_v21 }
  0x1c   : > { %312 = vst [vmem:[#allocation2 + $0x40] sm:$0x3] %v1653_v22  ;;  %314 = vst [vmem:[#allocation2 + $0x58] sm:$0x3] %v1654_v23  ;;  %v1655_v24 = vld [vmem:[%s2405_s11 + $0x70] sm:$0x3] }
  0x1d   : > { %v1656_v25 = vld [vmem:[%s2405_s11 + $0x88] sm:$0x3]  ;;  %v1657_v26 = vld [vmem:[%s2405_s11 + $0xa0] sm:$0x3]  ;;  %316 = vst [vmem:[#allocation2 + $0x70] sm:$0x3] %v1655_v24 }
  0x1e   : > { %318 = vst [vmem:[#allocation2 + $0x88] sm:$0x3] %v1656_v25  ;;  %320 = vst [vmem:[#allocation2 + $0xa0] sm:$0x3] %v1657_v26  ;;  %v1658_v27 = vld [vmem:[%s2405_s11 + $0xb8] sm:$0x3] }
  0x1f   : > { %v1659_v28 = vld [vmem:[%s2405_s11 + $0xd0] sm:$0x3]  ;;  %v1660_v29 = vld [vmem:[%s2405_s11 + $0xe8] sm:$0x3]  ;;  %322 = vst [vmem:[#allocation2 + $0xb8] sm:$0x3] %v1658_v27 }
  0x20   : > { %324 = vst [vmem:[#allocation2 + $0xd0] sm:$0x3] %v1659_v28  ;;  %326 = vst [vmem:[#allocation2 + $0xe8] sm:$0x3] %v1660_v29 }
  0x21   : > { %330 = vsyncadd [#allocation3], 2880 }
  0x22   : > { %2309 = dma.done.wait [#allocation3], 2880 }
  0x23   : > { %2310 = vsyncadd [#allocation3], 4294964416  ;;  %v553_v30 = vld [vmem:[%s3321_s1 + $0x80] sm:$0xff]  ;;  %v554_v31 = vld [vmem:[%s3321_s1 + $0x88] sm:$0xff]  ;;  %vm389_vm0 = vcmask 1046528   ;;  %vm446_vm1 = vcmask 1045504  }
  0x24   : > { %v585_v32 = vld [vmem:[%s3321_s1 + $0x180] sm:$0xff]  ;;  %v2073_v33 = vpack.c.bf16 %v554_v31, %v553_v30  ;;  %v586_v34 = vld [vmem:[%s3321_s1 + $0x188] sm:$0xff]  ;;  %v555_v41 = vld [vmem:[%s3321_s1 + $0x90] sm:$0xff]  ;;  %vm1487_vm2 = vcmask 1040384  }
  0x25   : > { %v537_v35 = vld [vmem:[%s3321_s1] sm:$0xff]  ;;  %v538_v36 = vld [vmem:[%s3321_s1 + $0x8] sm:$0xff]  ;;  %v2105_v37 = vpack.c.bf16 %v586_v34, %v585_v32  ;;  %v556_v43 = vld [vmem:[%s3321_s1 + $0x98] sm:$0xff] }
  0x26   : > { %v2075_v38 = vpack.c.bf16 %v538_v36, %v537_v35  ;;  %v569_v39 = vld [vmem:[%s3321_s1 + $0x100] sm:$0xff]  ;;  %v570_v40 = vld [vmem:[%s3321_s1 + $0x108] sm:$0xff]  ;;  %2074 = vmatprep.subr.bf16.mxu0 %v2073_v33  ;;  %v587_v44 = vld [vmem:[%s3321_s1 + $0x190] sm:$0xff]  ;;  %v2077_v46 = vpack.c.bf16 %v556_v43, %v555_v41 }
  0x27   : > { %v2107_v42 = vpack.c.bf16 %v570_v40, %v569_v39  ;;  %v588_v45 = vld [vmem:[%s3321_s1 + $0x198] sm:$0xff]  ;;  %2106 = vmatprep.subr.bf16.mxu1 %v2105_v37  ;;  %v539_v48 = vld [vmem:[%s3321_s1 + $0x10] sm:$0xff]  ;;  %v557_v53 = vld [vmem:[%s3321_s1 + $0xa0] sm:$0xff] }
  0x28   : > { %2076 = vmatpush3.bf16.msra.mxu0 %v2075_v38  ;;  %v2109_v47 = vpack.c.bf16 %v588_v45, %v587_v44  ;;  %v540_v49 = vld [vmem:[%s3321_s1 + $0x18] sm:$0xff]  ;;  %v571_v50 = vld [vmem:[%s3321_s1 + $0x110] sm:$0xff]  ;;  %v558_v54 = vld [vmem:[%s3321_s1 + $0xa8] sm:$0xff] }
  0x29   : > { %2108 = vmatpush3.bf16.msra.mxu1 %v2107_v42  ;;  %v2079_v51 = vpack.c.bf16 %v540_v49, %v539_v48  ;;  %v572_v52 = vld [vmem:[%s3321_s1 + $0x118] sm:$0xff]  ;;  %2078 = vmatprep.subr.bf16.mxu0 %v2077_v46  ;;  %v2081_v56 = vpack.c.bf16 %v558_v54, %v557_v53  ;;  %v589_v57 = vld [vmem:[%s3321_s1 + $0x1a0] sm:$0xff]  ;;  %v590_v58 = vld [vmem:[%s3321_s1 + $0x1a8] sm:$0xff] }
  0x2a   : > { %2110 = vmatprep.subr.bf16.mxu1 %v2109_v47  ;;  %v2111_v55 = vpack.c.bf16 %v572_v52, %v571_v50  ;;  %v541_v59 = vld [vmem:[%s3321_s1 + $0x20] sm:$0xff]  ;;  %v2113_v60 = vpack.c.bf16 %v590_v58, %v589_v57  ;;  %v542_v61 = vld [vmem:[%s3321_s1 + $0x28] sm:$0xff]  ;;  %v559_v1 = vld [vmem:[%s3321_s1 + $0xb0] sm:$0xff] }
  0x2b   : > { %v573_v62 = vld [vmem:[%s3321_s1 + $0x120] sm:$0xff]  ;;  %v574_v63 = vld [vmem:[%s3321_s1 + $0x128] sm:$0xff]  ;;  %v2083_v0 = vpack.c.bf16 %v542_v61, %v541_v59  ;;  %v560_v2 = vld [vmem:[%s3321_s1 + $0xb8] sm:$0xff] }
  0x2c   : > { %2080 = vmatpush3.bf16.msra.mxu0 %v2079_v51  ;;  %v591_v3 = vld [vmem:[%s3321_s1 + $0x1b0] sm:$0xff]  ;;  %v2115_v4 = vpack.c.bf16 %v574_v63, %v573_v62  ;;  %v2085_v5 = vpack.c.bf16 %v560_v2, %v559_v1  ;;  %v592_v6 = vld [vmem:[%s3321_s1 + $0x1b8] sm:$0xff]  ;;  %v561_v12 = vld [vmem:[%s3321_s1 + $0xc0] sm:$0xff] }
  0x2d   : > { %2112 = vmatpush3.bf16.msra.mxu1 %v2111_v55  ;;  %2082 = vmatprep.subr.bf16.mxu0 %v2081_v56  ;;  %v543_v7 = vld [vmem:[%s3321_s1 + $0x30] sm:$0xff]  ;;  %v544_v8 = vld [vmem:[%s3321_s1 + $0x38] sm:$0xff]  ;;  %v2117_v9 = vpack.c.bf16 %v592_v6, %v591_v3  ;;  %v562_v13 = vld [vmem:[%s3321_s1 + $0xc8] sm:$0xff] }
  0x2e   : > { %2114 = vmatprep.subr.bf16.mxu1 %v2113_v60  ;;  %v575_v10 = vld [vmem:[%s3321_s1 + $0x130] sm:$0xff]  ;;  %v576_v11 = vld [vmem:[%s3321_s1 + $0x138] sm:$0xff]  ;;  %v593_v14 = vld [vmem:[%s3321_s1 + $0x1c0] sm:$0xff]  ;;  %v2087_v16 = vpack.c.bf16 %v544_v8, %v543_v7  ;;  %v2089_v18 = vpack.c.bf16 %v562_v13, %v561_v12 }
  0x2f   : > { %v594_v15 = vld [vmem:[%s3321_s1 + $0x1c8] sm:$0xff]  ;;  %v2119_v17 = vpack.c.bf16 %v576_v11, %v575_v10  ;;  %v545_v19 = vld [vmem:[%s3321_s1 + $0x40] sm:$0xff]  ;;  %v563_v24 = vld [vmem:[%s3321_s1 + $0xd0] sm:$0xff] }
  0x30   : > { %2084 = vmatpush3.bf16.msra.mxu0 %v2083_v0  ;;  %v546_v20 = vld [vmem:[%s3321_s1 + $0x48] sm:$0xff]  ;;  %v577_v21 = vld [vmem:[%s3321_s1 + $0x140] sm:$0xff]  ;;  %v2121_v22 = vpack.c.bf16 %v594_v15, %v593_v14  ;;  %v564_v25 = vld [vmem:[%s3321_s1 + $0xd8] sm:$0xff] }
  0x31   : > { %2116 = vmatpush3.bf16.msra.mxu1 %v2115_v4  ;;  %2086 = vmatprep.subr.bf16.mxu0 %v2085_v5  ;;  %v578_v23 = vld [vmem:[%s3321_s1 + $0x148] sm:$0xff]  ;;  %v595_v26 = vld [vmem:[%s3321_s1 + $0x1d0] sm:$0xff]  ;;  %v596_v27 = vld [vmem:[%s3321_s1 + $0x1d8] sm:$0xff]  ;;  %v2091_v28 = vpack.c.bf16 %v546_v20, %v545_v19  ;;  %v2093_v30 = vpack.c.bf16 %v564_v25, %v563_v24 }
  0x32   : > { %2118 = vmatprep.subr.bf16.mxu1 %v2117_v9  ;;  %v2123_v29 = vpack.c.bf16 %v578_v23, %v577_v21  ;;  %v547_v31 = vld [vmem:[%s3321_s1 + $0x50] sm:$0xff]  ;;  %v548_v32 = vld [vmem:[%s3321_s1 + $0x58] sm:$0xff]  ;;  %v2125_v34 = vpack.c.bf16 %v596_v27, %v595_v26  ;;  %v565_v36 = vld [vmem:[%s3321_s1 + $0xe0] sm:$0xff] }
  0x33   : > { %v579_v33 = vld [vmem:[%s3321_s1 + $0x150] sm:$0xff]  ;;  %v580_v35 = vld [vmem:[%s3321_s1 + $0x158] sm:$0xff]  ;;  %v566_v37 = vld [vmem:[%s3321_s1 + $0xe8] sm:$0xff]  ;;  %v2095_v40 = vpack.c.bf16 %v548_v32, %v547_v31 }
  0x34   : > { %2088 = vmatpush3.bf16.msra.mxu0 %v2087_v16  ;;  %v597_v38 = vld [vmem:[%s3321_s1 + $0x1e0] sm:$0xff]  ;;  %v598_v39 = vld [vmem:[%s3321_s1 + $0x1e8] sm:$0xff]  ;;  %v2127_v44 = vpack.c.bf16 %v580_v35, %v579_v33  ;;  %v2097_v45 = vpack.c.bf16 %v566_v37, %v565_v36  ;;  %v567_v50 = vld [vmem:[%s3321_s1 + $0xf0] sm:$0xff] }
  0x35   : > { %2120 = vmatpush3.bf16.msra.mxu1 %v2119_v17  ;;  %2090 = vmatprep.subr.bf16.mxu0 %v2089_v18  ;;  %v549_v41 = vld [vmem:[%s3321_s1 + $0x60] sm:$0xff]  ;;  %v550_v42 = vld [vmem:[%s3321_s1 + $0x68] sm:$0xff]  ;;  %v2129_v49 = vpack.c.bf16 %v598_v39, %v597_v38  ;;  %v568_v51 = vld [vmem:[%s3321_s1 + $0xf8] sm:$0xff] }
  0x36   : > { %2122 = vmatprep.subr.bf16.mxu1 %v2121_v22  ;;  %v581_v43 = vld [vmem:[%s3321_s1 + $0x160] sm:$0xff]  ;;  %v582_v46 = vld [vmem:[%s3321_s1 + $0x168] sm:$0xff]  ;;  %v2622_v54 = vld [vmem:[#allocation2 + $0x18] sm:$0xff]  ;;  %v2099_v57 = vpack.c.bf16 %v550_v42, %v549_v41  ;;  %v2101_v60 = vpack.c.bf16 %v568_v51, %v567_v50 }
  0x37   : > { %v2610_v47 = vld [vmem:[#allocation2] sm:$0xff]  ;;  %v2612_v48 = vld [vmem:[#allocation2 + $0x8] sm:$0xff]  ;;  %v599_v55 = vld [vmem:[%s3321_s1 + $0x1f0] sm:$0xff]  ;;  %897 = vmatprep.mubr.f32.mxu1 %v2622_v54  ;;  %v2131_v59 = vpack.c.bf16 %v582_v46, %v581_v43  ;;  %v395_v26 = vrot.slane %v2622_v54, 1  ;;  %v452_v39 = vrot.slane %v2622_v54, 2 }
  0x38   : > { %2092 = vmatpush3.bf16.msra.mxu0 %v2091_v28  ;;  %v390_v52 = vrot.slane %v2610_v47, 1  ;;  %v391_v53 = vrot.slane %v2612_v48, 1  ;;  %v600_v56 = vld [vmem:[%s3321_s1 + $0x1f8] sm:$0xff]  ;;  %v551_v61 = vld [vmem:[%s3321_s1 + $0x70] sm:$0xff]  ;;  %v617_v2 = vld [vmem:[%s3321_s1 + $0x280] sm:$0xff]  ;;  %v447_v9 = vrot.slane %v2610_v47, 2 }
  0x39   : > { %2124 = vmatpush3.bf16.msra.mxu1 %v2123_v29  ;;  %2094 = vmatprep.subr.bf16.mxu0 %v2093_v30  ;;  %v552_v62 = vld [vmem:[%s3321_s1 + $0x78] sm:$0xff]  ;;  %v583_v63 = vld [vmem:[%s3321_s1 + $0x170] sm:$0xff]  ;;  %v2133_v0 = vpack.c.bf16 %v600_v56, %v599_v55  ;;  %v618_v3 = vld [vmem:[%s3321_s1 + $0x288] sm:$0xff]  ;;  %v448_v10 = vrot.slane %v2612_v48, 2 }
  0x3a   : > { %2126 = vmatprep.subr.bf16.mxu1 %v2125_v34  ;;  %v392_v58 = vsel %vm389_vm0, %v390_v52, %v391_v53  ;;  %v584_v1 = vld [vmem:[%s3321_s1 + $0x178] sm:$0xff]  ;;  %v337_v4 = vld [vmem:[#allocation2 + $0x10] sm:$0x3]  ;;  %v649_v5 = vld [vmem:[%s3321_s1 + $0x380] sm:$0xff]  ;;  %v2103_v6 = vpack.c.bf16 %v552_v62, %v551_v61  ;;  %v2137_v11 = vpack.c.bf16 %v618_v3, %v617_v2 }
  0x3b   : > { %752 = vmatprep.mubr.f32.mxu0 %v392_v58  ;;  %v650_v7 = vld [vmem:[%s3321_s1 + $0x388] sm:$0xff]  ;;  %v2135_v8 = vpack.c.bf16 %v584_v1, %v583_v63  ;;  %v601_v12 = vld [vmem:[%s3321_s1 + $0x200] sm:$0xff]  ;;  %v393_v14 = vrot.slane %v337_v4, 1  ;;  %v619_v16 = vld [vmem:[%s3321_s1 + $0x290] sm:$0xff]  ;;  %v449_v24 = vsel %vm446_vm1, %v447_v9, %v448_v10  ;;  %v450_v25 = vrot.slane %v337_v4, 2 }
  0x3c   : > { %2096 = vmatpush3.bf16.msra.mxu0 %v2095_v40  ;;  %v602_v13 = vld [vmem:[%s3321_s1 + $0x208] sm:$0xff]  ;;  %v2664_v15 = vld [vmem:[#allocation2 + $0x20] sm:$0xff]  ;;  %v2169_v17 = vpack.c.bf16 %v650_v7, %v649_v5  ;;  %v620_v18 = vld [vmem:[%s3321_s1 + $0x298] sm:$0xff] }
  0x3d   : > { %2128 = vmatpush3.bf16.msra.mxu1 %v2127_v44  ;;  %2098 = vmatprep.subr.bf16.mxu0 %v2097_v45  ;;  %v633_v19 = vld [vmem:[%s3321_s1 + $0x300] sm:$0xff]  ;;  %v634_v20 = vld [vmem:[%s3321_s1 + $0x308] sm:$0xff]  ;;  %v2139_v21 = vpack.c.bf16 %v602_v13, %v601_v12  ;;  %v651_v22 = vld [vmem:[%s3321_s1 + $0x390] sm:$0xff]  ;;  %v396_v27 = vrot.slane %v2664_v15, 1  ;;  %v394_v29 = vsel %vm389_vm0, %v391_v53, %v393_v14  ;;  %v2141_v30 = vpack.c.bf16 %v620_v18, %v619_v16 }
  0x3e   : > { %2130 = vmatprep.subr.bf16.mxu1 %v2129_v49  ;;  %v652_v23 = vld [vmem:[%s3321_s1 + $0x398] sm:$0xff]  ;;  %v603_v28 = vld [vmem:[%s3321_s1 + $0x210] sm:$0xff]  ;;  %v2694_v32 = vld [vmem:[#allocation2 + $0x28] sm:$0x3]  ;;  %v2171_v34 = vpack.c.bf16 %v634_v20, %v633_v19  ;;  %v453_v40 = vrot.slane %v2664_v15, 2  ;;  %v451_v43 = vsel %vm446_vm1, %v448_v10, %v450_v25 }
  0x3f   : > { %v604_v31 = vld [vmem:[%s3321_s1 + $0x218] sm:$0xff]  ;;  %v621_v33 = vld [vmem:[%s3321_s1 + $0x2a0] sm:$0xff]  ;;  %v622_v35 = vld [vmem:[%s3321_s1 + $0x2a8] sm:$0xff]  ;;  %v2173_v36 = vpack.c.bf16 %v652_v23, %v651_v22  ;;  %v2720_v44 = vsel %vm389_vm0, %v395_v26, %v396_v27 }
  0x40   : > { %2100 = vmatpush3.bf16.msra.mxu0 %v2099_v57  ;;  %v635_v37 = vld [vmem:[%s3321_s1 + $0x310] sm:$0xff]  ;;  %v636_v38 = vld [vmem:[%s3321_s1 + $0x318] sm:$0xff]  ;;  %v653_v41 = vld [vmem:[%s3321_s1 + $0x3a0] sm:$0xff]  ;;  %v2143_v46 = vpack.c.bf16 %v604_v31, %v603_v28  ;;  %v2145_v50 = vpack.c.bf16 %v622_v35, %v621_v33 }
  0x41   : > { %2132 = vmatpush3.bf16.msra.mxu1 %v2131_v59  ;;  %2102 = vmatprep.subr.bf16.mxu0 %v2101_v60  ;;  %v654_v42 = vld [vmem:[%s3321_s1 + $0x3a8] sm:$0xff]  ;;  %v2722_v45 = vld [vmem:[#allocation2 + $0x30] sm:$0xff]  ;;  %v2725_v49 = vld [vmem:[#allocation2 + $0x38] sm:$0xff]  ;;  %v2175_v55 = vpack.c.bf16 %v636_v38, %v635_v37  ;;  %v2748_v60 = vsel %vm446_vm1, %v452_v39, %v453_v40 }
  0x42   : > { %2134 = vmatprep.subr.bf16.mxu1 %v2133_v0  ;;  %v605_v51 = vld [vmem:[%s3321_s1 + $0x220] sm:$0xff]  ;;  %v606_v52 = vld [vmem:[%s3321_s1 + $0x228] sm:$0xff]  ;;  %v623_v53 = vld [vmem:[%s3321_s1 + $0x2b0] sm:$0xff]  ;;  %v2177_v57 = vpack.c.bf16 %v654_v42, %v653_v41  ;;  %v455_v0 = vrot.slane %v2694_v32, 2  ;;  %v401_v1 = vrot.slane %v2725_v49, 1  ;;  %v458_v13 = vrot.slane %v2725_v49, 2 }
  0x43   : > { %v624_v56 = vld [vmem:[%s3321_s1 + $0x2b8] sm:$0xff]  ;;  %v637_v58 = vld [vmem:[%s3321_s1 + $0x320] sm:$0xff]  ;;  %v638_v59 = vld [vmem:[%s3321_s1 + $0x328] sm:$0xff]  ;;  %v2147_v2 = vpack.c.bf16 %v606_v52, %v605_v51 }
  0x44   : > { %2104 = vmatpush3.bf16.msra.mxu0 %v2103_v6  ;;  %v655_v61 = vld [vmem:[%s3321_s1 + $0x3b0] sm:$0xff]  ;;  %v656_v62 = vld [vmem:[%s3321_s1 + $0x3b8] sm:$0xff]  ;;  %v2763_v3 = vld [vmem:[#allocation2 + $0x40] sm:$0x3]  ;;  %v2149_v4 = vpack.c.bf16 %v624_v56, %v623_v53 }
  0x45   : > { %2136 = vmatpush3.bf16.msra.mxu1 %v2135_v8  ;;  %2138 = vmatprep.subr.bf16.mxu0 %v2137_v11  ;;  %v607_v5 = vld [vmem:[%s3321_s1 + $0x230] sm:$0xff]  ;;  %v608_v6 = vld [vmem:[%s3321_s1 + $0x238] sm:$0xff]  ;;  %v625_v7 = vld [vmem:[%s3321_s1 + $0x2c0] sm:$0xff]  ;;  %v2179_v8 = vpack.c.bf16 %v638_v59, %v637_v58  ;;  %v2181_v10 = vpack.c.bf16 %v656_v62, %v655_v61  ;;  %v403_v20 = vrot.slane %v2763_v3, 1 }
  0x46   : > { %2170 = vmatprep.subr.bf16.mxu1 %v2169_v17  ;;  %v626_v9 = vld [vmem:[%s3321_s1 + $0x2c8] sm:$0xff]  ;;  %v639_v11 = vld [vmem:[%s3321_s1 + $0x330] sm:$0xff]  ;;  %v640_v12 = vld [vmem:[%s3321_s1 + $0x338] sm:$0xff]  ;;  %v2796_v17 = vsel %vm446_vm1, %v453_v40, %v455_v0  ;;  %v2151_v22 = vpack.c.bf16 %v608_v6, %v607_v5 }
  0x47   : > { %753 = vmatmul.mubr.f32.vlgmr.msra.gmra.mrb[0].mxu0 %v2610_v47  ;;  %v398_v47 = vrot.slane %v2694_v32, 1  ;;  %v657_v14 = vld [vmem:[%s3321_s1 + $0x3c0] sm:$0xff]  ;;  %v658_v16 = vld [vmem:[%s3321_s1 + $0x3c8] sm:$0xff]  ;;  %v2153_v23 = vpack.c.bf16 %v626_v9, %v625_v7  ;;  %v627_v26 = vld [vmem:[%s3321_s1 + $0x2d0] sm:$0xff]  ;;  %v2839_v35 = vsel %vm389_vm0, %v401_v1, %v403_v20 }
  0x48   : > { %898 = vmatmul.mubr.f32.vlgmr.msra.gmra.mrb[0].mxu1 %v449_v24  ;;  %2140 = vmatpush3.bf16.msra.mxu0 %v2139_v21  ;;  %v2801_v19 = vld [vmem:[#allocation2 + $0x48] sm:$0xff]  ;;  %v2804_v21 = vld [vmem:[#allocation2 + $0x50] sm:$0xff]  ;;  %v609_v24 = vld [vmem:[%s3321_s1 + $0x240] sm:$0xff] }
  0x49   : > { %757 = vmatprep.mubr.f32.mxu0 %v394_v29  ;;  %902 = vmatprep.mubr.f32.mxu1 %v2664_v15  ;;  %v2759_v63 = vsel %vm389_vm0, %v396_v27, %v398_v47  ;;  %v610_v25 = vld [vmem:[%s3321_s1 + $0x248] sm:$0xff]  ;;  %v2183_v27 = vpack.c.bf16 %v640_v12, %v639_v11  ;;  %v628_v28 = vld [vmem:[%s3321_s1 + $0x2d8] sm:$0xff]  ;;  %v2185_v29 = vpack.c.bf16 %v658_v16, %v657_v14  ;;  %v405_v32 = vrot.slane %v2801_v19, 1  ;;  %v659_v33 = vld [vmem:[%s3321_s1 + $0x3d0] sm:$0xff] }
  0x4a   : > { %2142 = vmatprep.subr.bf16.mxu0 %v2141_v30  ;;  %2172 = vmatpush3.bf16.msra.mxu1 %v2171_v34  ;;  %v641_v30 = vld [vmem:[%s3321_s1 + $0x340] sm:$0xff]  ;;  %v642_v31 = vld [vmem:[%s3321_s1 + $0x348] sm:$0xff]  ;;  %v660_v34 = vld [vmem:[%s3321_s1 + $0x3d8] sm:$0xff]  ;;  %v406_v37 = vrot.slane %v2804_v21, 1  ;;  %v2155_v39 = vpack.c.bf16 %v610_v25, %v609_v24  ;;  %v2157_v40 = vpack.c.bf16 %v628_v28, %v627_v26  ;;  %v462_v53 = vrot.slane %v2801_v19, 2 }
  0x4b   : > { %758 = vmatmul.mubr.f32.gmra.mrb[2].mxu0 %v2612_v48  ;;  %2174 = vmatprep.subr.bf16.mxu1 %v2173_v36  ;;  %v400_v48 = vrot.slane %v2722_v45, 1  ;;  %v460_v36 = vrot.slane %v2763_v3, 2  ;;  %v2843_v38 = vld [vmem:[#allocation2 + $0x58] sm:$0x3]  ;;  %v611_v41 = vld [vmem:[%s3321_s1 + $0x250] sm:$0xff]  ;;  %v630_v47 = vld [vmem:[%s3321_s1 + $0x2e8] sm:$0xff] }
  0x4c   : > { %903 = vmatmul.mubr.f32.gmra.mrb[2].mxu1 %v451_v43  ;;  %762 = vmatprep.mubr.f32.mxu0 %v2720_v44  ;;  %v612_v42 = vld [vmem:[%s3321_s1 + $0x258] sm:$0xff]  ;;  %v629_v43 = vld [vmem:[%s3321_s1 + $0x2e0] sm:$0xff]  ;;  %v643_v51 = vld [vmem:[%s3321_s1 + $0x350] sm:$0xff]  ;;  %v2879_v59 = vsel %vm389_vm0, %v405_v32, %v406_v37  ;;  %v408_v61 = vrot.slane %v2843_v38, 1  ;;  %v465_v14 = vrot.slane %v2843_v38, 2 }
  0x4d   : > { %907 = vmatprep.mubr.f32.mxu1 %v2722_v45  ;;  %2144 = vmatpush3.bf16.msra.mxu0 %v2143_v46  ;;  %v2799_v18 = vsel %vm389_vm0, %v400_v48, %v401_v1  ;;  %v2187_v46 = vpack.c.bf16 %v642_v31, %v641_v30  ;;  %v644_v52 = vld [vmem:[%s3321_s1 + $0x358] sm:$0xff]  ;;  %v661_v56 = vld [vmem:[%s3321_s1 + $0x3e0] sm:$0xff]  ;;  %v2876_v58 = vsel %vm446_vm1, %v458_v13, %v460_v36  ;;  %v2884_v62 = vld [vmem:[#allocation2 + $0x68] sm:$0xff] }
  0x4e   : > { %2146 = vmatprep.subr.bf16.mxu0 %v2145_v50  ;;  %2176 = vmatpush3.bf16.msra.mxu1 %v2175_v55  ;;  %v2189_v50 = vpack.c.bf16 %v660_v34, %v659_v33  ;;  %v463_v55 = vrot.slane %v2804_v21, 2  ;;  %v2881_v48 = vld [vmem:[#allocation2 + $0x60] sm:$0xff]  ;;  %v2159_v0 = vpack.c.bf16 %v612_v42, %v611_v41  ;;  %v2161_v1 = vpack.c.bf16 %v630_v47, %v629_v43  ;;  %v614_v3 = vld [vmem:[%s3321_s1 + $0x268] sm:$0xff]  ;;  %v631_v5 = vld [vmem:[%s3321_s1 + $0x2f0] sm:$0xff] }
  0x4f   : > { %763 = vmatmul.mubr.f32.gmra.mrb[4].mxu0 %v2622_v54  ;;  %2178 = vmatprep.subr.bf16.mxu1 %v2177_v57  ;;  %v457_v54 = vrot.slane %v2722_v45, 2  ;;  %v662_v57 = vld [vmem:[%s3321_s1 + $0x3e8] sm:$0xff]  ;;  %v632_v6 = vld [vmem:[%s3321_s1 + $0x2f8] sm:$0xff]  ;;  %v410_v11 = vrot.slane %v2881_v48, 1  ;;  %v663_v12 = vld [vmem:[%s3321_s1 + $0x3f0] sm:$0xff]  ;;  %v411_v16 = vrot.slane %v2884_v62, 1 }
  0x50   : > { %908 = vmatmul.mubr.f32.gmra.mrb[4].mxu1 %v2748_v60  ;;  %767 = vmatprep.mubr.f32.mxu0 %v2759_v63  ;;  %v2193_v7 = vpack.c.bf16 %v662_v57, %v661_v56  ;;  %v646_v9 = vld [vmem:[%s3321_s1 + $0x368] sm:$0xff]  ;;  %v349_v20 = vld [vmem:[#allocation2 + $0x70] sm:$0x3]  ;;  %v616_v25 = vld [vmem:[%s3321_s1 + $0x278] sm:$0xff]  ;;  %v467_v32 = vrot.slane %v2881_v48, 2  ;;  %v468_v33 = vrot.slane %v2884_v62, 2  ;;  %v2948_v34 = vsel %vm446_vm1, %v463_v55, %v465_v14 }
  0x51   : > { %912 = vmatprep.mubr.f32.mxu1 %v2725_v49  ;;  %2148 = vmatpush3.bf16.msra.mxu0 %v2147_v2  ;;  %v613_v2 = vld [vmem:[%s3321_s1 + $0x260] sm:$0xff]  ;;  %v615_v24 = vld [vmem:[%s3321_s1 + $0x270] sm:$0xff]  ;;  %v666_v31 = vld [vmem:[%s3321_s1 + $0x408] sm:$0xff]  ;;  %v2951_v36 = vsel %vm389_vm0, %v410_v11, %v411_v16 }
  0x52   : > { %2150 = vmatprep.subr.bf16.mxu0 %v2149_v4  ;;  %2180 = vmatpush3.bf16.msra.mxu1 %v2179_v8  ;;  %v2191_v4 = vpack.c.bf16 %v644_v52, %v643_v51  ;;  %v645_v8 = vld [vmem:[%s3321_s1 + $0x360] sm:$0xff]  ;;  %v2167_v38 = vpack.c.bf16 %v616_v25, %v615_v24  ;;  %v352_v52 = vld [vmem:[#allocation2 + $0x88] sm:$0x3] }
  0x53   : > { %768 = vmatmul.mubr.f32.gmra.mrb[6].mxu0 %v2664_v15  ;;  %2182 = vmatprep.subr.bf16.mxu1 %v2181_v10  ;;  %v2828_v15 = vsel %vm446_vm1, %v457_v54, %v458_v13  ;;  %v2908_v10 = vsel %vm446_vm1, %v462_v53, %v463_v55  ;;  %v664_v54 = vld [vmem:[%s3321_s1 + $0x3f8] sm:$0xff]  ;;  %v2919_v13 = vsel %vm389_vm0, %v406_v37, %v408_v61  ;;  %v665_v30 = vld [vmem:[%s3321_s1 + $0x400] sm:$0xff]  ;;  %v413_v37 = vrot.slane %v349_v20, 1  ;;  %v3013_v14 = vld [vmem:[#allocation2 + $0xa8] sm:$0xff] }
  0x54   : > { %913 = vmatmul.mubr.f32.gmra.mrb[6].mxu1 %v2796_v17  ;;  %772 = vmatprep.mubr.f32.mxu0 %v2799_v18  ;;  %v2195_v26 = vpack.c.bf16 %v646_v9, %v645_v8  ;;  %v2197_v28 = vpack.c.bf16 %v664_v54, %v663_v12  ;;  %v2957_v42 = vpack.c.bf16 %v666_v31, %v665_v30  ;;  %v418_v61 = vrot.slane %v352_v52, 1 }
  0x55   : > { %917 = vmatprep.mubr.f32.mxu1 %v2801_v19  ;;  %2152 = vmatpush3.bf16.msra.mxu0 %v2151_v22  ;;  %v2163_v22 = vpack.c.bf16 %v614_v3, %v613_v2  ;;  %v2968_v47 = vsel %vm389_vm0, %v411_v16, %v413_v37  ;;  %v3015_v16 = vld [vmem:[#allocation2 + $0xb0] sm:$0xff] }
  0x56   : > { %2154 = vmatprep.subr.bf16.mxu0 %v2153_v23  ;;  %2184 = vmatpush3.bf16.msra.mxu1 %v2183_v27  ;;  %v2165_v23 = vpack.c.bf16 %v632_v6, %v631_v5  ;;  %v647_v27 = vld [vmem:[%s3321_s1 + $0x370] sm:$0xff]  ;;  %v475_v5 = vrot.slane %v352_v52, 2  ;;  %v426_v25 = vrot.slane %v3015_v16, 1  ;;  %v483_v30 = vrot.slane %v3015_v16, 2 }
  0x57   : > { %773 = vmatmul.mubr.f32.gmra.mrb[8].mxu0 %v2722_v45  ;;  %2186 = vmatprep.subr.bf16.mxu1 %v2185_v29  ;;  %v648_v29 = vld [vmem:[%s3321_s1 + $0x378] sm:$0xff] }
  0x58   : > { %918 = vmatmul.mubr.f32.gmra.mrb[8].mxu1 %v2828_v15  ;;  %777 = vmatprep.mubr.f32.mxu0 %v2839_v35  ;;  %v2199_v41 = vpack.c.bf16 %v648_v29, %v647_v27  ;;  %v482_v27 = vrot.slane %v3013_v14, 2 }
  0x59   : > { %922 = vmatprep.mubr.f32.mxu1 %v2804_v21  ;;  %2156 = vmatpush3.bf16.msra.mxu0 %v2155_v39  ;;  %v2953_v39 = vld [vmem:[#allocation2 + $0x78] sm:$0xff] }
  0x5a   : > { %2158 = vmatprep.subr.bf16.mxu0 %v2157_v40  ;;  %2188 = vmatpush3.bf16.msra.mxu1 %v2187_v46  ;;  %v2955_v40 = vld [vmem:[#allocation2 + $0x80] sm:$0xff]  ;;  %v415_v43 = vrot.slane %v2953_v39, 1  ;;  %v2965_v46 = vsel %vm446_vm1, %v467_v32, %v468_v33  ;;  %v472_v53 = vrot.slane %v2953_v39, 2 }
  0x5b   : > { %778 = vmatmul.mubr.f32.gmra.mrb[10].mxu0 %v2725_v49  ;;  %2190 = vmatprep.subr.bf16.mxu1 %v2189_v50  ;;  %v470_v50 = vrot.slane %v349_v20, 2  ;;  %v416_v51 = vrot.slane %v2955_v40, 1  ;;  %v473_v57 = vrot.slane %v2955_v40, 2  ;;  %v425_v20 = vrot.slane %v3013_v14, 1  ;;  %v3041_v32 = vld [vmem:[#allocation2 + $0xc0] sm:$0xff] }
  0x5c   : > { %923 = vmatmul.mubr.f32.gmra.mrb[10].mxu1 %v2876_v58  ;;  %782 = vmatprep.mubr.f32.mxu0 %v2879_v59 }
  0x5d   : > { %927 = vmatprep.mubr.f32.mxu1 %v2881_v48  ;;  %2160 = vmatpush3.bf16.msra.mxu0 %v2159_v0  ;;  %v2979_v55 = vsel %vm446_vm1, %v468_v33, %v470_v50  ;;  %v2982_v56 = vsel %vm389_vm0, %v415_v43, %v416_v51  ;;  %v2985_v0 = vld [vmem:[#allocation2 + $0x90] sm:$0xff]  ;;  %v2995_v3 = vsel %vm446_vm1, %v472_v53, %v473_v57  ;;  %v669_v53 = vld [vmem:[%s3321_s1 + $0x420] sm:$0xff] }
  0x5e   : > { %2162 = vmatprep.subr.bf16.mxu0 %v2161_v1  ;;  %2192 = vmatpush3.bf16.msra.mxu1 %v2191_v4  ;;  %v2987_v1 = vld [vmem:[#allocation2 + $0x98] sm:$0xff]  ;;  %v420_v2 = vrot.slane %v2985_v0, 1  ;;  %v2998_v4 = vsel %vm389_vm0, %v416_v51, %v418_v61  ;;  %v477_v8 = vrot.slane %v2985_v0, 2  ;;  %v3007_v9 = vsel %vm446_vm1, %v473_v57, %v475_v5  ;;  %v667_v50 = vld [vmem:[%s3321_s1 + $0x410] sm:$0xff]  ;;  %v670_v57 = vld [vmem:[%s3321_s1 + $0x428] sm:$0xff] }
  0x5f   : > { %783 = vmatmul.mubr.f32.gmra.mrb[12].mxu0 %v2801_v19  ;;  %2194 = vmatprep.subr.bf16.mxu1 %v2193_v7  ;;  %v421_v6 = vrot.slane %v2987_v1, 1  ;;  %v355_v7 = vld [vmem:[#allocation2 + $0xa0] sm:$0x3]  ;;  %v478_v12 = vrot.slane %v2987_v1, 2  ;;  %v3038_v29 = vsel %vm389_vm0, %v425_v20, %v426_v25  ;;  %v3048_v33 = vsel %vm446_vm1, %v482_v27, %v483_v30  ;;  %v668_v51 = vld [vmem:[%s3321_s1 + $0x418] sm:$0xff] }
  0x60   : > { %928 = vmatmul.mubr.f32.gmra.mrb[12].mxu1 %v2908_v10  ;;  %787 = vmatprep.mubr.f32.mxu0 %v2919_v13  ;;  %v423_v54 = vrot.slane %v355_v7, 1  ;;  %v480_v24 = vrot.slane %v355_v7, 2  ;;  %v2205_v52 = vpack.c.bf16 %v668_v51, %v667_v50  ;;  %v676_v61 = vld [vmem:[%s3321_s1 + $0x458] sm:$0xff] }
  0x61   : > { %932 = vmatprep.mubr.f32.mxu1 %v2884_v62  ;;  %2164 = vmatpush3.bf16.msra.mxu0 %v2163_v22  ;;  %v3010_v11 = vsel %vm389_vm0, %v420_v2, %v421_v6  ;;  %v3023_v22 = vsel %vm446_vm1, %v477_v8, %v478_v12  ;;  %v678_v2 = vld [vmem:[%s3321_s1 + $0x468] sm:$0xff]  ;;  %v680_v5 = vld [vmem:[%s3321_s1 + $0x478] sm:$0xff] }
  0x62   : > { %2166 = vmatprep.subr.bf16.mxu0 %v2165_v23  ;;  %2196 = vmatpush3.bf16.msra.mxu1 %v2195_v26  ;;  %v3026_v23 = vsel %vm389_vm0, %v421_v6, %v423_v54  ;;  %v358_v26 = vld [vmem:[#allocation2 + $0xb8] sm:$0x3]  ;;  %v364_v8 = vld [vmem:[#allocation2 + $0xe8] sm:$0x3] }
  0x63   : > { %788 = vmatmul.mubr.f32.gmra.mrb[14].mxu0 %v2804_v21  ;;  %2198 = vmatprep.subr.bf16.mxu1 %v2197_v28  ;;  %v3035_v28 = vsel %vm446_vm1, %v478_v12, %v480_v24  ;;  %v428_v31 = vrot.slane %v358_v26, 1 }
  0x64   : > { %933 = vmatmul.mubr.f32.gmra.mrb[14].mxu1 %v2948_v34  ;;  %792 = vmatprep.mubr.f32.mxu0 %v2951_v36 }
  0x65   : > { %937 = vmatprep.mubr.f32.mxu1 %v2953_v39  ;;  %2168 = vmatpush3.bf16.msra.mxu0 %v2167_v38  ;;  %v3051_v37 = vsel %vm389_vm0, %v426_v25, %v428_v31  ;;  %v485_v38 = vrot.slane %v358_v26, 2 }
  0x66   : > { %2200 = vmatpush3.bf16.msra.mxu1 %v2199_v41  ;;  %2202 = vmatprep.subr.bf16.mxu0 %v2957_v42  ;;  %v3053_v41 = vld [vmem:[#allocation2 + $0xc8] sm:$0xff] }
  0x67   : > { %793 = vmatmul.mubr.f32.gmra.mrb[16].mxu0 %v2881_v48  ;;  %2233 = vmatprep.subr.bf16.mxu1 %v2957_v42  ;;  %v3060_v43 = vsel %vm446_vm1, %v483_v30, %v485_v38 }
  0x68   : > { %938 = vmatmul.mubr.f32.gmra.mrb[16].mxu1 %v2965_v46  ;;  %797 = vmatprep.mubr.f32.mxu0 %v2968_v47 }
  0x69   : > { %942 = vmatprep.mubr.f32.mxu1 %v2955_v40 }
  0x6b   : > { %798 = vmatmul.mubr.f32.gmra.mrb[18].mxu0 %v2884_v62 }
  0x6c   : > { %943 = vmatmul.mubr.f32.gmra.mrb[18].mxu1 %v2979_v55  ;;  %802 = vmatprep.mubr.f32.mxu0 %v2982_v56 }
  0x6d   : > { %947 = vmatprep.mubr.f32.mxu1 %v2985_v0 }
  0x6f   : > { %803 = vmatmul.mubr.f32.gmra.mrb[20].mxu0 %v2953_v39 }
  0x70   : > { %948 = vmatmul.mubr.f32.gmra.mrb[20].mxu1 %v2995_v3  ;;  %807 = vmatprep.mubr.f32.mxu0 %v2998_v4 }
  0x71   : > { %952 = vmatprep.mubr.f32.mxu1 %v2987_v1 }
  0x73   : > { %808 = vmatmul.mubr.f32.gmra.mrb[22].mxu0 %v2955_v40 }
  0x74   : > { %953 = vmatmul.mubr.f32.gmra.mrb[22].mxu1 %v3007_v9  ;;  %812 = vmatprep.mubr.f32.mxu0 %v3010_v11 }
  0x75   : > { %957 = vmatprep.mubr.f32.mxu1 %v3013_v14 }
  0x77   : > { %813 = vmatmul.mubr.f32.gmra.mrb[24].mxu0 %v2985_v0 }
  0x78   : > { %958 = vmatmul.mubr.f32.gmra.mrb[24].mxu1 %v3023_v22  ;;  %817 = vmatprep.mubr.f32.mxu0 %v3026_v23 }
  0x79   : > { %962 = vmatprep.mubr.f32.mxu1 %v3015_v16 }
  0x7b   : > { %818 = vmatmul.mubr.f32.gmra.mrb[26].mxu0 %v2987_v1 }
  0x7c   : > { %963 = vmatmul.mubr.f32.gmra.mrb[26].mxu1 %v3035_v28  ;;  %822 = vmatprep.mubr.f32.mxu0 %v3038_v29 }
  0x7d   : > { %967 = vmatprep.mubr.f32.mxu1 %v3041_v32 }
  0x7f   : > { %823 = vmatmul.mubr.f32.gmra.mrb[28].mxu0 %v3013_v14 }
  0x80   : > { %968 = vmatmul.mubr.f32.gmra.mrb[28].mxu1 %v3048_v33  ;;  %827 = vmatprep.mubr.f32.mxu0 %v3051_v37 }
  0x81   : > { %972 = vmatprep.mubr.f32.mxu1 %v3053_v41 }
  0x83   : > { %828 = vmatmul.mubr.f32.gmra.mrb[30].mxu0 %v3015_v16 }
  0x84   : > { %973 = vmatmul.mubr.f32.gmra.mrb[30].mxu1 %v3060_v43  ;;  %1042 = vmatprep.mubr.f32.mxu0 %v2748_v60  ;;  %v2209_v60 = vpack.c.bf16 %v670_v57, %v669_v53 }
  0x85   : > { %1187 = vmatprep.mubr.f32.mxu1 %v2799_v18 }
  0x87   : > { %1043 = vmatmul.mubr.f32.vlgmr.msra.gmra.mrb[32].mxu0 %v2720_v44  ;;  %v671_v44 = vld [vmem:[%s3321_s1 + $0x430] sm:$0xff] }
  0x88   : > { %1188 = vmatmul.mubr.f32.vlgmr.msra.gmra.mrb[32].mxu1 %v2722_v45  ;;  %2204 = vmatpush3.bf16.msra.mxu0 %v2957_v42  ;;  %v672_v45 = vld [vmem:[%s3321_s1 + $0x438] sm:$0xff] }
  0x89   : > { %1047 = vmatprep.mubr.f32.mxu0 %v2796_v17  ;;  %1192 = vmatprep.mubr.f32.mxu1 %v2839_v35  ;;  %v2213_v17 = vpack.c.bf16 %v672_v45, %v671_v44 }
  0x8a   : > { %2206 = vmatprep.subr.bf16.mxu0 %v2205_v52  ;;  %2241 = vmatpush3.bf16.msra.mxu1 %v2957_v42  ;;  %v674_v42 = vld [vmem:[%s3321_s1 + $0x448] sm:$0xff] }
  0x8b   : > { %1048 = vmatmul.mubr.f32.gmra.mrb[34].mxu0 %v2759_v63  ;;  %2234 = vmatprep.subr.bf16.mxu1 %v2205_v52  ;;  %v673_v63 = vld [vmem:[%s3321_s1 + $0x440] sm:$0xff] }
  0x8c   : > { %1193 = vmatmul.mubr.f32.gmra.mrb[34].mxu1 %v2725_v49  ;;  %1052 = vmatprep.mubr.f32.mxu0 %v2828_v15  ;;  %v2217_v49 = vpack.c.bf16 %v674_v42, %v673_v63 }
  0x8d   : > { %1197 = vmatprep.mubr.f32.mxu1 %v2879_v59  ;;  %2208 = vmatpush3.bf16.msra.mxu0 %v2205_v52 }
  0x8e   : > { %2210 = vmatprep.subr.bf16.mxu0 %v2209_v60  ;;  %2242 = vmatpush3.bf16.msra.mxu1 %v2205_v52 }
  0x8f   : > { %1053 = vmatmul.mubr.f32.gmra.mrb[36].mxu0 %v2799_v18  ;;  %2235 = vmatprep.subr.bf16.mxu1 %v2209_v60  ;;  %v675_v18 = vld [vmem:[%s3321_s1 + $0x450] sm:$0xff] }
  0x90   : > { %1198 = vmatmul.mubr.f32.gmra.mrb[36].mxu1 %v2801_v19  ;;  %1057 = vmatprep.mubr.f32.mxu0 %v2876_v58  ;;  %v2221_v19 = vpack.c.bf16 %v676_v61, %v675_v18 }
  0x91   : > { %1202 = vmatprep.mubr.f32.mxu1 %v2919_v13  ;;  %2212 = vmatpush3.bf16.msra.mxu0 %v2209_v60 }
  0x92   : > { %2214 = vmatprep.subr.bf16.mxu0 %v2213_v17  ;;  %2243 = vmatpush3.bf16.msra.mxu1 %v2209_v60 }
  0x93   : > { %1058 = vmatmul.mubr.f32.gmra.mrb[38].mxu0 %v2839_v35  ;;  %2236 = vmatprep.subr.bf16.mxu1 %v2213_v17  ;;  %v677_v35 = vld [vmem:[%s3321_s1 + $0x460] sm:$0xff] }
  0x94   : > { %1203 = vmatmul.mubr.f32.gmra.mrb[38].mxu1 %v2804_v21  ;;  %1062 = vmatprep.mubr.f32.mxu0 %v2908_v10  ;;  %v2225_v21 = vpack.c.bf16 %v678_v2, %v677_v35 }
  0x95   : > { %1207 = vmatprep.mubr.f32.mxu1 %v2951_v36  ;;  %2216 = vmatpush3.bf16.msra.mxu0 %v2213_v17 }
  0x96   : > { %2218 = vmatprep.subr.bf16.mxu0 %v2217_v49  ;;  %2244 = vmatpush3.bf16.msra.mxu1 %v2213_v17 }
  0x97   : > { %1063 = vmatmul.mubr.f32.gmra.mrb[40].mxu0 %v2879_v59  ;;  %2237 = vmatprep.subr.bf16.mxu1 %v2217_v49  ;;  %v679_v59 = vld [vmem:[%s3321_s1 + $0x470] sm:$0xff] }
  0x98   : > { %1208 = vmatmul.mubr.f32.gmra.mrb[40].mxu1 %v2881_v48  ;;  %1067 = vmatprep.mubr.f32.mxu0 %v2948_v34  ;;  %v2229_v48 = vpack.c.bf16 %v680_v5, %v679_v59 }
  0x99   : > { %1212 = vmatprep.mubr.f32.mxu1 %v2968_v47  ;;  %2220 = vmatpush3.bf16.msra.mxu0 %v2217_v49 }
  0x9a   : > { %2222 = vmatprep.subr.bf16.mxu0 %v2221_v19  ;;  %2245 = vmatpush3.bf16.msra.mxu1 %v2217_v49 }
  0x9b   : > { %1068 = vmatmul.mubr.f32.gmra.mrb[42].mxu0 %v2919_v13  ;;  %2238 = vmatprep.subr.bf16.mxu1 %v2221_v19  ;;  %v507_v13 = vrot.slane %v3053_v41, 1 }
  0x9c   : > { %1213 = vmatmul.mubr.f32.gmra.mrb[42].mxu1 %v2884_v62  ;;  %1072 = vmatprep.mubr.f32.mxu0 %v2965_v46  ;;  %v506_v62 = vrot.slane %v3041_v32, 1 }
  0x9d   : > { %1217 = vmatprep.mubr.f32.mxu1 %v2982_v56  ;;  %2224 = vmatpush3.bf16.msra.mxu0 %v2221_v19 }
  0x9e   : > { %2226 = vmatprep.subr.bf16.mxu0 %v2225_v21  ;;  %2246 = vmatpush3.bf16.msra.mxu1 %v2221_v19 }
  0x9f   : > { %1073 = vmatmul.mubr.f32.gmra.mrb[44].mxu0 %v2951_v36  ;;  %2239 = vmatprep.subr.bf16.mxu1 %v2225_v21  ;;  %v361_v36 = vld [vmem:[#allocation2 + $0xd0] sm:$0x3] }
  0xa0   : > { %1218 = vmatmul.mubr.f32.gmra.mrb[44].mxu1 %v2953_v39  ;;  %1077 = vmatprep.mubr.f32.mxu0 %v2979_v55  ;;  %v508_v39 = vsel %vm389_vm0, %v506_v62, %v507_v13  ;;  %v516_v12 = vrot.slane %v361_v36, 2 }
  0xa1   : > { %1222 = vmatprep.mubr.f32.mxu1 %v2998_v4  ;;  %2228 = vmatpush3.bf16.msra.mxu0 %v2225_v21 }
  0xa2   : > { %2230 = vmatprep.subr.bf16.mxu0 %v2229_v48  ;;  %2247 = vmatpush3.bf16.msra.mxu1 %v2225_v21 }
  0xa3   : > { %1078 = vmatmul.mubr.f32.gmra.mrb[46].mxu0 %v2968_v47  ;;  %2240 = vmatprep.subr.bf16.mxu1 %v2229_v48  ;;  %v362_v47 = vld [vmem:[#allocation2 + $0xd8] sm:$0xff] }
  0xa4   : > { %1223 = vmatmul.mubr.f32.gmra.mrb[46].mxu1 %v2955_v40  ;;  %1082 = vmatprep.mubr.f32.mxu0 %v2995_v3  ;;  %v509_v40 = vrot.slane %v361_v36, 1  ;;  %v523_v6 = vrot.slane %v362_v47, 1 }
  0xa5   : > { %1227 = vmatprep.mubr.f32.mxu1 %v3010_v11  ;;  %2232 = vmatpush3.bf16.msra.mxu0 %v2229_v48 }
  0xa6   : > { %2248 = vmatpush3.bf16.msra.mxu1 %v2229_v48 }
  0xa7   : > { %1083 = vmatmul.mubr.f32.gmra.mrb[48].mxu0 %v2982_v56  ;;  %v363_v56 = vld [vmem:[#allocation2 + $0xe0] sm:$0xff] }
  0xa8   : > { %1228 = vmatmul.mubr.f32.gmra.mrb[48].mxu1 %v2985_v0  ;;  %1087 = vmatprep.mubr.f32.mxu0 %v3007_v9  ;;  %v513_v0 = vrot.slane %v3041_v32, 2  ;;  %v524_v7 = vrot.slane %v363_v56, 1  ;;  %v531_v24 = vrot.slane %v363_v56, 2 }
  0xa9   : > { %1232 = vmatprep.mubr.f32.mxu1 %v3026_v23 }
  0xaa   : > { %v525_v54 = vsel %vm389_vm0, %v523_v6, %v524_v7 }
  0xab   : > { %1088 = vmatmul.mubr.f32.gmra.mrb[50].mxu0 %v2998_v4  ;;  %v510_v4 = vsel %vm389_vm0, %v507_v13, %v509_v40 }
  0xac   : > { %1233 = vmatmul.mubr.f32.gmra.mrb[50].mxu1 %v2987_v1  ;;  %1092 = vmatprep.mubr.f32.mxu0 %v3023_v22  ;;  %v514_v1 = vrot.slane %v3053_v41, 2 }
  0xad   : > { %1237 = vmatprep.mubr.f32.mxu1 %v3038_v29 }
  0xaf   : > { %1093 = vmatmul.mubr.f32.gmra.mrb[52].mxu0 %v3010_v11  ;;  %v515_v11 = vsel %vm446_vm1, %v513_v0, %v514_v1 }
  0xb0   : > { %1238 = vmatmul.mubr.f32.gmra.mrb[52].mxu1 %v3013_v14  ;;  %1097 = vmatprep.mubr.f32.mxu0 %v3035_v28  ;;  %v526_v14 = vrot.slane %v364_v8, 1 }
  0xb1   : > { %1242 = vmatprep.mubr.f32.mxu1 %v3051_v37 }
  0xb2   : > { %v527_v20 = vsel %vm389_vm0, %v524_v7, %v526_v14 }
  0xb3   : > { %1098 = vmatmul.mubr.f32.gmra.mrb[54].mxu0 %v3026_v23  ;;  %v530_v23 = vrot.slane %v362_v47, 2 }
  0xb4   : > { %1243 = vmatmul.mubr.f32.gmra.mrb[54].mxu1 %v3015_v16  ;;  %1102 = vmatprep.mubr.f32.mxu0 %v3048_v33  ;;  %v517_v16 = vsel %vm446_vm1, %v514_v1, %v516_v12 }
  0xb5   : > { %1247 = vmatprep.mubr.f32.mxu1 %v508_v39 }
  0xb7   : > { %1103 = vmatmul.mubr.f32.gmra.mrb[56].mxu0 %v3038_v29 }
  0xb8   : > { %1248 = vmatmul.mubr.f32.gmra.mrb[56].mxu1 %v3041_v32  ;;  %1107 = vmatprep.mubr.f32.mxu0 %v3060_v43 }
  0xb9   : > { %1252 = vmatprep.mubr.f32.mxu1 %v510_v4 }
  0xbb   : > { %1108 = vmatmul.mubr.f32.gmra.mrb[58].mxu0 %v3051_v37 }
  0xbc   : > { %1253 = vmatmul.mubr.f32.gmra.mrb[58].mxu1 %v3053_v41  ;;  %1112 = vmatprep.mubr.f32.mxu0 %v515_v11 }
  0xbd   : > { %1257 = vmatprep.mubr.f32.mxu1 %v525_v54 }
  0xbf   : > { %1113 = vmatmul.mubr.f32.gmra.mrb[60].mxu0 %v508_v39 }
  0xc0   : > { %1258 = vmatmul.mubr.f32.gmra.mrb[60].mxu1 %v362_v47  ;;  %1117 = vmatprep.mubr.f32.mxu0 %v517_v16 }
  0xc1   : > { %1262 = vmatprep.mubr.f32.mxu1 %v527_v20 }
  0xc3   : > { %1118 = vmatmul.mubr.f32.gmra.mrb[62].mxu0 %v510_v4 }
  0xc4   : > { %1263 = vmatmul.mubr.f32.gmra.mrb[62].mxu1 %v363_v56  ;;  %2049 = vmatprep.mubr.f32.mxu0 %v2828_v15  ;;  %v533_v15 = vrot.slane %v364_v8, 2 }
  0xc5   : > { %2061 = vmatprep.mubr.f32.mxu1 %v3023_v22  ;;  %v532_v22 = vsel %vm446_vm1, %v530_v23, %v531_v24 }
  0xc7   : > { %2050 = vmatmul.mubr.f32.vlgmr.msra.gmra.mrb[64].mxu0 %v2876_v58  ;;  %v534_v58 = vsel %vm446_vm1, %v531_v24, %v533_v15 }
  0xc8   : > { %2062 = vmatmul.mubr.f32.vlgmr.msra.gmra.mrb[64].mxu1 %v3035_v28  ;;  %2052 = vmatprep.mubr.f32.mxu0 %v2908_v10 }
  0xc9   : > { %2064 = vmatprep.mubr.f32.mxu1 %v3048_v33 }
  0xcb   : > { %2053 = vmatmul.mubr.f32.gmra.mrb[66].mxu0 %v2948_v34  ;;  %v3189_v34 = vld [vmem:[%s3322_s2] ss:$0 sm:$0xff] }
  0xcc   : > { %2065 = vmatmul.mubr.f32.gmra.mrb[66].mxu1 %v3060_v43  ;;  %2055 = vmatprep.mubr.f32.mxu0 %v2965_v46 }
  0xcd   : > { %2067 = vmatprep.mubr.f32.mxu1 %v515_v11 }
  0xcf   : > { %2056 = vmatmul.mubr.f32.gmra.mrb[68].mxu0 %v2979_v55 }
  0xd0   : > { %2068 = vmatmul.mubr.f32.gmra.mrb[68].mxu1 %v517_v16  ;;  %2058 = vmatprep.mubr.f32.mxu0 %v2995_v3 }
  0xd1   : > { %2070 = vmatprep.mubr.f32.mxu1 %v532_v22 }
  0xd3   : > { %2059 = vmatmul.mubr.f32.gmra.mrb[70].mxu0 %v3007_v9 }
  0xd4   : > { %2071 = vmatmul.mubr.f32.gmra.mrb[70].mxu1 %v534_v58 }
 0x11a   : > { %v1697_v10 = vpop.f32.mrb[0].mxu0 }
 0x11b   : > { %v1698_v46 = vpop.f32.mrb[1].mxu0  ;;  %v1777_v25 = vpop.f32.mrb[0].mxu1 }
 0x11c   : > { %v1699_v26 = vadd.f32 %v1698_v46, %v1697_v10  ;;  %v1778_v27 = vpop.f32.mrb[1].mxu1 }
 0x11d   : > { %v1779_v55 = vadd.f32 %v1778_v27, %v1777_v25 }
 0x11e   : > { %v755_v28 = vadd.f32 %v1699_v26, %v3189_v34  ;;  %v1700_v3 = vpop.f32.mrb[2].mxu0 }
 0x11f   : > { %v1701_v29 = vpop.f32.mrb[3].mxu0  ;;  %v1780_v30 = vpop.f32.mrb[2].mxu1 }
 0x120   : > { %v3192_v31 = vadd.f32 %v1779_v55, %v755_v28  ;;  %v1702_v9 = vadd.f32 %v1701_v29, %v1700_v3  ;;  %v1781_v32 = vpop.f32.mrb[3].mxu1 }
 0x121   : > { %v1782_v33 = vadd.f32 %v1781_v32, %v1780_v30 }
 0x122   : > { %v760_v37 = vadd.f32 %v1702_v9, %v3189_v34  ;;  %v1703_v38 = vpop.f32.mrb[4].mxu0 }
 0x123   : > { %v1704_v41 = vpop.f32.mrb[5].mxu0  ;;  %v1783_v43 = vpop.f32.mrb[4].mxu1 }
 0x124   : > { %v3195_v50 = vadd.f32 %v1782_v33, %v760_v37  ;;  %v1705_v51 = vadd.f32 %v1704_v41, %v1703_v38  ;;  %v1784_v52 = vpop.f32.mrb[5].mxu1 }
 0x125   : > { %v1785_v53 = vadd.f32 %v1784_v52, %v1783_v43 }
 0x126   : > { %v765_v57 = vadd.f32 %v1705_v51, %v3189_v34  ;;  %v1706_v60 = vpop.f32.mrb[6].mxu0 }
 0x127   : > { %v1707_v44 = vpop.f32.mrb[7].mxu0  ;;  %v1786_v45 = vpop.f32.mrb[6].mxu1 }
 0x128   : > { %v3198_v17 = vadd.f32 %v1785_v53, %v765_v57  ;;  %v1708_v63 = vadd.f32 %v1707_v44, %v1706_v60  ;;  %v1787_v42 = vpop.f32.mrb[7].mxu1 }
 0x129   : > { %v1788_v49 = vadd.f32 %v1787_v42, %v1786_v45 }
 0x12a   : > { %v770_v18 = vadd.f32 %v1708_v63, %v3189_v34  ;;  %v1709_v61 = vpop.f32.mrb[8].mxu0 }
 0x12b   : > { %v1710_v19 = vpop.f32.mrb[9].mxu0  ;;  %v1789_v35 = vpop.f32.mrb[8].mxu1 }
 0x12c   : > { %v3201_v2 = vadd.f32 %v1788_v49, %v770_v18  ;;  %v1711_v21 = vadd.f32 %v1710_v19, %v1709_v61  ;;  %v1790_v59 = vpop.f32.mrb[9].mxu1 }
 0x12d   : > { %v1791_v5 = vadd.f32 %v1790_v59, %v1789_v35 }
 0x12e   : > { %v775_v48 = vadd.f32 %v1711_v21, %v3189_v34  ;;  %v1712_v62 = vpop.f32.mrb[10].mxu0 }
 0x12f   : > { %v1713_v13 = vpop.f32.mrb[11].mxu0  ;;  %v1792_v36 = vpop.f32.mrb[10].mxu1 }
 0x130   : > { %v3204_v39 = vadd.f32 %v1791_v5, %v775_v48  ;;  %v1714_v40 = vadd.f32 %v1713_v13, %v1712_v62  ;;  %v1793_v47 = vpop.f32.mrb[11].mxu1 }
 0x131   : > { %v1794_v56 = vadd.f32 %v1793_v47, %v1792_v36 }
 0x132   : > { %v780_v0 = vadd.f32 %v1714_v40, %v3189_v34  ;;  %v1715_v1 = vpop.f32.mrb[12].mxu0 }
 0x133   : > { %v1716_v4 = vpop.f32.mrb[13].mxu0  ;;  %v1795_v6 = vpop.f32.mrb[12].mxu1 }
 0x134   : > { %v3207_v7 = vadd.f32 %v1794_v56, %v780_v0  ;;  %v1717_v8 = vadd.f32 %v1716_v4, %v1715_v1  ;;  %v1796_v11 = vpop.f32.mrb[13].mxu1 }
 0x135   : > { %v1797_v12 = vadd.f32 %v1796_v11, %v1795_v6 }
 0x136   : > { %v785_v54 = vadd.f32 %v1717_v8, %v3189_v34  ;;  %v1718_v14 = vpop.f32.mrb[14].mxu0 }
 0x137   : > { %v1719_v16 = vpop.f32.mrb[15].mxu0  ;;  %v1798_v20 = vpop.f32.mrb[14].mxu1 }
 0x138   : > { %v3210_v23 = vadd.f32 %v1797_v12, %v785_v54  ;;  %v1720_v24 = vadd.f32 %v1719_v16, %v1718_v14  ;;  %v1799_v15 = vpop.f32.mrb[15].mxu1 }
 0x139   : > { %v1800_v22 = vadd.f32 %v1799_v15, %v1798_v20 }
 0x13a   : > { %v790_v58 = vadd.f32 %v1720_v24, %v3189_v34  ;;  %v1721_v10 = vpop.f32.mrb[16].mxu0 }
 0x13b   : > { %v1722_v46 = vpop.f32.mrb[17].mxu0  ;;  %v1801_v25 = vpop.f32.mrb[16].mxu1 }
 0x13c   : > { %v3213_v26 = vadd.f32 %v1800_v22, %v790_v58  ;;  %v1723_v27 = vadd.f32 %v1722_v46, %v1721_v10  ;;  %v1802_v55 = vpop.f32.mrb[17].mxu1 }
 0x13d   : > { %v1803_v28 = vadd.f32 %v1802_v55, %v1801_v25 }
 0x13e   : > { %v795_v3 = vadd.f32 %v1723_v27, %v3189_v34  ;;  %v1724_v29 = vpop.f32.mrb[18].mxu0 }
 0x13f   : > { %v1725_v30 = vpop.f32.mrb[19].mxu0  ;;  %v1804_v9 = vpop.f32.mrb[18].mxu1 }
 0x140   : > { %v3216_v32 = vadd.f32 %v1803_v28, %v795_v3  ;;  %v1726_v33 = vadd.f32 %v1725_v30, %v1724_v29  ;;  %v1805_v37 = vpop.f32.mrb[19].mxu1 }
 0x141   : > { %v1806_v38 = vadd.f32 %v1805_v37, %v1804_v9 }
 0x142   : > { %v800_v41 = vadd.f32 %v1726_v33, %v3189_v34  ;;  %v1727_v43 = vpop.f32.mrb[20].mxu0 }
 0x143   : > { %v1728_v51 = vpop.f32.mrb[21].mxu0  ;;  %v1807_v52 = vpop.f32.mrb[20].mxu1 }
 0x144   : > { %v3219_v53 = vadd.f32 %v1806_v38, %v800_v41  ;;  %v1729_v57 = vadd.f32 %v1728_v51, %v1727_v43  ;;  %v1808_v60 = vpop.f32.mrb[21].mxu1 }
 0x145   : > { %v1809_v44 = vadd.f32 %v1808_v60, %v1807_v52 }
 0x146   : > { %v805_v45 = vadd.f32 %v1729_v57, %v3189_v34  ;;  %v1730_v63 = vpop.f32.mrb[22].mxu0 }
 0x147   : > { %v1731_v42 = vpop.f32.mrb[23].mxu0  ;;  %v1810_v49 = vpop.f32.mrb[22].mxu1 }
 0x148   : > { %v3222_v18 = vadd.f32 %v1809_v44, %v805_v45  ;;  %v1732_v61 = vadd.f32 %v1731_v42, %v1730_v63  ;;  %v1811_v19 = vpop.f32.mrb[23].mxu1 }
 0x149   : > { %v1812_v35 = vadd.f32 %v1811_v19, %v1810_v49 }
 0x14a   : > { %v810_v21 = vadd.f32 %v1732_v61, %v3189_v34  ;;  %v1733_v59 = vpop.f32.mrb[24].mxu0 }
 0x14b   : > { %v1734_v5 = vpop.f32.mrb[25].mxu0  ;;  %v1813_v48 = vpop.f32.mrb[24].mxu1 }
 0x14c   : > { %v3225_v62 = vadd.f32 %v1812_v35, %v810_v21  ;;  %v1735_v13 = vadd.f32 %v1734_v5, %v1733_v59  ;;  %v1814_v36 = vpop.f32.mrb[25].mxu1 }
 0x14d   : > { %v1815_v40 = vadd.f32 %v1814_v36, %v1813_v48 }
 0x14e   : > { %v815_v47 = vadd.f32 %v1735_v13, %v3189_v34  ;;  %v1736_v56 = vpop.f32.mrb[26].mxu0 }
 0x14f   : > { %v1737_v0 = vpop.f32.mrb[27].mxu0  ;;  %v1816_v1 = vpop.f32.mrb[26].mxu1 }
 0x150   : > { %v3228_v4 = vadd.f32 %v1815_v40, %v815_v47  ;;  %v1738_v6 = vadd.f32 %v1737_v0, %v1736_v56  ;;  %v1817_v8 = vpop.f32.mrb[27].mxu1 }
 0x151   : > { %v1818_v11 = vadd.f32 %v1817_v8, %v1816_v1 }
 0x152   : > { %v820_v12 = vadd.f32 %v1738_v6, %v3189_v34  ;;  %v1739_v54 = vpop.f32.mrb[28].mxu0 }
 0x153   : > { %v1740_v14 = vpop.f32.mrb[29].mxu0  ;;  %v1819_v16 = vpop.f32.mrb[28].mxu1 }
 0x154   : > { %v3231_v20 = vadd.f32 %v1818_v11, %v820_v12  ;;  %v1741_v24 = vadd.f32 %v1740_v14, %v1739_v54  ;;  %v1820_v15 = vpop.f32.mrb[29].mxu1 }
 0x155   : > { %v1821_v22 = vadd.f32 %v1820_v15, %v1819_v16 }
 0x156   : > { %v825_v58 = vadd.f32 %v1741_v24, %v3189_v34  ;;  %v1742_v10 = vpop.f32.mrb[30].mxu0 }
 0x157   : > { %v1743_v46 = vpop.f32.mrb[31].mxu0  ;;  %v1822_v25 = vpop.f32.mrb[30].mxu1 }
 0x158   : > { %v3234_v27 = vadd.f32 %v1821_v22, %v825_v58  ;;  %v1744_v55 = vadd.f32 %v1743_v46, %v1742_v10  ;;  %v1823_v28 = vpop.f32.mrb[31].mxu1 }
 0x159   : > { %v1824_v3 = vadd.f32 %v1823_v28, %v1822_v25 }
 0x15a   : > { %v830_v29 = vadd.f32 %v1744_v55, %v3189_v34  ;;  %v1857_v30 = vpop.f32.mrb[32].mxu0 }
 0x15b   : > { %v1858_v9 = vpop.f32.mrb[33].mxu0  ;;  %v1937_v33 = vpop.f32.mrb[32].mxu1 }
 0x15c   : > { %v3237_v37 = vadd.f32 %v1824_v3, %v830_v29  ;;  %v1859_v38 = vadd.f32 %v1858_v9, %v1857_v30  ;;  %v1938_v41 = vpop.f32.mrb[33].mxu1 }
 0x15d   : > { %v1939_v43 = vadd.f32 %v1938_v41, %v1937_v33 }
 0x15e   : > { %v1045_v51 = vadd.f32 %v1859_v38, %v3192_v31  ;;  %v1860_v52 = vpop.f32.mrb[34].mxu0 }
 0x15f   : > { %v1861_v57 = vpop.f32.mrb[35].mxu0  ;;  %v1940_v60 = vpop.f32.mrb[34].mxu1 }
 0x160   : > { %v1862_v44 = vadd.f32 %v1861_v57, %v1860_v52  ;;  %v1941_v45 = vpop.f32.mrb[35].mxu1  ;;  %v3240_v63 = vadd.f32 %v1939_v43, %v1045_v51 }
 0x161   : > { %v1942_v42 = vadd.f32 %v1941_v45, %v1940_v60 }
 0x162   : > { %v1050_v34 = vadd.f32 %v1862_v44, %v3195_v50  ;;  %v1863_v49 = vpop.f32.mrb[36].mxu0 }
 0x163   : > { %v1864_v61 = vpop.f32.mrb[37].mxu0  ;;  %v1943_v19 = vpop.f32.mrb[36].mxu1 }
 0x164   : > { %v1865_v35 = vadd.f32 %v1864_v61, %v1863_v49  ;;  %v1944_v21 = vpop.f32.mrb[37].mxu1  ;;  %v3243_v59 = vadd.f32 %v1942_v42, %v1050_v34 }
 0x165   : > { %v1945_v5 = vadd.f32 %v1944_v21, %v1943_v19 }
 0x166   : > { %v1055_v31 = vadd.f32 %v1865_v35, %v3198_v17  ;;  %v1866_v48 = vpop.f32.mrb[38].mxu0 }
 0x167   : > { %v1867_v13 = vpop.f32.mrb[39].mxu0  ;;  %v1946_v36 = vpop.f32.mrb[38].mxu1 }
 0x168   : > { %v1868_v40 = vadd.f32 %v1867_v13, %v1866_v48  ;;  %v1947_v47 = vpop.f32.mrb[39].mxu1  ;;  %v3246_v56 = vadd.f32 %v1945_v5, %v1055_v31 }
 0x169   : > { %v1948_v0 = vadd.f32 %v1947_v47, %v1946_v36 }
 0x16a   : > { %v1060_v50 = vadd.f32 %v1868_v40, %v3201_v2  ;;  %v1869_v1 = vpop.f32.mrb[40].mxu0 }
 0x16b   : > { %v1870_v6 = vpop.f32.mrb[41].mxu0  ;;  %v1949_v8 = vpop.f32.mrb[40].mxu1 }
 0x16c   : > { %v1871_v11 = vadd.f32 %v1870_v6, %v1869_v1  ;;  %v1950_v12 = vpop.f32.mrb[41].mxu1  ;;  %v3249_v54 = vadd.f32 %v1948_v0, %v1060_v50 }
 0x16d   : > { %v1951_v14 = vadd.f32 %v1950_v12, %v1949_v8 }
 0x16e   : > { %v1065_v17 = vadd.f32 %v1871_v11, %v3204_v39  ;;  %v1872_v16 = vpop.f32.mrb[42].mxu0 }
 0x16f   : > { %v1873_v24 = vpop.f32.mrb[43].mxu0  ;;  %v1952_v15 = vpop.f32.mrb[42].mxu1 }
 0x170   : > { %v1874_v22 = vadd.f32 %v1873_v24, %v1872_v16  ;;  %v1953_v58 = vpop.f32.mrb[43].mxu1  ;;  %v3252_v10 = vadd.f32 %v1951_v14, %v1065_v17 }
 0x171   : > { %v1954_v46 = vadd.f32 %v1953_v58, %v1952_v15 }
 0x172   : > { %v1070_v2 = vadd.f32 %v1874_v22, %v3207_v7  ;;  %v1875_v25 = vpop.f32.mrb[44].mxu0 }
 0x173   : > { %v1876_v55 = vpop.f32.mrb[45].mxu0  ;;  %v1955_v28 = vpop.f32.mrb[44].mxu1 }
 0x174   : > { %v1877_v3 = vadd.f32 %v1876_v55, %v1875_v25  ;;  %v1956_v29 = vpop.f32.mrb[45].mxu1  ;;  %v3255_v30 = vadd.f32 %v1954_v46, %v1070_v2 }
 0x175   : > { %v1957_v9 = vadd.f32 %v1956_v29, %v1955_v28 }
 0x176   : > { %v1075_v39 = vadd.f32 %v1877_v3, %v3210_v23  ;;  %v1878_v33 = vpop.f32.mrb[46].mxu0 }
 0x177   : > { %v1879_v38 = vpop.f32.mrb[47].mxu0  ;;  %v1958_v41 = vpop.f32.mrb[46].mxu1 }
 0x178   : > { %v1880_v43 = vadd.f32 %v1879_v38, %v1878_v33  ;;  %v1959_v51 = vpop.f32.mrb[47].mxu1  ;;  %v3258_v52 = vadd.f32 %v1957_v9, %v1075_v39 }
 0x179   : > { %v1960_v57 = vadd.f32 %v1959_v51, %v1958_v41 }
 0x17a   : > { %v1080_v7 = vadd.f32 %v1880_v43, %v3213_v26  ;;  %v1881_v60 = vpop.f32.mrb[48].mxu0 }
 0x17b   : > { %v1882_v44 = vpop.f32.mrb[49].mxu0  ;;  %v1961_v45 = vpop.f32.mrb[48].mxu1 }
 0x17c   : > { %v1883_v42 = vadd.f32 %v1882_v44, %v1881_v60  ;;  %v1962_v34 = vpop.f32.mrb[49].mxu1  ;;  %v3261_v49 = vadd.f32 %v1960_v57, %v1080_v7 }
 0x17d   : > { %v1963_v61 = vadd.f32 %v1962_v34, %v1961_v45 }
 0x17e   : > { %v1085_v23 = vadd.f32 %v1883_v42, %v3216_v32  ;;  %v1884_v19 = vpop.f32.mrb[50].mxu0 }
 0x17f   : > { %v1885_v35 = vpop.f32.mrb[51].mxu0  ;;  %v1964_v21 = vpop.f32.mrb[50].mxu1 }
 0x180   : > { %v1886_v5 = vadd.f32 %v1885_v35, %v1884_v19  ;;  %v1965_v31 = vpop.f32.mrb[51].mxu1  ;;  %v1230_v48 = vadd.f32 %v1963_v61, %v1085_v23 }
 0x181   : > { %v1966_v13 = vadd.f32 %v1965_v31, %v1964_v21 }
 0x182   : > { %v1090_v36 = vadd.f32 %v1886_v5, %v3219_v53  ;;  %v1887_v26 = vpop.f32.mrb[52].mxu0 }
 0x183   : > { %v1888_v40 = vpop.f32.mrb[53].mxu0  ;;  %v1967_v47 = vpop.f32.mrb[52].mxu1 }
 0x184   : > { %v1889_v0 = vadd.f32 %v1888_v40, %v1887_v26  ;;  %v1968_v50 = vpop.f32.mrb[53].mxu1  ;;  %v1235_v1 = vadd.f32 %v1966_v13, %v1090_v36 }
 0x185   : > { %v1969_v6 = vadd.f32 %v1968_v50, %v1967_v47 }
 0x186   : > { %v1095_v8 = vadd.f32 %v1889_v0, %v3222_v18  ;;  %v1890_v11 = vpop.f32.mrb[54].mxu0 }
 0x187   : > { %v1891_v32 = vpop.f32.mrb[55].mxu0  ;;  %v1970_v12 = vpop.f32.mrb[54].mxu1 }
 0x188   : > { %v1892_v14 = vadd.f32 %v1891_v32, %v1890_v11  ;;  %v1971_v17 = vpop.f32.mrb[55].mxu1  ;;  %v1240_v16 = vadd.f32 %v1969_v6, %v1095_v8 }
 0x189   : > { %v1972_v24 = vadd.f32 %v1971_v17, %v1970_v12 }
 0x18a   : > { %v1100_v15 = vadd.f32 %v1892_v14, %v3225_v62  ;;  %v1893_v22 = vpop.f32.mrb[56].mxu0 }
 0x18b   : > { %v1894_v53 = vpop.f32.mrb[57].mxu0  ;;  %v1973_v58 = vpop.f32.mrb[56].mxu1 }
 0x18c   : > { %v1895_v46 = vadd.f32 %v1894_v53, %v1893_v22  ;;  %v1974_v2 = vpop.f32.mrb[57].mxu1  ;;  %v1245_v25 = vadd.f32 %v1972_v24, %v1100_v15 }
 0x18d   : > { %v1975_v55 = vadd.f32 %v1974_v2, %v1973_v58 }
 0x18e   : > { %v1105_v28 = vadd.f32 %v1895_v46, %v3228_v4  ;;  %v1896_v3 = vpop.f32.mrb[58].mxu0 }
 0x18f   : > { %v1897_v18 = vpop.f32.mrb[59].mxu0  ;;  %v1976_v29 = vpop.f32.mrb[58].mxu1 }
 0x190   : > { %v1898_v9 = vadd.f32 %v1897_v18, %v1896_v3  ;;  %v1977_v39 = vpop.f32.mrb[59].mxu1  ;;  %v1250_v33 = vadd.f32 %v1975_v55, %v1105_v28 }
 0x191   : > { %v1978_v38 = vadd.f32 %v1977_v39, %v1976_v29 }
 0x192   : > { %v1110_v41 = vadd.f32 %v1898_v9, %v3231_v20  ;;  %v1899_v43 = vpop.f32.mrb[60].mxu0 }
 0x193   : > { %v1900_v62 = vpop.f32.mrb[61].mxu0  ;;  %v1979_v51 = vpop.f32.mrb[60].mxu1 }
 0x194   : > { %v1901_v57 = vadd.f32 %v1900_v62, %v1899_v43  ;;  %v1980_v7 = vpop.f32.mrb[61].mxu1  ;;  %v1255_v60 = vadd.f32 %v1978_v38, %v1110_v41 }
 0x195   : > { %v1981_v44 = vadd.f32 %v1980_v7, %v1979_v51 }
 0x196   : > { %v1115_v45 = vadd.f32 %v1901_v57, %v3234_v27  ;;  %v1902_v42 = vpop.f32.mrb[62].mxu0 }
 0x197   : > { %v1903_v4 = vpop.f32.mrb[63].mxu0  ;;  %v1982_v34 = vpop.f32.mrb[62].mxu1 }
 0x198   : > { %v1904_v61 = vadd.f32 %v1903_v4, %v1902_v42  ;;  %v1983_v23 = vpop.f32.mrb[63].mxu1  ;;  %v3270_v19 = vadd.f32 %v1981_v44, %v1115_v45 }
 0x199   : > { %v1984_v20 = vadd.f32 %v1983_v23, %v1982_v34 }
 0x19a   : > { %v1120_v35 = vadd.f32 %v1904_v61, %v3237_v37  ;;  %v2051_v21 = vpop.f32.mrb[64].mxu0 }
 0x19b   : > { %v1340_v5 = vadd.f32 %v2051_v21, %v3243_v59  ;;  %v2063_v31 = vpop.f32.mrb[64].mxu1  ;;  %v1334_v13 = vpop.f32.mrb[65].mxu0 }
 0x19c   : > { %v3274_v27 = vadd.f32 %v2063_v31, %v1235_v1  ;;  %v1335_v36 = vadd.f32 %v1334_v13, %v3240_v63  ;;  %v1374_v26 = vpop.f32.mrb[65].mxu1  ;;  %v1265_v40 = vadd.f32 %v1984_v20, %v1120_v35 }
 0x19d   : > { %1414 = vst [vmem:[%s2399_s7 + $0x8] sm:$0xff] %v1340_v5  ;;  %v1451_v47 = vmul.f32 %v1340_v5, %v1340_v5  ;;  %v1375_v0 = vadd.f32 %v1374_v26, %v1230_v48 }
 0x19e   : > { %1422 = vst [vmem:[%s2399_s7 + $0x48] sm:$0xff] %v3274_v27  ;;  %1413 = vst [vmem:[%s2399_s7] sm:$0xff] %v1335_v36  ;;  %v1429_v37 = vadd.f32 %v1340_v5, %v1335_v36  ;;  %v1450_v50 = vmul.f32 %v1335_v36, %v1335_v36  ;;  %v2054_v59 = vpop.f32.mrb[66].mxu0 }
 0x19f   : > { %1421 = vst [vmem:[%s2399_s7 + $0x40] sm:$0xff] %v1375_v0  ;;  %v1350_v1 = vadd.f32 %v2054_v59, %v3249_v54  ;;  %v2066_v6 = vpop.f32.mrb[66].mxu1  ;;  %v1344_v63 = vpop.f32.mrb[67].mxu0  ;;  %v1458_v45 = vmul.f32 %v1375_v0, %v1375_v0 }
 0x1a0   : > { %v1466_v8 = vadd.f32 %v1451_v47, %v1450_v50  ;;  %v1390_v11 = vadd.f32 %v2066_v6, %v1245_v25  ;;  %v1345_v32 = vadd.f32 %v1344_v63, %v3246_v56  ;;  %v1384_v12 = vpop.f32.mrb[67].mxu1 }
 0x1a1   : > { %1416 = vst [vmem:[%s2399_s7 + $0x18] sm:$0xff] %v1350_v1  ;;  %v1385_v48 = vadd.f32 %v1384_v12, %v1240_v16  ;;  %v1453_v15 = vmul.f32 %v1350_v1, %v1350_v1 }
 0x1a2   : > { %1424 = vst [vmem:[%s2399_s7 + $0x58] sm:$0xff] %v1390_v11  ;;  %1415 = vst [vmem:[%s2399_s7 + $0x10] sm:$0xff] %v1345_v32  ;;  %v1430_v14 = vadd.f32 %v1429_v37, %v1345_v32  ;;  %v1452_v17 = vmul.f32 %v1345_v32, %v1345_v32  ;;  %v2057_v24 = vpop.f32.mrb[68].mxu0  ;;  %v1461_v35 = vmul.f32 %v1390_v11, %v1390_v11 }
 0x1a3   : > { %1423 = vst [vmem:[%s2399_s7 + $0x50] sm:$0xff] %v1385_v48  ;;  %v1360_v54 = vadd.f32 %v2057_v24, %v3255_v30  ;;  %v2069_v22 = vpop.f32.mrb[68].mxu1  ;;  %v1354_v53 = vpop.f32.mrb[69].mxu0  ;;  %v1460_v23 = vmul.f32 %v1385_v48, %v1385_v48 }
 0x1a4   : > { %v1467_v58 = vadd.f32 %v1466_v8, %v1452_v17  ;;  %v1400_v56 = vadd.f32 %v2069_v22, %v1255_v60  ;;  %v1355_v46 = vadd.f32 %v1354_v53, %v3252_v10  ;;  %v1431_v16 = vadd.f32 %v1430_v14, %v1350_v1  ;;  %v1394_v2 = vpop.f32.mrb[69].mxu1 }
 0x1a5   : > { %1418 = vst [vmem:[%s2399_s7 + $0x28] sm:$0xff] %v1360_v54  ;;  %v1395_v25 = vadd.f32 %v1394_v2, %v1250_v33  ;;  %v1455_v18 = vmul.f32 %v1360_v54, %v1360_v54 }
 0x1a6   : > { %1426 = vst [vmem:[%s2399_s7 + $0x68] sm:$0xff] %v1400_v56  ;;  %1417 = vst [vmem:[%s2399_s7 + $0x20] sm:$0xff] %v1355_v46  ;;  %v1432_v55 = vadd.f32 %v1431_v16, %v1355_v46  ;;  %v1454_v28 = vmul.f32 %v1355_v46, %v1355_v46  ;;  %v1468_v3 = vadd.f32 %v1467_v58, %v1453_v15  ;;  %v2060_v30 = vpop.f32.mrb[70].mxu0 }
 0x1a7   : > { %1425 = vst [vmem:[%s2399_s7 + $0x60] sm:$0xff] %v1395_v25  ;;  %v1370_v29 = vadd.f32 %v2060_v30, %v3261_v49  ;;  %v2072_v9 = vpop.f32.mrb[70].mxu1  ;;  %v1364_v10 = vpop.f32.mrb[71].mxu0  ;;  %v1462_v31 = vmul.f32 %v1395_v25, %v1395_v25  ;;  %v1463_v26 = vmul.f32 %v1400_v56, %v1400_v56 }
 0x1a8   : > { %v1469_v39 = vadd.f32 %v1468_v3, %v1454_v28  ;;  %v1410_v38 = vadd.f32 %v2072_v9, %v1265_v40  ;;  %v1365_v33 = vadd.f32 %v1364_v10, %v3258_v52  ;;  %v1433_v41 = vadd.f32 %v1432_v55, %v1360_v54  ;;  %v1404_v43 = vpop.f32.mrb[71].mxu1 }
 0x1a9   : > { %1420 = vst [vmem:[%s2399_s7 + $0x38] sm:$0xff] %v1370_v29  ;;  %v1405_v62 = vadd.f32 %v1404_v43, %v3270_v19  ;;  %v1457_v60 = vmul.f32 %v1370_v29, %v1370_v29  ;;  %v1459_v52 = vmul.f32 %v3274_v27, %v3274_v27 }
 0x1aa   : > { %1428 = vst [vmem:[%s2399_s7 + $0x78] sm:$0xff] %v1410_v38  ;;  %1419 = vst [vmem:[%s2399_s7 + $0x30] sm:$0xff] %v1365_v33  ;;  %v1434_v51 = vadd.f32 %v1433_v41, %v1365_v33  ;;  %v1456_v57 = vmul.f32 %v1365_v33, %v1365_v33  ;;  %v1470_v7 = vadd.f32 %v1469_v39, %v1455_v18 }
 0x1ab   : > { %1427 = vst [vmem:[%s2399_s7 + $0x70] sm:$0xff] %v1405_v62  ;;  %v1464_v37 = vmul.f32 %v1405_v62, %v1405_v62  ;;  %v1465_v59 = vmul.f32 %v1410_v38, %v1410_v38 }
 0x1ac   : > { %v1435_v44 = vadd.f32 %v1434_v51, %v1370_v29  ;;  %v1471_v49 = vadd.f32 %v1470_v7, %v1456_v57 }
 0x1ae   : > { %v1436_v42 = vadd.f32 %v1435_v44, %v1375_v0  ;;  %v1472_v4 = vadd.f32 %v1471_v49, %v1457_v60 }
 0x1b0   : > { %v1437_v34 = vadd.f32 %v1436_v42, %v3274_v27  ;;  %v1473_v61 = vadd.f32 %v1472_v4, %v1458_v45 }
 0x1b2   : > { %v1474_v19 = vadd.f32 %v1473_v61, %v1459_v52  ;;  %v1438_v20 = vadd.f32 %v1437_v34, %v1385_v48 }
 0x1b4   : > { %v1439_v21 = vadd.f32 %v1438_v20, %v1390_v11  ;;  %v1475_v5 = vadd.f32 %v1474_v19, %v1460_v23 }
 0x1b6   : > { %v1440_v13 = vadd.f32 %v1439_v21, %v1395_v25  ;;  %v1476_v36 = vadd.f32 %v1475_v5, %v1461_v35 }
 0x1b8   : > { %v1441_v40 = vadd.f32 %v1440_v13, %v1400_v56  ;;  %v1477_v47 = vadd.f32 %v1476_v36, %v1462_v31 }
 0x1ba   : > { %v1442_v0 = vadd.f32 %v1441_v40, %v1405_v62  ;;  %v1478_v50 = vadd.f32 %v1477_v47, %v1463_v26 }
 0x1bc   : > { %v1443_v1 = vadd.f32 %v1442_v0, %v1410_v38  ;;  %v1479_v6 = vadd.f32 %v1478_v50, %v1464_v37 }
 0x1be   : > { %v1444_v27 = vrot.slane %v1443_v1, 4  ;;  %v1480_v63 = vadd.f32 %v1479_v6, %v1465_v59 }
 0x1c0   : > { %v1445_v8 = vadd.f32 %v1444_v27, %v1443_v1  ;;  %v1481_v32 = vrot.slane %v1480_v63, 4 }
 0x1c2   : > { %v1446_v12 = vrot.slane %v1445_v8, 2  ;;  %v1482_v11 = vadd.f32 %v1481_v32, %v1480_v63 }
 0x1c4   : > { %v1447_v48 = vadd.f32 %v1446_v12, %v1445_v8  ;;  %v1483_v14 = vrot.slane %v1482_v11, 2 }
 0x1c6   : > { %v1448_v17 = vrot.slane %v1447_v48, 1  ;;  %v1484_v24 = vadd.f32 %v1483_v14, %v1482_v11 }
 0x1c8   : > { %v1485_v15 = vrot.slane %v1484_v24, 1  ;;  %v1449_v54 = vadd.f32 %v1448_v17, %v1447_v48 }
 0x1ca   : > { %v1486_v22 = vadd.f32 %v1485_v15, %v1484_v24 }
 0x1cc   : > { %v1488_v53 = vsel %vm1487_vm2, %v1449_v54, %v1486_v22 }
 0x1cd   : > { %1489 = vst [vmem:[%s2416_s22] sm:$0x3] %v1488_v53 }
 0x1ce PF: > { %s15_s19 = sadd.s32 1, %s2329_s19   ;;  %s3325_s15 = smov %s2321_s17 }
 0x1cf   : > { %p12_p8 = scmp.ge.s32.totalorder %s15_s19, 6   ;;  %s3326_s16 = smov %s2325_s18 }
 0x1d0   : > { %s3327_s17 = smov %s3330_s20  ;;  %s3328_s18 = smov %s3334_s21 }
 0x1d1   :  { %14 = sbr.rel (!%p12_p8) target bundleno = 3 (0x3), region = 119 }
 0x1d8   :  { %1544 = vsyncmov [#allocation3] }
 0x1db   :  { %s1545_s7 = vpop.sfrf %1544 }
 0x1dc   :  { %p1664_p9 = scmp.ne.s32.totalorder %s1545_s7, 0 }
 0x1de   :  { %1549 = shalt.err (%p1664_p9)  }

// kernel: conv_block_forward.4
= control target key start
LH: loop header
LB: loop body
LE: loop exit
PB: predicated region body
PF: predicated region fallthrough
CT: control target
= control target key end

     0   :  { %s2774_s21 = smov 0   ;;  %s2776_s22 = smov 0   ;;  %s4425_s0 = inlined_call_operand.vmem [shape: f32[2,18,18,128], index: 0, kind: input, shape index: {}]   ;;  %s4426_s1 = inlined_call_operand.vmem [shape: f32[1152,128], index: 1, kind: input, shape index: {}]   ;;  %s4427_s2 = inlined_call_operand.vmem [shape: f32[1,128], index: 2, kind: input, shape index: {}]   ;;  %s4428_s3 = inlined_call_operand.vmem [shape: f32[1,1,128], index: 3, kind: input, shape index: {}]   ;;  %s4429_s4 = inlined_call_operand.vmem [shape: f32[1,1,128], index: 4, kind: input, shape index: {}]   ;;  %s4430_s5 = inlined_call_operand.vmem [shape: f32[2,16,16,128], index: 5, kind: output, shape index: {0}]   ;;  %s4431_s6 = inlined_call_operand.vmem [shape: f32[2,2,2,128], index: 6, kind: output, shape index: {1}]  }
   0x1   :  { %s2778_s23 = smov 0   ;;  %s2780_s24 = smov 0  }
   0x2   :  { %s2782_s25 = smov 0  }
   0x3 LB: > { %s26_s26 = sadd.s32 1, %s2729_s23  ;;  %s29_s27 = sadd.s32 1, %s2733_s24  ;;  %s2737_s25 = sphi %s2782_s25, %s17_s25   ;;  %s2733_s24 = sphi %s2780_s24, %s4621_s24   ;;  %s2729_s23 = sphi %s2778_s23, %s4620_s23   ;;  %s2725_s22 = sphi %s2776_s22, %s4619_s22   ;;  %s2721_s21 = sphi %s2774_s21, %s4618_s21  }
   0x4   : > { %p27_p0 = scmp.ge.s32.totalorder %s26_s26, 2  ;;  %p2000_p1 = scmp.ge.s32.totalorder %s2737_s25, 1 }
   0x5   : > { %p197_p2 = scmp.lt.s32.totalorder %s2737_s25, 5 }
   0x6   : > { %s4623_s26 = smov (%p27_p0, %s26_s26), 0  ;;  %s4625_s27 = smov (!%p27_p0, %s29_s27), %s2733_s24 }
   0x7   : > { %p198_p3 = pnand %p2000_p1, %p197_p2  ;;  %p31_p4 = scmp.ge.s32.totalorder %s4625_s27, 2 }
   0x9   : > { %s4627_s27 = smov (%p31_p4, %s4625_s27), 0  ;;  %201 = sbr.rel (%p198_p3) target bundleno = 476 (0x1dc), region = 36 }
  0x10   : > { %s2809_s28 = sshll.u32 %s2721_s21, 3  ;;  %p234_p5 = scmp.lt.s32.totalorder %s2725_s22, 1 }
  0x11   : > { %p236_p6 = scmp.lt.s32.totalorder %s2809_s28, 15  ;;  %p246_p7 = scmp.lt.s32.totalorder %s2721_s21, 1 }
  0x12   : > { %s235_s29 = scalar_select %p234_p5, %s2725_s22, 1 }
  0x13   : > { %s237_s30 = scalar_select %p236_p6, %s2809_s28, 15 }
  0x14   : > { %s2003_s7 = sshll.u32 %s235_s29, 5  ;;  %s2008_s9 = smul.u32 192, %s2721_s21 }
  0x15   : > { %s2002_s8 = sshll.u32 %s237_s30, 1  ;;  %s254_s11 = smul.u32 432, %s2725_s22 }
  0x16   : > { %s240_s10 = sadd.s32 %s2003_s7, %s2002_s8  ;;  %s2005_s13 = sshll.u32 %s235_s29, 1 }
  0x17   : > { %s2004_s12 = sshll.u32 %s240_s10, 3  ;;  %s255_s17 = sadd.s32 %s2008_s9, %s254_s11 }
  0x18   : > { %s2821_s16 = scalar_lea.vmem %s4430_s5, %s2004_s12  ;;  %s4629_s21 = smov (!%p246_p7, %s2721_s21), 1 }
  0x19   : > { %s2827_s20 = scalar_lea.vmem %s4425_s0, %s255_s17  ;;  %s249_s22 = sadd.s32 %s2005_s13, %s4629_s21 }
  0x1a   : > { %v312_v0 = vld [vmem:[%s2827_s20] sm:$0xff]  ;;  %v314_v1 = vld [vmem:[%s2827_s20 + $0x8] sm:$0xff]  ;;  %v316_v2 = vld [vmem:[%s2827_s20 + $0x18] sm:$0xff]  ;;  %s2006_s29 = sshll.u32 %s249_s22, 1 }
  0x1b   : > { %313 = vst [vmem:[#allocation2] sm:$0xff] %v312_v0  ;;  %315 = vst [vmem:[#allocation2 + $0x8] sm:$0xff] %v314_v1  ;;  %v318_v3 = vld [vmem:[%s2827_s20 + $0x20] sm:$0xff]  ;;  %v320_v4 = vld [vmem:[%s2827_s20 + $0x30] sm:$0xff]  ;;  %s2838_s8 = scalar_lea.vmem %s4431_s6, %s2006_s29 }
  0x1c   : > { %317 = vst [vmem:[#allocation2 + $0x18] sm:$0xff] %v316_v2  ;;  %v322_v5 = vld [vmem:[%s2827_s20 + $0x38] sm:$0xff]  ;;  %319 = vst [vmem:[#allocation2 + $0x20] sm:$0xff] %v318_v3  ;;  %v324_v6 = vld [vmem:[%s2827_s20 + $0x48] sm:$0xff] }
  0x1d   : > { %321 = vst [vmem:[#allocation2 + $0x30] sm:$0xff] %v320_v4  ;;  %323 = vst [vmem:[#allocation2 + $0x38] sm:$0xff] %v322_v5  ;;  %v326_v7 = vld [vmem:[%s2827_s20 + $0x50] sm:$0xff]  ;;  %v328_v8 = vld [vmem:[%s2827_s20 + $0x60] sm:$0xff] }
  0x1e   : > { %325 = vst [vmem:[#allocation2 + $0x48] sm:$0xff] %v324_v6  ;;  %327 = vst [vmem:[#allocation2 + $0x50] sm:$0xff] %v326_v7  ;;  %v330_v9 = vld [vmem:[%s2827_s20 + $0x68] sm:$0xff]  ;;  %v332_v10 = vld [vmem:[%s2827_s20 + $0x78] sm:$0xff] }
  0x1f   : > { %329 = vst [vmem:[#allocation2 + $0x60] sm:$0xff] %v328_v8  ;;  %v334_v11 = vld [vmem:[%s2827_s20 + $0x80] sm:$0xff]  ;;  %331 = vst [vmem:[#allocation2 + $0x68] sm:$0xff] %v330_v9  ;;  %v336_v12 = vld [vmem:[%s2827_s20 + $0x90] sm:$0xff] }
  0x20   : > { %333 = vst [vmem:[#allocation2 + $0x78] sm:$0xff] %v332_v10  ;;  %335 = vst [vmem:[#allocation2 + $0x80] sm:$0xff] %v334_v11  ;;  %v338_v13 = vld [vmem:[%s2827_s20 + $0x98] sm:$0xff]  ;;  %v340_v14 = vld [vmem:[%s2827_s20 + $0xa8] sm:$0xff] }
  0x21   : > { %337 = vst [vmem:[#allocation2 + $0x90] sm:$0xff] %v336_v12  ;;  %339 = vst [vmem:[#allocation2 + $0x98] sm:$0xff] %v338_v13  ;;  %v342_v15 = vld [vmem:[%s2827_s20 + $0xb0] sm:$0xff]  ;;  %v344_v16 = vld [vmem:[%s2827_s20 + $0xc0] sm:$0xff] }
  0x22   : > { %341 = vst [vmem:[#allocation2 + $0xa8] sm:$0xff] %v340_v14  ;;  %v346_v17 = vld [vmem:[%s2827_s20 + $0xc8] sm:$0xff]  ;;  %343 = vst [vmem:[#allocation2 + $0xb0] sm:$0xff] %v342_v15  ;;  %v348_v18 = vld [vmem:[%s2827_s20 + $0xd8] sm:$0xff] }
  0x23   : > { %345 = vst [vmem:[#allocation2 + $0xc0] sm:$0xff] %v344_v16  ;;  %347 = vst [vmem:[#allocation2 + $0xc8] sm:$0xff] %v346_v17  ;;  %v350_v19 = vld [vmem:[%s2827_s20 + $0xe0] sm:$0xff]  ;;  %v2009_v20 = vld [vmem:[%s2827_s20 + $0x10] sm:$0x3] }
  0x24   : > { %349 = vst [vmem:[#allocation2 + $0xd8] sm:$0xff] %v348_v18  ;;  %351 = vst [vmem:[#allocation2 + $0xe0] sm:$0xff] %v350_v19  ;;  %v2010_v21 = vld [vmem:[%s2827_s20 + $0x28] sm:$0x3]  ;;  %v2011_v22 = vld [vmem:[%s2827_s20 + $0x40] sm:$0x3] }
  0x25   : > { %362 = vst [vmem:[#allocation2 + $0x10] sm:$0x3] %v2009_v20  ;;  %v2012_v23 = vld [vmem:[%s2827_s20 + $0x58] sm:$0x3]  ;;  %364 = vst [vmem:[#allocation2 + $0x28] sm:$0x3] %v2010_v21 }
  0x26   : > { %366 = vst [vmem:[#allocation2 + $0x40] sm:$0x3] %v2011_v22  ;;  %368 = vst [vmem:[#allocation2 + $0x58] sm:$0x3] %v2012_v23  ;;  %v2013_v24 = vld [vmem:[%s2827_s20 + $0x70] sm:$0x3] }
  0x27   : > { %v2014_v25 = vld [vmem:[%s2827_s20 + $0x88] sm:$0x3]  ;;  %v2015_v26 = vld [vmem:[%s2827_s20 + $0xa0] sm:$0x3]  ;;  %370 = vst [vmem:[#allocation2 + $0x70] sm:$0x3] %v2013_v24 }
  0x28   : > { %372 = vst [vmem:[#allocation2 + $0x88] sm:$0x3] %v2014_v25  ;;  %374 = vst [vmem:[#allocation2 + $0xa0] sm:$0x3] %v2015_v26  ;;  %v2016_v27 = vld [vmem:[%s2827_s20 + $0xb8] sm:$0x3] }
  0x29   : > { %v2017_v28 = vld [vmem:[%s2827_s20 + $0xd0] sm:$0x3]  ;;  %v2018_v29 = vld [vmem:[%s2827_s20 + $0xe8] sm:$0x3]  ;;  %376 = vst [vmem:[#allocation2 + $0xb8] sm:$0x3] %v2016_v27 }
  0x2a   : > { %378 = vst [vmem:[#allocation2 + $0xd0] sm:$0x3] %v2017_v28  ;;  %380 = vst [vmem:[#allocation2 + $0xe8] sm:$0x3] %v2018_v29 }
  0x2b   : > { %384 = vsyncadd [#allocation3], 2880 }
  0x2c   : > { %2717 = dma.done.wait [#allocation3], 2880 }
  0x2d   : > { %2718 = vsyncadd [#allocation3], 4294964416  ;;  %v911_v30 = vld [vmem:[%s4426_s1 + $0x80] sm:$0xff]  ;;  %v912_v31 = vld [vmem:[%s4426_s1 + $0x88] sm:$0xff]  ;;  %v533_v0 = vlaneseq  ;;  %v2946_v5 = vstv %s2809_s28  ;;  %vm4444_vm8 = vcmask 1046528   ;;  %vm4445_vm9 = vcmask 1045504  }
  0x2e   : > { %v943_v32 = vld [vmem:[%s4426_s1 + $0x180] sm:$0xff]  ;;  %v2481_v33 = vpack.c.bf16 %v912_v31, %v911_v30  ;;  %v944_v34 = vld [vmem:[%s4426_s1 + $0x188] sm:$0xff]  ;;  %v913_v41 = vld [vmem:[%s4426_s1 + $0x90] sm:$0xff]  ;;  %v524_v11 = vadd.s32 1, %v2946_v5  ;;  %vm537_vm0 = vcmp.gt.s32.totalorder %v2946_v5, 0  ;;  %vm547_vm1 = vcmp.lt.s32.totalorder %v2946_v5, 17 }
  0x2f   : > { %v895_v35 = vld [vmem:[%s4426_s1] sm:$0xff]  ;;  %v896_v36 = vld [vmem:[%s4426_s1 + $0x8] sm:$0xff]  ;;  %v2513_v37 = vpack.c.bf16 %v944_v34, %v943_v32  ;;  %v914_v43 = vld [vmem:[%s4426_s1 + $0x98] sm:$0xff]  ;;  %v2976_v19 = vshrl.u32 %v533_v0, 7  ;;  %v3103_v0 = vadd.s32 5, %v2946_v5 }
  0x30   : > { %v2483_v38 = vpack.c.bf16 %v896_v36, %v895_v35  ;;  %v927_v39 = vld [vmem:[%s4426_s1 + $0x100] sm:$0xff]  ;;  %v928_v40 = vld [vmem:[%s4426_s1 + $0x108] sm:$0xff]  ;;  %2482 = vmatprep.subr.bf16.mxu0 %v2481_v33  ;;  %v945_v44 = vld [vmem:[%s4426_s1 + $0x190] sm:$0xff]  ;;  %v2485_v46 = vpack.c.bf16 %v914_v43, %v913_v41  ;;  %vm538_vm2 = vcmp.gt.s32.totalorder %v524_v11, 0  ;;  %vm548_vm3 = vcmp.lt.s32.totalorder %v524_v11, 17 }
  0x31   : > { %v2515_v42 = vpack.c.bf16 %v928_v40, %v927_v39  ;;  %v946_v45 = vld [vmem:[%s4426_s1 + $0x198] sm:$0xff]  ;;  %2514 = vmatprep.subr.bf16.mxu1 %v2513_v37  ;;  %v897_v48 = vld [vmem:[%s4426_s1 + $0x10] sm:$0xff]  ;;  %v915_v53 = vld [vmem:[%s4426_s1 + $0xa0] sm:$0xff]  ;;  %vm4440_vm5 = vcmp.gt.s32.totalorder %v2976_v19, 0 }
  0x32   : > { %2484 = vmatpush3.bf16.msra.mxu0 %v2483_v38  ;;  %v2517_v47 = vpack.c.bf16 %v946_v45, %v945_v44  ;;  %v898_v49 = vld [vmem:[%s4426_s1 + $0x18] sm:$0xff]  ;;  %v929_v50 = vld [vmem:[%s4426_s1 + $0x110] sm:$0xff]  ;;  %v916_v54 = vld [vmem:[%s4426_s1 + $0xa8] sm:$0xff] }
  0x33   : > { %2516 = vmatpush3.bf16.msra.mxu1 %v2515_v42  ;;  %v2487_v51 = vpack.c.bf16 %v898_v49, %v897_v48  ;;  %v930_v52 = vld [vmem:[%s4426_s1 + $0x118] sm:$0xff]  ;;  %2486 = vmatprep.subr.bf16.mxu0 %v2485_v46  ;;  %v2489_v56 = vpack.c.bf16 %v916_v54, %v915_v53  ;;  %v947_v57 = vld [vmem:[%s4426_s1 + $0x1a0] sm:$0xff]  ;;  %v948_v58 = vld [vmem:[%s4426_s1 + $0x1a8] sm:$0xff] }
  0x34   : > { %2518 = vmatprep.subr.bf16.mxu1 %v2517_v47  ;;  %v2519_v55 = vpack.c.bf16 %v930_v52, %v929_v50  ;;  %v899_v59 = vld [vmem:[%s4426_s1 + $0x20] sm:$0xff]  ;;  %v2521_v60 = vpack.c.bf16 %v948_v58, %v947_v57  ;;  %v900_v61 = vld [vmem:[%s4426_s1 + $0x28] sm:$0xff]  ;;  %v917_v2 = vld [vmem:[%s4426_s1 + $0xb0] sm:$0xff]  ;;  %v3051_v47 = vadd.s32 2, %v2946_v5  ;;  %v3092_v57 = vadd.s32 4, %v2946_v5 }
  0x35   : > { %v931_v62 = vld [vmem:[%s4426_s1 + $0x120] sm:$0xff]  ;;  %v932_v63 = vld [vmem:[%s4426_s1 + $0x128] sm:$0xff]  ;;  %v2491_v1 = vpack.c.bf16 %v900_v61, %v899_v59  ;;  %v918_v3 = vld [vmem:[%s4426_s1 + $0xb8] sm:$0xff] }
  0x36   : > { %2488 = vmatpush3.bf16.msra.mxu0 %v2487_v51  ;;  %v949_v4 = vld [vmem:[%s4426_s1 + $0x1b0] sm:$0xff]  ;;  %v2523_v6 = vpack.c.bf16 %v932_v63, %v931_v62  ;;  %v2493_v7 = vpack.c.bf16 %v918_v3, %v917_v2  ;;  %v950_v8 = vld [vmem:[%s4426_s1 + $0x1b8] sm:$0xff]  ;;  %v919_v15 = vld [vmem:[%s4426_s1 + $0xc0] sm:$0xff]  ;;  %v3100_v63 = vadd.s32 16, %v2976_v19  ;;  %vm539_vm10 = vcmp.gt.s32.totalorder %v3051_v47, 0 }
  0x37   : > { %2520 = vmatpush3.bf16.msra.mxu1 %v2519_v55  ;;  %2490 = vmatprep.subr.bf16.mxu0 %v2489_v56  ;;  %v901_v9 = vld [vmem:[%s4426_s1 + $0x30] sm:$0xff]  ;;  %v902_v10 = vld [vmem:[%s4426_s1 + $0x38] sm:$0xff]  ;;  %v2525_v12 = vpack.c.bf16 %v950_v8, %v949_v4  ;;  %v920_v16 = vld [vmem:[%s4426_s1 + $0xc8] sm:$0xff]  ;;  %v3089_v56 = vadd.s32 3, %v2946_v5  ;;  %vm549_vm11 = vcmp.lt.s32.totalorder %v3051_v47, 17 }
  0x38   : > { %2522 = vmatprep.subr.bf16.mxu1 %v2521_v60  ;;  %v933_v13 = vld [vmem:[%s4426_s1 + $0x130] sm:$0xff]  ;;  %v934_v14 = vld [vmem:[%s4426_s1 + $0x138] sm:$0xff]  ;;  %v951_v17 = vld [vmem:[%s4426_s1 + $0x1c0] sm:$0xff]  ;;  %v2495_v20 = vpack.c.bf16 %v902_v10, %v901_v9  ;;  %v2497_v22 = vpack.c.bf16 %v920_v16, %v919_v15  ;;  %vm4446_vm12 = vcmp.lt.s32.totalorder %v3100_v63, 17 }
  0x39   : > { %v952_v18 = vld [vmem:[%s4426_s1 + $0x1c8] sm:$0xff]  ;;  %v2527_v21 = vpack.c.bf16 %v934_v14, %v933_v13  ;;  %v903_v23 = vld [vmem:[%s4426_s1 + $0x40] sm:$0xff]  ;;  %v921_v28 = vld [vmem:[%s4426_s1 + $0xd0] sm:$0xff]  ;;  %vm540_vm14 = vcmp.gt.s32.totalorder %v3089_v56, 0  ;;  %vm550_vm15 = vcmp.lt.s32.totalorder %v3089_v56, 17 }
  0x3a   : > { %2492 = vmatpush3.bf16.msra.mxu0 %v2491_v1  ;;  %v904_v24 = vld [vmem:[%s4426_s1 + $0x48] sm:$0xff]  ;;  %v935_v25 = vld [vmem:[%s4426_s1 + $0x140] sm:$0xff]  ;;  %v2529_v26 = vpack.c.bf16 %v952_v18, %v951_v17  ;;  %v922_v29 = vld [vmem:[%s4426_s1 + $0xd8] sm:$0xff] }
  0x3b   : > { %2524 = vmatpush3.bf16.msra.mxu1 %v2523_v6  ;;  %2494 = vmatprep.subr.bf16.mxu0 %v2493_v7  ;;  %v936_v27 = vld [vmem:[%s4426_s1 + $0x148] sm:$0xff]  ;;  %v953_v30 = vld [vmem:[%s4426_s1 + $0x1d0] sm:$0xff]  ;;  %v954_v31 = vld [vmem:[%s4426_s1 + $0x1d8] sm:$0xff]  ;;  %v2499_v33 = vpack.c.bf16 %v904_v24, %v903_v23  ;;  %v2501_v38 = vpack.c.bf16 %v922_v29, %v921_v28 }
  0x3c   : > { %2526 = vmatprep.subr.bf16.mxu1 %v2525_v12  ;;  %vm3008_vm4 = vmand %vm537_vm0, %vm547_vm1  ;;  %v905_v34 = vld [vmem:[%s4426_s1 + $0x50] sm:$0xff]  ;;  %v906_v35 = vld [vmem:[%s4426_s1 + $0x58] sm:$0xff]  ;;  %v2531_v37 = vpack.c.bf16 %v936_v27, %v935_v25  ;;  %v2533_v42 = vpack.c.bf16 %v954_v31, %v953_v30 }
  0x3d   : > { %vm3020_vm6 = vmand %vm538_vm2, %vm548_vm3  ;;  %v937_v39 = vld [vmem:[%s4426_s1 + $0x150] sm:$0xff]  ;;  %v938_v40 = vld [vmem:[%s4426_s1 + $0x158] sm:$0xff]  ;;  %v2503_v52 = vpack.c.bf16 %v906_v35, %v905_v34 }
  0x3e   : > { %2496 = vmatpush3.bf16.msra.mxu0 %v2495_v20  ;;  %v923_v41 = vld [vmem:[%s4426_s1 + $0xe0] sm:$0xff]  ;;  %v924_v43 = vld [vmem:[%s4426_s1 + $0xe8] sm:$0xff]  ;;  %vm3046_vm7 = vmand %vm3008_vm4, %vm4440_vm5  ;;  %v2535_v58 = vpack.c.bf16 %v938_v40, %v937_v39 }
  0x3f   : > { %2528 = vmatpush3.bf16.msra.mxu1 %v2527_v21  ;;  %2498 = vmatprep.subr.bf16.mxu0 %v2497_v22  ;;  %v955_v44 = vld [vmem:[%s4426_s1 + $0x1e0] sm:$0xff]  ;;  %v956_v45 = vld [vmem:[%s4426_s1 + $0x1e8] sm:$0xff]  ;;  %v3076_v53 = vld [vmem:[%s4426_s1 + $0xf0] sm:$0xff]  ;;  %v2505_v59 = vpack.c.bf16 %v924_v43, %v923_v41 }
  0x40   : > { %2530 = vmatprep.subr.bf16.mxu1 %v2529_v26  ;;  %v3056_v48 = vld [vmem:[%s4426_s1 + $0x60] sm:$0xff]  ;;  %v3061_v49 = vld [vmem:[%s4426_s1 + $0x68] sm:$0xff]  ;;  %v3081_v54 = vld [vmem:[%s4426_s1 + $0xf8] sm:$0xff]  ;;  %v2537_v1 = vpack.c.bf16 %v956_v45, %v955_v44 }
  0x41   : > { %v3066_v50 = vld [vmem:[%s4426_s1 + $0x160] sm:$0xff]  ;;  %v3071_v51 = vld [vmem:[%s4426_s1 + $0x168] sm:$0xff]  ;;  %v3086_v55 = vld [vmem:[%s4426_s1 + $0x1f0] sm:$0xff]  ;;  %v2507_v12 = vpack.c.bf16 %v3061_v49, %v3056_v48  ;;  %v2509_v14 = vpack.c.bf16 %v3081_v54, %v3076_v53 }
  0x42   : > { %2500 = vmatpush3.bf16.msra.mxu0 %v2499_v33  ;;  %v3097_v60 = vld [vmem:[%s4426_s1 + $0x1f8] sm:$0xff]  ;;  %v389_v61 = vld [vmem:[#allocation2] sm:$0xff]  ;;  %v390_v62 = vld [vmem:[#allocation2 + $0x8] sm:$0xff]  ;;  %v2539_v13 = vpack.c.bf16 %v3071_v51, %v3066_v50 }
  0x43   : > { %2532 = vmatpush3.bf16.msra.mxu1 %v2531_v37  ;;  %2502 = vmatprep.subr.bf16.mxu0 %v2501_v38  ;;  %v3108_v2 = vld [vmem:[%s4428_s3] ss:$0 sm:$0xff]  ;;  %v392_v4 = vld [vmem:[#allocation2 + $0x18] sm:$0xff]  ;;  %v3119_v6 = vld [vmem:[%s4426_s1 + $0x70] sm:$0xff]  ;;  %v2541_v15 = vpack.c.bf16 %v3097_v60, %v3086_v55 }
  0x44   : > { %2534 = vmatprep.subr.bf16.mxu1 %v2533_v42  ;;  %v3113_v3 = vld [vmem:[%s4429_s4] ss:$0 sm:$0xff]  ;;  %v3124_v7 = vld [vmem:[%s4426_s1 + $0x78] sm:$0xff]  ;;  %v3129_v8 = vld [vmem:[%s4426_s1 + $0x170] sm:$0xff]  ;;  %v426_v9 = vmul.f32 %v3108_v2, %v389_v61  ;;  %v427_v10 = vmul.f32 %v3108_v2, %v390_v62  ;;  %v429_v11 = vmul.f32 %v3108_v2, %v392_v4 }
  0x45   : > { %v942_v16 = vld [vmem:[%s4426_s1 + $0x178] sm:$0xff]  ;;  %v3149_v17 = vld [vmem:[%s4426_s1 + $0x280] sm:$0xff]  ;;  %v391_v18 = vld [vmem:[#allocation2 + $0x10] sm:$0x3]  ;;  %v2511_v26 = vpack.c.bf16 %v3124_v7, %v3119_v6 }
  0x46   : > { %2504 = vmatpush3.bf16.msra.mxu0 %v2503_v52  ;;  %v3152_v20 = vadd.f32 %v3113_v3, %v426_v9  ;;  %v3155_v21 = vadd.f32 %v3113_v3, %v427_v10  ;;  %v466_v22 = vadd.f32 %v3113_v3, %v429_v11  ;;  %v976_v23 = vld [vmem:[%s4426_s1 + $0x288] sm:$0xff]  ;;  %v393_v24 = vld [vmem:[#allocation2 + $0x20] sm:$0xff]  ;;  %v395_v25 = vld [vmem:[#allocation2 + $0x30] sm:$0xff]  ;;  %v428_v29 = vmul.f32 %v3108_v2, %v391_v18 }
  0x47   : > { %2536 = vmatpush3.bf16.msra.mxu1 %v2535_v58  ;;  %2506 = vmatprep.subr.bf16.mxu0 %v2505_v59  ;;  %vm3168_vm13 = vmand %vm3020_vm6, %vm4440_vm5  ;;  %v3175_v28 = vld [vmem:[%s4426_s1 + $0x200] sm:$0xff]  ;;  %v430_v30 = vmul.f32 %v3108_v2, %v393_v24  ;;  %v432_v31 = vmul.f32 %v3108_v2, %v395_v25  ;;  %v2543_v33 = vpack.c.bf16 %v942_v16, %v3129_v8  ;;  %v960_v38 = vld [vmem:[%s4426_s1 + $0x208] sm:$0xff] }
  0x48   : > { %2538 = vmatprep.subr.bf16.mxu1 %v2537_v1  ;;  %v493_v34 = vmax.f32 %v3152_v20, 0.0  ;;  %v494_v35 = vmax.f32 %v3155_v21, 0.0  ;;  %v3185_v37 = vmax.f32 %v466_v22, 0.0  ;;  %v3193_v39 = vld [vmem:[%s4426_s1 + $0x290] sm:$0xff]  ;;  %v3198_v40 = vld [vmem:[%s4426_s1 + $0x298] sm:$0xff]  ;;  %v2545_v41 = vpack.c.bf16 %v976_v23, %v3149_v17  ;;  %vm3219_vm0 = vmand %vm3008_vm4, %vm4446_vm12 }
  0x49   : > { %v465_v42 = vadd.f32 %v3113_v3, %v428_v29  ;;  %v467_v43 = vadd.f32 %v3113_v3, %v430_v30  ;;  %v469_v44 = vadd.f32 %v3113_v3, %v432_v31  ;;  %v394_v45 = vld [vmem:[#allocation2 + $0x28] sm:$0x3]  ;;  %v396_v53 = vld [vmem:[#allocation2 + $0x38] sm:$0xff]  ;;  %v2547_v58 = vpack.c.bf16 %v960_v38, %v3175_v28  ;;  %vm3232_vm1 = vmand %vm539_vm10, %vm549_vm11 }
  0x4a   : > { %2508 = vmatpush3.bf16.msra.mxu0 %v2507_v12  ;;  %v693_v48 = vsel %vm3046_vm7, %v493_v34, 0.0  ;;  %v694_v49 = vsel %vm3008_vm4, %v494_v35, 0.0  ;;  %v3213_v50 = vsel %vm3168_vm13, %v3185_v37, 0.0  ;;  %v431_v52 = vmul.f32 %v3108_v2, %v394_v45  ;;  %2038 = vmatprep.mubr.msk.f32.mxu1 %vm3168_vm13, %v3185_v37  ;;  %v398_v6 = vld [vmem:[#allocation2 + $0x48] sm:$0xff]  ;;  %v3245_v47 = vld [vmem:[%s4426_s1 + $0x210] sm:$0xff]  ;;  %v3250_v9 = vld [vmem:[%s4426_s1 + $0x218] sm:$0xff] }
  0x4b   : > { %2540 = vmatpush3.bf16.msra.mxu1 %v2539_v13  ;;  %2510 = vmatprep.subr.bf16.mxu0 %v2509_v14  ;;  %v748_v54 = vrot.slane %v693_v48, 1  ;;  %v749_v55 = vrot.slane %v694_v49, 1  ;;  %v2549_v60 = vpack.c.bf16 %v3198_v40, %v3193_v39  ;;  %v805_v61 = vrot.slane %v693_v48, 2  ;;  %vm3268_vm2 = vmand %vm3232_vm1, %vm4440_vm5  ;;  %v979_v28 = vld [vmem:[%s4426_s1 + $0x2a0] sm:$0xff]  ;;  %v980_v29 = vld [vmem:[%s4426_s1 + $0x2a8] sm:$0xff] }
  0x4c   : > { %2542 = vmatprep.subr.bf16.mxu1 %v2541_v15  ;;  %v806_v62 = vrot.slane %v694_v49, 2  ;;  %v495_v1 = vmax.f32 %v465_v42, 0.0  ;;  %v3238_v4 = vmax.f32 %v467_v43, 0.0  ;;  %v753_v8 = vrot.slane %v3213_v50, 1  ;;  %vm3277_vm3 = vmand %vm3020_vm6, %vm4446_vm12  ;;  %v1007_v30 = vld [vmem:[%s4426_s1 + $0x380] sm:$0xff]  ;;  %v1008_v38 = vld [vmem:[%s4426_s1 + $0x388] sm:$0xff] }
  0x4d   : > { %v750_v7 = vsel %vm4444_vm8, %v748_v54, %v749_v55  ;;  %v468_v10 = vadd.f32 %v3113_v3, %v431_v52  ;;  %v433_v11 = vmul.f32 %v3108_v2, %v396_v53  ;;  %v3262_v15 = vmax.f32 %v469_v44, 0.0  ;;  %v991_v39 = vld [vmem:[%s4426_s1 + $0x300] sm:$0xff]  ;;  %v992_v40 = vld [vmem:[%s4426_s1 + $0x308] sm:$0xff]  ;;  %vm3330_vm11 = vmand %vm540_vm14, %vm550_vm15 }
  0x4e   : > { %2512 = vmatpush3.bf16.msra.mxu0 %v2511_v26  ;;  %1110 = vmatprep.mubr.f32.mxu0 %v750_v7  ;;  %v807_v12 = vsel %vm4445_vm9, %v805_v61, %v806_v62  ;;  %v695_v13 = vsel %vm3219_vm0, %v495_v1, 0.0  ;;  %v3260_v14 = vsel %vm3020_vm6, %v3238_v4, 0.0  ;;  %v435_v23 = vmul.f32 %v3108_v2, %v398_v6  ;;  %v3337_v48 = vld [vmem:[%s4426_s1 + $0x220] sm:$0xff]  ;;  %v964_v49 = vld [vmem:[%s4426_s1 + $0x228] sm:$0xff]  ;;  %v399_v54 = vld [vmem:[#allocation2 + $0x50] sm:$0xff] }
  0x4f   : > { %2544 = vmatpush3.bf16.msra.mxu1 %v2543_v33  ;;  %2546 = vmatprep.subr.bf16.mxu0 %v2545_v41  ;;  %v751_v17 = vrot.slane %v695_v13, 1  ;;  %v808_v18 = vrot.slane %v695_v13, 2  ;;  %v754_v20 = vrot.slane %v3260_v14, 1  ;;  %vm541_vm10 = vcmp.gt.s32.totalorder %v3092_v57, 0  ;;  %v397_v56 = vld [vmem:[#allocation2 + $0x40] sm:$0x3] }
  0x50   : > { %v2551_v24 = vpack.c.bf16 %v3250_v9, %v3245_v47  ;;  %v498_v25 = vmax.f32 %v468_v10, 0.0  ;;  %v470_v26 = vadd.f32 %v3113_v3, %v433_v11  ;;  %v810_v46 = vrot.slane %v3213_v50, 2  ;;  %v981_v7 = vld [vmem:[%s4426_s1 + $0x2b0] sm:$0xff]  ;;  %v966_v22 = vld [vmem:[%s4426_s1 + $0x238] sm:$0xff]  ;;  %v1032_v59 = vld [vmem:[%s4426_s1 + $0x448] sm:$0xff] }
  0x51   : > { %2022 = vmatmul.mubr.msk.f32.vlgmr.msra.gmra.mrb[0].mxu0 %vm3046_vm7, %v493_v34  ;;  %vm551_vm7 = vcmp.lt.s32.totalorder %v3092_v57, 17  ;;  %v752_v31 = vsel %vm4444_vm8, %v749_v55, %v751_v17  ;;  %v811_v33 = vrot.slane %v3260_v14, 2  ;;  %v3304_v34 = vsel %vm3268_vm2, %v3262_v15, 0.0  ;;  %v401_v55 = vld [vmem:[#allocation2 + $0x60] sm:$0xff]  ;;  %v1009_v11 = vld [vmem:[%s4426_s1 + $0x390] sm:$0xff] }
  0x52   : > { %1256 = vmatmul.mubr.f32.vlgmr.msra.gmra.mrb[0].mxu1 %v807_v12  ;;  %2548 = vmatpush3.bf16.msra.mxu0 %v2547_v58  ;;  %v809_v41 = vsel %vm4445_vm9, %v806_v62, %v808_v18  ;;  %v3320_v42 = vsel %vm4444_vm8, %v753_v8, %v754_v20  ;;  %v698_v43 = vsel %vm3277_vm3, %v498_v25, 0.0  ;;  %v3324_v44 = vmax.f32 %v470_v26, 0.0  ;;  %v982_v8 = vld [vmem:[%s4426_s1 + $0x2b8] sm:$0xff]  ;;  %v3391_v13 = vld [vmem:[%s4426_s1 + $0x230] sm:$0xff]  ;;  %vm3458_vm0 = vmand %vm541_vm10, %vm551_vm7 }
  0x53   : > { %1115 = vmatprep.mubr.f32.mxu0 %v752_v31  ;;  %2039 = vmatprep.mubr.msk.f32.mxu1 %vm3020_vm6, %v3238_v4  ;;  %v4493_v45 = vmov 0  ;;  %v756_v50 = vrot.slane %v698_v43, 1  ;;  %v813_v51 = vrot.slane %v698_v43, 2  ;;  %v472_v52 = vadd.f32 %v3113_v3, %v435_v23  ;;  %v1010_v12 = vld [vmem:[%s4426_s1 + $0x398] sm:$0xff]  ;;  %v993_v23 = vld [vmem:[%s4426_s1 + $0x310] sm:$0xff]  ;;  %v402_v31 = vld [vmem:[#allocation2 + $0x68] sm:$0xff] }
  0x54   : > { %v4494_v45 = vsel %vm3330_vm11, 4294967295, %v4493_v45  ;;  %2550 = vmatprep.subr.bf16.mxu0 %v2549_v60  ;;  %v2553_v53 = vpack.c.bf16 %v980_v29, %v979_v28  ;;  %v3350_v58 = vsel %vm3232_vm1, %v3324_v44, 0.0  ;;  %v758_v60 = vrot.slane %v3304_v34, 1  ;;  %vm3533_vm7 = vmand %vm3330_vm11, %vm4446_vm12 }
  0x55   : > { %4495 = vst [vmem:[#allocation6_spill] sm:$0xff] %v4494_v45  ;;  %2023 = vmatmul.mubr.msk.f32.gmra.mrb[2].mxu0 %vm3008_vm4, %v494_v35  ;;  %v2577_v61 = vpack.c.bf16 %v1008_v38, %v1007_v30  ;;  %v2579_v62 = vpack.c.bf16 %v992_v40, %v991_v39  ;;  %v3355_v1 = vsel %vm4445_vm9, %v810_v46, %v811_v33  ;;  %v759_v32 = vrot.slane %v3350_v58, 1  ;;  %vm3365_vm4 = vmand %vm3330_vm11, %vm4440_vm5  ;;  %v400_v46 = vld [vmem:[#allocation2 + $0x58] sm:$0x3]  ;;  %v983_v40 = vld [vmem:[%s4426_s1 + $0x2c0] sm:$0xff] }
  0x56   : > { %1261 = vmatmul.mubr.f32.gmra.mrb[2].mxu1 %v809_v41  ;;  %1120 = vmatprep.mubr.f32.mxu0 %v3320_v42  ;;  %v3358_v21 = vsel %vm4444_vm8, %v754_v20, %v756_v50  ;;  %v2555_v6 = vpack.c.bf16 %v964_v49, %v3337_v48  ;;  %v434_v47 = vmul.f32 %v3108_v2, %v397_v56  ;;  %v3394_v14 = vadd.s32 6, %v2946_v5  ;;  %v984_v41 = vld [vmem:[%s4426_s1 + $0x2c8] sm:$0xff]  ;;  %v1034_v35 = vld [vmem:[%s4426_s1 + $0x458] sm:$0xff] }
  0x57   : > { %2040 = vmatprep.mubr.msk.f32.mxu1 %vm3268_vm2, %v3262_v15  ;;  %2552 = vmatpush3.bf16.msra.mxu0 %v2551_v24  ;;  %v436_v9 = vmul.f32 %v3108_v2, %v399_v54  ;;  %v438_v10 = vmul.f32 %v3108_v2, %v401_v55  ;;  %v3397_v17 = vsel %vm4445_vm9, %v811_v33, %v813_v51  ;;  %v3399_v18 = vmax.f32 %v472_v52, 0.0  ;;  %v994_v24 = vld [vmem:[%s4426_s1 + $0x318] sm:$0xff] }
  0x58   : > { %v815_v20 = vrot.slane %v3304_v34, 2  ;;  %2554 = vmatprep.subr.bf16.mxu0 %v2553_v53  ;;  %2578 = vmatprep.subr.bf16.mxu1 %v2577_v61  ;;  %v3412_v25 = vadd.s32 7, %v2946_v5  ;;  %v3420_v26 = vsel %vm4444_vm8, %v758_v60, %v759_v32  ;;  %v816_v28 = vrot.slane %v3350_v58, 2  ;;  %v404_v33 = vld [vmem:[#allocation2 + $0x78] sm:$0xff] }
  0x59   : > { %2024 = vmatmul.mubr.msk.f32.gmra.mrb[4].mxu0 %vm3168_vm13, %v3185_v37  ;;  %2580 = vmatpush3.bf16.msra.mxu1 %v2579_v62  ;;  %v471_v29 = vadd.f32 %v3113_v3, %v434_v47  ;;  %v473_v30 = vadd.f32 %v3113_v3, %v436_v9  ;;  %vm542_vm14 = vcmp.gt.s32.totalorder %v3103_v0, 0  ;;  %vm552_vm15 = vcmp.lt.s32.totalorder %v3103_v0, 17  ;;  %vm3433_vm13 = vmand %vm3232_vm1, %vm4446_vm12  ;;  %v1011_v62 = vld [vmem:[%s4426_s1 + $0x3a0] sm:$0xff]  ;;  %v1012_v47 = vld [vmem:[%s4426_s1 + $0x3a8] sm:$0xff] }
  0x5a   : > { %1266 = vmatmul.mubr.f32.gmra.mrb[4].mxu1 %v3355_v1  ;;  %1125 = vmatprep.mubr.f32.mxu0 %v3358_v21  ;;  %v3440_v37 = vsel %vm3365_vm4, %v3399_v18, 0.0  ;;  %v475_v34 = vadd.f32 %v3113_v3, %v438_v10  ;;  %v2557_v38 = vpack.c.bf16 %v982_v8, %v981_v7  ;;  %v2581_v39 = vpack.c.bf16 %v1010_v12, %v1009_v11  ;;  %v967_v9 = vld [vmem:[%s4426_s1 + $0x240] sm:$0xff] }
  0x5b   : > { %2041 = vmatprep.mubr.msk.f32.mxu1 %vm3232_vm1, %v3324_v44  ;;  %2556 = vmatpush3.bf16.msra.mxu0 %v2555_v6  ;;  %v501_v43 = vmax.f32 %v471_v29, 0.0  ;;  %v3452_v48 = vmax.f32 %v473_v30, 0.0  ;;  %v4500_v49 = vmov 0  ;;  %v2559_v50 = vpack.c.bf16 %v966_v22, %v3391_v13  ;;  %v968_v13 = vld [vmem:[%s4426_s1 + $0x248] sm:$0xff]  ;;  %v995_v22 = vld [vmem:[%s4426_s1 + $0x320] sm:$0xff] }
  0x5c   : > { %v4501_v49 = vsel %vm3458_vm0, 4294967295, %v4500_v49  ;;  %v2583_v51 = vpack.c.bf16 %v994_v24, %v993_v23  ;;  %2558 = vmatprep.subr.bf16.mxu0 %v2557_v38  ;;  %2582 = vmatprep.subr.bf16.mxu1 %v2581_v39  ;;  %v437_v52 = vmul.f32 %v3108_v2, %v400_v46  ;;  %v439_v53 = vmul.f32 %v3108_v2, %v402_v31  ;;  %v996_v23 = vld [vmem:[%s4426_s1 + $0x328] sm:$0xff]  ;;  %v405_v31 = vld [vmem:[#allocation2 + $0x80] sm:$0xff] }
  0x5d   : > { %4502 = vst [vmem:[#allocation7_spill] sm:$0xff] %v4501_v49  ;;  %v441_v56 = vmul.f32 %v3108_v2, %v404_v33  ;;  %v3467_v54 = vadd.s32 8, %v2946_v5  ;;  %2025 = vmatmul.mubr.msk.f32.gmra.mrb[6].mxu0 %vm3020_vm6, %v3238_v4  ;;  %v701_v57 = vsel %vm3433_vm13, %v501_v43, 0.0  ;;  %v3477_v55 = vsel %vm3330_vm11, %v3452_v48, 0.0  ;;  %vm3492_vm6 = vmand %vm3458_vm0, %vm4440_vm5 }
  0x5e   : > { %v763_v60 = vrot.slane %v3440_v37, 1  ;;  %2584 = vmatpush3.bf16.msra.mxu1 %v2583_v51  ;;  %v2561_v61 = vpack.c.bf16 %v984_v41, %v983_v40  ;;  %1130 = vmatprep.mubr.f32.mxu0 %v3420_v26  ;;  %v761_v36 = vrot.slane %v701_v57, 1  ;;  %v818_v4 = vrot.slane %v701_v57, 2  ;;  %v407_v41 = vld [vmem:[#allocation2 + $0x90] sm:$0xff]  ;;  %vm3577_vm13 = vmand %vm542_vm14, %vm552_vm15 }
  0x5f   : > { %1271 = vmatmul.mubr.f32.gmra.mrb[6].mxu1 %v3397_v17  ;;  %v764_v6 = vrot.slane %v3477_v55, 1  ;;  %v3486_v7 = vmax.f32 %v475_v34, 0.0  ;;  %v4504_v8 = vmov 0  ;;  %v3509_v10 = vsel %vm4445_vm9, %v815_v20, %v816_v28  ;;  %2560 = vmatpush3.bf16.msra.mxu0 %v2559_v50  ;;  %vm3617_vm14 = vmand %vm3458_vm0, %vm4446_vm12 }
  0x60   : > { %v4505_v8 = vsel %vm3492_vm6, 4294967295, %v4504_v8  ;;  %2042 = vmatprep.mubr.msk.f32.mxu1 %vm3365_vm4, %v3399_v18  ;;  %v474_v11 = vadd.f32 %v3113_v3, %v437_v52  ;;  %v476_v12 = vadd.f32 %v3113_v3, %v439_v53  ;;  %vm553_vm10 = vcmp.lt.s32.totalorder %v3394_v14, 17  ;;  %2562 = vmatprep.subr.bf16.mxu0 %v2561_v61  ;;  %vm3639_vm15 = vmand %vm3577_vm13, %vm4440_vm5 }
  0x61   : > { %4503 = vst [vmem:[#allocation8_spill] sm:$0xff] %v3486_v7  ;;  %4506 = vst [vmem:[#allocation9_spill] sm:$0xff] %v4505_v8  ;;  %v3526_v20 = vsel %vm4444_vm8, %v759_v32, %v761_v36  ;;  %v820_v24 = vrot.slane %v3440_v37, 2  ;;  %v3540_v30 = vsel %vm3492_vm6, %v3486_v7, 0.0  ;;  %v478_v46 = vadd.f32 %v3113_v3, %v441_v56  ;;  %v403_v32 = vld [vmem:[#allocation2 + $0x70] sm:$0x3]  ;;  %2026 = vmatmul.mubr.msk.f32.gmra.mrb[8].mxu0 %vm3268_vm2, %v3262_v15 }
  0x62   : > { %v3549_v33 = vsel %vm4445_vm9, %v816_v28, %v818_v4  ;;  %v3554_v27 = vsel %vm4444_vm8, %v763_v60, %v764_v6  ;;  %v504_v37 = vmax.f32 %v474_v11, 0.0  ;;  %v3556_v34 = vmax.f32 %v476_v12, 0.0  ;;  %1135 = vmatprep.mubr.f32.mxu0 %v3526_v20  ;;  %v985_v56 = vld [vmem:[%s4426_s1 + $0x2d0] sm:$0xff]  ;;  %v986_v36 = vld [vmem:[%s4426_s1 + $0x2d8] sm:$0xff]  ;;  %v414_v8 = vld [vmem:[#allocation2 + $0xc8] sm:$0xff] }
  0x63   : > { %4509 = vst [vmem:[#allocation10_spill] sm:$0xff] %v3549_v33  ;;  %1276 = vmatmul.mubr.f32.gmra.mrb[8].mxu1 %v3509_v10  ;;  %v821_v38 = vrot.slane %v3477_v55, 2  ;;  %v2585_v39 = vpack.c.bf16 %v1012_v47, %v1011_v62  ;;  %v2563_v40 = vpack.c.bf16 %v968_v13, %v967_v9  ;;  %v2587_v58 = vpack.c.bf16 %v996_v23, %v995_v22  ;;  %v1014_v4 = vld [vmem:[%s4426_s1 + $0x3b8] sm:$0xff]  ;;  %v997_v22 = vld [vmem:[%s4426_s1 + $0x330] sm:$0xff] }
  0x64   : > { %4510 = vst [vmem:[#allocation11_spill] sm:$0xff] %v3556_v34  ;;  %2043 = vmatprep.mubr.msk.f32.mxu1 %vm3330_vm11, %v3452_v48  ;;  %v704_v28 = vsel %vm3533_vm7, %v504_v37, 0.0  ;;  %v3569_v43 = vsel %vm3458_vm0, %v3556_v34, 0.0  ;;  %v440_v50 = vmul.f32 %v3108_v2, %v403_v32  ;;  %v442_v51 = vmul.f32 %v3108_v2, %v405_v31  ;;  %v998_v23 = vld [vmem:[%s4426_s1 + $0x338] sm:$0xff]  ;;  %v969_v55 = vld [vmem:[%s4426_s1 + $0x250] sm:$0xff] }
  0x65   : > { %v766_v52 = vrot.slane %v704_v28, 1  ;;  %v4511_v53 = vmov 0  ;;  %2586 = vmatprep.subr.bf16.mxu1 %v2585_v39  ;;  %2564 = vmatpush3.bf16.msra.mxu0 %v2563_v40  ;;  %v3587_v57 = vadd.s32 9, %v2946_v5  ;;  %v768_v0 = vrot.slane %v3540_v30, 1  ;;  %v1013_v5 = vld [vmem:[%s4426_s1 + $0x3b0] sm:$0xff] }
  0x66   : > { %v4512_v53 = vsel %vm3577_vm13, 4294967295, %v4511_v53  ;;  %2027 = vmatmul.mubr.msk.f32.gmra.mrb[10].mxu0 %vm3232_vm1, %v3324_v44  ;;  %2588 = vmatpush3.bf16.msra.mxu1 %v2587_v58  ;;  %v477_v60 = vadd.f32 %v3113_v3, %v440_v50  ;;  %v479_v61 = vadd.f32 %v3113_v3, %v442_v51  ;;  %v444_v62 = vmul.f32 %v3108_v2, %v407_v41  ;;  %v970_v58 = vld [vmem:[%s4426_s1 + $0x258] sm:$0xff]  ;;  %v406_v41 = vld [vmem:[#allocation2 + $0x88] sm:$0x3] }
  0x67   : > { %1281 = vmatmul.mubr.f32.gmra.mrb[10].mxu1 %v3549_v33  ;;  %1140 = vmatprep.mubr.f32.mxu0 %v3554_v27  ;;  %v3608_v47 = vsel %vm4445_vm9, %v820_v24, %v821_v38  ;;  %v823_v9 = vrot.slane %v704_v28, 2  ;;  %v4433_v11 = vrot.slane %v3569_v43, 1  ;;  %v3611_v12 = vmax.f32 %v478_v46, 0.0  ;;  %v408_v28 = vld [vmem:[#allocation2 + $0x98] sm:$0xff] }
  0x68   : > { %4513 = vst [vmem:[#allocation12_spill] sm:$0xff] %v3608_v47  ;;  %2044 = vmatprep.mubr.msk.f32.mxu1 %vm3492_vm6, %v3486_v7  ;;  %v3633_v24 = vsel %vm4444_vm8, %v764_v6, %v766_v52  ;;  %v4517_v29 = vmov 0  ;;  %v825_v46 = vrot.slane %v3540_v30, 2  ;;  %v507_v32 = vmax.f32 %v477_v60, 0.0  ;;  %v987_v60 = vld [vmem:[%s4426_s1 + $0x2e0] sm:$0xff]  ;;  %v1018_v33 = vld [vmem:[%s4426_s1 + $0x3d8] sm:$0xff] }
  0x69   : > { %4516 = vst [vmem:[#allocation13_spill] sm:$0xff] %v3633_v24  ;;  %v4518_v29 = vsel %vm3639_vm15, 4294967295, %v4517_v29  ;;  %v3644_v31 = vmax.f32 %v479_v61, 0.0  ;;  %v4432_v6 = vrot.slane %v3569_v43, 2  ;;  %v481_v37 = vadd.f32 %v3113_v3, %v444_v62 }
  0x6a   : > { %4519 = vst [vmem:[#allocation14_spill] sm:$0xff] %v4518_v29  ;;  %v2565_v39 = vpack.c.bf16 %v986_v36, %v985_v56  ;;  %v2589_v40 = vpack.c.bf16 %v1014_v4, %v1013_v5  ;;  %2028 = vmatmul.mubr.msk.f32.gmra.mrb[12].mxu0 %vm3365_vm4, %v3399_v18  ;;  %v3659_v30 = vsel %vm3617_vm14, %v507_v32, 0.0  ;;  %v3664_v50 = vsel %vm3639_vm15, %v3611_v12, 0.0  ;;  %v410_v56 = vld [vmem:[#allocation2 + $0xa8] sm:$0xff]  ;;  %v1015_v5 = vld [vmem:[%s4426_s1 + $0x3c0] sm:$0xff] }
  0x6b   : > { %vm4520_vm7 = vcmp.gt.s32.totalorder %v3394_v14, 0  ;;  %v2591_v52 = vpack.c.bf16 %v998_v23, %v997_v22  ;;  %vm546_vm14 = vcmp.gt.s32.totalorder %v3587_v57, 0  ;;  %1286 = vmatmul.mubr.f32.gmra.mrb[12].mxu1 %v3608_v47  ;;  %1145 = vmatprep.mubr.f32.mxu0 %v3633_v24  ;;  %v3681_v61 = vsel %vm4445_vm9, %v821_v38, %v823_v9  ;;  %v988_v36 = vld [vmem:[%s4426_s1 + $0x2e8] sm:$0xff]  ;;  %v971_v22 = vld [vmem:[%s4426_s1 + $0x260] sm:$0xff] }
  0x6c   : > { %vm3670_vm3 = vmand %vm4520_vm7, %vm553_vm10  ;;  %4523 = vst [vmem:[#allocation15_spill] sm:$0xff] %v3681_v61  ;;  %v3686_v14 = vsel %vm4444_vm8, %v768_v0, %v4433_v11  ;;  %v771_v62 = vrot.slane %v3659_v30, 1  ;;  %v1016_v38 = vld [vmem:[%s4426_s1 + $0x3c8] sm:$0xff]  ;;  %vm556_vm10 = vcmp.lt.s32.totalorder %v3587_v57, 17  ;;  %2045 = vmatprep.mubr.msk.f32.mxu1 %vm3458_vm0, %v3556_v34  ;;  %v3705_v0 = vsel %vm3577_vm13, %v3644_v31, 0.0  ;;  %2566 = vmatprep.subr.bf16.mxu0 %v2565_v39  ;;  %v999_v32 = vld [vmem:[%s4426_s1 + $0x340] sm:$0xff] }
  0x6d   : > { %4524 = vst [vmem:[#allocation16_spill] sm:$0xff] %v3686_v14  ;;  %v2567_v4 = vpack.c.bf16 %v970_v58, %v969_v55  ;;  %v443_v9 = vmul.f32 %v3108_v2, %v406_v41  ;;  %v445_v13 = vmul.f32 %v3108_v2, %v408_v28  ;;  %v972_v23 = vld [vmem:[%s4426_s1 + $0x268] sm:$0xff]  ;;  %v3721_v55 = vsel %vm4445_vm9, %v825_v46, %v4432_v6  ;;  %vm3730_vm7 = vmand %vm3670_vm3, %vm4440_vm5  ;;  %v409_v6 = vld [vmem:[#allocation2 + $0xa0] sm:$0x3] }
  0x6e   : > { %4525 = vst [vmem:[#allocation17_spill] sm:$0xff] %v3721_v55  ;;  %v773_v39 = vrot.slane %v3664_v50, 1  ;;  %v3724_v58 = vmax.f32 %v481_v37, 0.0  ;;  %v4526_v41 = vmov 0  ;;  %v830_v28 = vrot.slane %v3664_v50, 2  ;;  %2590 = vmatprep.subr.bf16.mxu1 %v2589_v40  ;;  %v1000_v46 = vld [vmem:[%s4426_s1 + $0x348] sm:$0xff]  ;;  %2029 = vmatmul.mubr.msk.f32.gmra.mrb[14].mxu0 %vm3330_vm11, %v3452_v48  ;;  %vm3763_vm5 = vmand %vm3577_vm13, %vm4446_vm12 }
  0x6f   : > { %v4527_v41 = vsel %vm3730_vm7, 4294967295, %v4526_v41  ;;  %v828_v37 = vrot.slane %v3659_v30, 2  ;;  %2592 = vmatpush3.bf16.msra.mxu1 %v2591_v52  ;;  %v480_v11 = vadd.f32 %v3113_v3, %v443_v9  ;;  %v482_v47 = vadd.f32 %v3113_v3, %v445_v13  ;;  %v411_v50 = vld [vmem:[#allocation2 + $0xb0] sm:$0xff]  ;;  %1150 = vmatprep.mubr.f32.mxu0 %v3686_v14 }
  0x70   : > { %v447_v24 = vmul.f32 %v3108_v2, %v410_v56  ;;  %v1017_v40 = vld [vmem:[%s4426_s1 + $0x3d0] sm:$0xff]  ;;  %1291 = vmatmul.mubr.f32.gmra.mrb[14].mxu1 %v3681_v61  ;;  %v4528_v30 = vrot.slane %v3569_v43, 1  ;;  %v2569_v13 = vpack.c.bf16 %v988_v36, %v987_v60  ;;  %v2593_v45 = vpack.c.bf16 %v1016_v38, %v1015_v5  ;;  %2568 = vmatpush3.bf16.msra.mxu0 %v2567_v4  ;;  %v413_v4 = vld [vmem:[#allocation2 + $0xc0] sm:$0xff] }
  0x71   : > { %v1001_v61 = vld [vmem:[%s4426_s1 + $0x350] sm:$0xff]  ;;  %2046 = vmatprep.mubr.msk.f32.mxu1 %vm3639_vm15, %v3611_v12  ;;  %v3776_v56 = vmax.f32 %v482_v47, 0.0  ;;  %vm4533_vm9 = vcmp.gt.s32.totalorder %v3412_v25, 0  ;;  %v2571_v36 = vpack.c.bf16 %v972_v23, %v971_v22  ;;  %v2595_v5 = vpack.c.bf16 %v1000_v46, %v999_v32  ;;  %v1026_v22 = vld [vmem:[%s4426_s1 + $0x418] sm:$0xff] }
  0x72   : > { %v3756_v52 = vsel %vm4444_vm8, %v4528_v30, %v771_v62  ;;  %v1002_v62 = vld [vmem:[%s4426_s1 + $0x358] sm:$0xff]  ;;  %v510_v30 = vmax.f32 %v480_v11, 0.0  ;;  %vm4532_vm8 = vcmp.lt.s32.totalorder %v3412_v25, 17  ;;  %v4450_v38 = vrot.slane %v3705_v0, 2  ;;  %2570 = vmatprep.subr.bf16.mxu0 %v2569_v13  ;;  %2594 = vmatprep.subr.bf16.mxu1 %v2593_v45 }
  0x73   : > { %4529 = vst [vmem:[#allocation18_spill] sm:$0xff] %v3756_v52  ;;  %vm3782_vm12 = vmand %vm4533_vm9, %vm4532_vm8  ;;  %v446_v14 = vmul.f32 %v3108_v2, %v409_v6  ;;  %v448_v11 = vmul.f32 %v3108_v2, %v411_v50  ;;  %v2597_v47 = vpack.c.bf16 %v1018_v33, %v1017_v40  ;;  %v4536_v25 = vmov 0  ;;  %2030 = vmatmul.mubr.msk.f32.gmra.mrb[16].mxu0 %vm3492_vm6, %v3486_v7  ;;  %v1021_v7 = vld [vmem:[%s4426_s1 + $0x3f0] sm:$0xff] }
  0x74   : > { %vm3793_vm8 = vmand %vm546_vm14, %vm556_vm10  ;;  %v3802_v45 = vsel %vm3763_vm5, %v510_v30, 0.0  ;;  %v3807_v33 = vsel %vm3730_vm7, %v3724_v58, 0.0  ;;  %v484_v6 = vadd.f32 %v3113_v3, %v447_v24  ;;  %2596 = vmatpush3.bf16.msra.mxu1 %v2595_v5  ;;  %v2599_v57 = vpack.c.bf16 %v1002_v62, %v1001_v61  ;;  %1155 = vmatprep.mubr.f32.mxu0 %v3756_v52  ;;  %v1019_v62 = vld [vmem:[%s4426_s1 + $0x3e0] sm:$0xff]  ;;  %v1020_v30 = vld [vmem:[%s4426_s1 + $0x3e8] sm:$0xff] }
  0x75   : > { %v4537_v25 = vsel %vm3793_vm8, 4294967295, %v4536_v25  ;;  %vm4539_vm9 = vcmp.lt.s32.totalorder %v3100_v63, 17  ;;  %1296 = vmatmul.mubr.f32.gmra.mrb[16].mxu1 %v3721_v55  ;;  %v4542_v23 = vrot.slane %v3569_v43, 2  ;;  %vm4543_vm5 = vcmask 1045504   ;;  %v989_v43 = vld [vmem:[%s4426_s1 + $0x2f0] sm:$0xff]  ;;  %2572 = vmatpush3.bf16.msra.mxu0 %v2571_v36 }
  0x76   : > { %4538 = vst [vmem:[#allocation19_spill] sm:$0xff] %v4537_v25  ;;  %vm3814_vm14 = vmand %vm3793_vm8, %vm4539_vm9  ;;  %v4545_v24 = vrot.slane %v3705_v0, 1  ;;  %vm4546_vm10 = vcmask 1046528   ;;  %v3833_v46 = vsel %vm3670_vm3, %v3776_v56, 0.0  ;;  %2047 = vmatprep.mubr.msk.f32.mxu1 %vm3577_vm13, %v3644_v31  ;;  %v483_v40 = vadd.f32 %v3113_v3, %v446_v14  ;;  %v973_v5 = vld [vmem:[%s4426_s1 + $0x270] sm:$0xff]  ;;  %2598 = vmatprep.subr.bf16.mxu1 %v2597_v47 }
  0x77   : > { %v3823_v32 = vsel %vm4543_vm5, %v4542_v23, %v828_v37  ;;  %vm3839_vm6 = vmand %vm3670_vm3, %vm4539_vm9  ;;  %v776_v37 = vrot.slane %v3802_v45, 1  ;;  %v485_v9 = vadd.f32 %v3113_v3, %v448_v11  ;;  %v450_v13 = vmul.f32 %v3108_v2, %v413_v4  ;;  %v974_v11 = vld [vmem:[%s4426_s1 + $0x278] sm:$0xff]  ;;  %v1003_v4 = vld [vmem:[%s4426_s1 + $0x360] sm:$0xff]  ;;  %2031 = vmatmul.mubr.msk.f32.gmra.mrb[18].mxu0 %vm3458_vm0, %v3556_v34 }
  0x78   : > { %4544 = vst [vmem:[#allocation20_spill] sm:$0xff] %v3823_v32  ;;  %v3828_v61 = vsel %vm4546_vm10, %v773_v39, %v4545_v24  ;;  %v990_v39 = vld [vmem:[%s4426_s1 + $0x2f8] sm:$0xff]  ;;  %v3868_v14 = vsel %vm4543_vm5, %v830_v28, %v4450_v38  ;;  %v778_v36 = vrot.slane %v3807_v33, 1  ;;  %vm555_vm9 = vcmp.lt.s32.totalorder %v3467_v54, 17  ;;  %v1004_v28 = vld [vmem:[%s4426_s1 + $0x368] sm:$0xff]  ;;  %2600 = vmatpush3.bf16.msra.mxu1 %v2599_v57 }
  0x79   : > { %4549 = vst [vmem:[#allocation21_spill] sm:$0xff] %v3868_v14  ;;  %v833_v47 = vrot.slane %v3802_v45, 2  ;;  %v3886_v23 = vmax.f32 %v484_v6, 0.0  ;;  %vm4550_vm5 = vcmp.gt.s32.totalorder %v2976_v19, 0  ;;  %v513_v38 = vmax.f32 %v483_v40, 0.0  ;;  %1301 = vmatmul.mubr.f32.gmra.mrb[18].mxu1 %v3823_v32  ;;  %1160 = vmatprep.mubr.f32.mxu0 %v3828_v61  ;;  %v1022_v57 = vld [vmem:[%s4426_s1 + $0x3f8] sm:$0xff] }
  0x7a   : > { %vm3892_vm10 = vmand %vm3782_vm12, %vm4550_vm5  ;;  %v487_v55 = vadd.f32 %v3113_v3, %v450_v13  ;;  %v412_v52 = vld [vmem:[#allocation2 + $0xb8] sm:$0x3]  ;;  %v779_v45 = vrot.slane %v3833_v46, 1  ;;  %v3900_v6 = vmax.f32 %v485_v9, 0.0  ;;  %v2573_v49 = vpack.c.bf16 %v990_v39, %v989_v43  ;;  %2048 = vmatprep.mubr.msk.f32.mxu1 %vm3730_vm7, %v3724_v58 }
  0x7b   : > { %v2601_v34 = vpack.c.bf16 %v1020_v30, %v1019_v62  ;;  %v4553_v40 = vrot.slane %v3705_v0, 1  ;;  %vm4554_vm5 = vcmask 1046528   ;;  %v3918_v43 = vsel %vm3839_vm6, %v513_v38, 0.0  ;;  %2032 = vmatmul.mubr.msk.f32.gmra.mrb[20].mxu0 %vm3639_vm15, %v3611_v12 }
  0x7c   : > { %vm4556_vm0 = vcmp.gt.s32.totalorder %v3467_v54, 0  ;;  %v2575_v13 = vpack.c.bf16 %v974_v11, %v973_v5  ;;  %v2603_v62 = vpack.c.bf16 %v1004_v28, %v1003_v4  ;;  %v835_v30 = vrot.slane %v3807_v33, 2  ;;  %2574 = vmatprep.subr.bf16.mxu0 %v2573_v49  ;;  %v1005_v54 = vld [vmem:[%s4426_s1 + $0x370] sm:$0xff]  ;;  %v1006_v49 = vld [vmem:[%s4426_s1 + $0x378] sm:$0xff]  ;;  %v1024_v5 = vld [vmem:[%s4426_s1 + $0x408] sm:$0xff] }
  0x7d   : > { %v3914_v9 = vsel %vm4554_vm5, %v4553_v40, %v776_v37  ;;  %vm3924_vm11 = vmand %vm4556_vm0, %vm555_vm9  ;;  %v836_v32 = vrot.slane %v3833_v46, 2  ;;  %v3933_v50 = vsel %vm3892_vm10, %v3886_v23, 0.0  ;;  %2602 = vmatprep.subr.bf16.mxu1 %v2601_v34  ;;  %v3941_v38 = vmax.f32 %v487_v55, 0.0  ;;  %v1023_v34 = vld [vmem:[%s4426_s1 + $0x400] sm:$0xff]  ;;  %1306 = vmatmul.mubr.f32.gmra.mrb[20].mxu1 %v3868_v14 }
  0x7e   : > { %4555 = vst [vmem:[#allocation22_spill] sm:$0xff] %v3914_v9  ;;  %2604 = vmatpush3.bf16.msra.mxu1 %v2603_v62  ;;  %v449_v33 = vmul.f32 %v3108_v2, %v412_v52  ;;  %v451_v46 = vmul.f32 %v3108_v2, %v414_v8  ;;  %v2605_v37 = vpack.c.bf16 %v1022_v57, %v1021_v7  ;;  %v4559_v55 = vrot.slane %v3705_v0, 2  ;;  %v415_v57 = vld [vmem:[#allocation2 + $0xd0] sm:$0x3] }
  0x7f   : > { %1165 = vmatprep.mubr.f32.mxu0 %v3914_v9  ;;  %vm4560_vm0 = vcmask 1045504   ;;  %v781_v8 = vrot.slane %v3918_v43, 1  ;;  %v3965_v52 = vsel %vm3782_vm12, %v3900_v6, 0.0  ;;  %vm4561_vm6 = vcmp.gt.s32.totalorder %v2976_v19, 0  ;;  %2049 = vmatprep.mubr.msk.f32.mxu1 %vm3670_vm3, %v3776_v56 }
  0x80   : > { %v3959_v7 = vsel %vm4560_vm0, %v4559_v55, %v833_v47  ;;  %vm3971_vm9 = vmand %vm3924_vm11, %vm4561_vm6  ;;  %v3979_v0 = vsel %vm4554_vm5, %v778_v36, %v779_v45  ;;  %2576 = vmatpush3.bf16.msra.mxu0 %v2575_v13  ;;  %v486_v28 = vadd.f32 %v3113_v3, %v449_v33  ;;  %v488_v47 = vadd.f32 %v3113_v3, %v451_v46  ;;  %v416_v33 = vld [vmem:[#allocation2 + $0xd8] sm:$0xff]  ;;  %v417_v46 = vld [vmem:[#allocation2 + $0xe0] sm:$0xff] }
  0x81   : > { %v717_v4 = vsel %vm3971_vm9, %v3941_v38, 0.0  ;;  %v3987_v40 = vsel %vm4560_vm0, %v835_v30, %v836_v32  ;;  %v783_v62 = vrot.slane %v3933_v50, 1  ;;  %vm4564_vm6 = vcmp.lt.s32.totalorder %v3100_v63, 17  ;;  %2606 = vmatprep.subr.bf16.mxu1 %v2605_v37  ;;  %2033 = vmatmul.mubr.msk.f32.gmra.mrb[22].mxu0 %vm3577_vm13, %v3644_v31 }
  0x82   : > { %vm3994_vm5 = vmand %vm3782_vm12, %vm4564_vm6  ;;  %v2607_v13 = vpack.c.bf16 %v1006_v49, %v1005_v54  ;;  %v3998_v55 = vpack.c.bf16 %v1024_v5, %v1023_v34  ;;  %v838_v30 = vrot.slane %v3918_v43, 2  ;;  %v784_v14 = vrot.slane %v3965_v52, 1  ;;  %1311 = vmatmul.mubr.f32.gmra.mrb[22].mxu1 %v3959_v7  ;;  %1170 = vmatprep.mubr.f32.mxu0 %v3979_v0 }
  0x83   : > { %v516_v9 = vmax.f32 %v486_v28, 0.0  ;;  %v4005_v29 = vmax.f32 %v488_v47, 0.0  ;;  %vm4567_vm0 = vcmask 1046528   ;;  %v864_v37 = vrot.slane %v717_v4, 1  ;;  %2050 = vmatprep.mubr.msk.f32.mxu1 %vm3892_vm10, %v3886_v23 }
  0x84   : > { %v4010_v54 = vsel %vm4567_vm0, %v779_v45, %v781_v8  ;;  %v452_v49 = vmul.f32 %v3108_v2, %v415_v57  ;;  %v871_v34 = vrot.slane %v717_v4, 2  ;;  %2608 = vmatpush3.bf16.msra.mxu1 %v2607_v13  ;;  %v453_v28 = vmul.f32 %v3108_v2, %v416_v33  ;;  %2610 = vmatprep.subr.bf16.mxu0 %v3998_v55  ;;  %v418_v57 = vld [vmem:[#allocation2 + $0xe8] sm:$0x3] }
  0x85   : > { %v716_v43 = vsel %vm3994_vm5, %v516_v9, 0.0  ;;  %v718_v5 = vsel %vm3924_vm11, %v4005_v29, 0.0  ;;  %v454_v45 = vmul.f32 %v3108_v2, %v417_v46  ;;  %v840_v8 = vrot.slane %v3933_v50, 2  ;;  %2641 = vmatprep.subr.bf16.mxu1 %v3998_v55  ;;  %2034 = vmatmul.mubr.msk.f32.gmra.mrb[24].mxu0 %vm3730_vm7, %v3724_v58 }
  0x86   : > { %v841_v4 = vrot.slane %v3965_v52, 2  ;;  %v865_v47 = vrot.slane %v718_v5, 1  ;;  %v489_v9 = vadd.f32 %v3113_v3, %v452_v49  ;;  %vm4568_vm6 = vcmask 1045504   ;;  %1316 = vmatmul.mubr.f32.gmra.mrb[24].mxu1 %v3987_v40  ;;  %1175 = vmatprep.mubr.f32.mxu0 %v4010_v54 }
  0x87   : > { %v4032_v36 = vsel %vm4568_vm6, %v836_v32, %v838_v30  ;;  %vm4569_vm5 = vcmp.lt.s32.totalorder %v3100_v63, 17  ;;  %v872_v52 = vrot.slane %v718_v5, 2  ;;  %v4043_v13 = vadd.f32 %v3113_v3, %v453_v28  ;;  %2051 = vmatprep.mubr.msk.f32.mxu1 %vm3782_vm12, %v3900_v6 }
  0x88   : > { %vm4038_vm0 = vmand %vm3924_vm11, %vm4569_vm5  ;;  %v4046_v33 = vadd.f32 %v3113_v3, %v454_v45  ;;  %vm4573_vm6 = vcmask 1046528   ;;  %v786_v63 = vrot.slane %v716_v43, 1  ;;  %v519_v30 = vmax.f32 %v489_v9, 0.0 }
  0x89   : > { %v4051_v32 = vsel %vm4573_vm6, %v783_v62, %v784_v14  ;;  %vm4574_vm7 = vmmov %vm4573_vm6  ;;  %vm4576_vm5 = vcmp.gt.s32.totalorder %v2976_v19, 0  ;;  %v4577_v49 = vmov 0  ;;  %vm4580_vm15 = vcmask 1045504   ;;  %2035 = vmatmul.mubr.msk.f32.gmra.mrb[26].mxu0 %vm3670_vm3, %v3776_v56 }
  0x8a   : > { %4572 = vst [vmem:[#allocation23_spill] sm:$0xff] %v4046_v33  ;;  %v4054_v46 = vsel %vm4574_vm7, %v864_v37, %v865_v47  ;;  %vm4060_vm13 = vmand %vm3793_vm8, %vm4576_vm5  ;;  %v4068_v62 = vsel %vm4580_vm15, %v871_v34, %v872_v52  ;;  %v4472_v5 = vmax.f32 %v4043_v13, 0.0  ;;  %v4474_v37 = vmax.f32 %v4046_v33, 0.0  ;;  %1321 = vmatmul.mubr.f32.gmra.mrb[26].mxu1 %v4032_v36  ;;  %1180 = vmatprep.mubr.f32.mxu0 %v4051_v32 }
  0x8b   : > { %4575 = vst [vmem:[#allocation24_spill] sm:$0xff] %v4054_v46  ;;  %v4578_v49 = vsel %vm4060_vm13, 4294967295, %v4577_v49  ;;  %v455_v28 = vmul.f32 %v3108_v2, %v418_v57  ;;  %vm4581_vm7 = vmmov %vm4580_vm15  ;;  %v843_v45 = vrot.slane %v716_v43, 2  ;;  %v719_v9 = vsel %vm4038_vm0, %v519_v30, 0.0  ;;  %2052 = vmatprep.mubr.msk.f32.mxu1 %vm3971_vm9, %v3941_v38 }
  0x8c   : > { %4579 = vst [vmem:[#allocation25_spill] sm:$0xff] %v4578_v49  ;;  %v4074_v19 = vsel %vm4581_vm7, %v840_v8, %v841_v4  ;;  %v867_v46 = vrot.slane %v719_v9, 1  ;;  %v720_v34 = vsel %vm4060_vm13, %v4472_v5, 0.0  ;;  %v721_v2 = vsel %vm3793_vm8, %v4474_v37, 0.0  ;;  %vm4582_vm15 = vmmov %vm4573_vm6 }
  0x8d   : > { %v874_v8 = vrot.slane %v719_v9, 2  ;;  %v881_v43 = vrot.slane %v720_v34, 1  ;;  %v882_v57 = vrot.slane %v721_v2, 1  ;;  %v492_v50 = vadd.f32 %v3113_v3, %v455_v28  ;;  %vm4583_vm0 = vmmov %vm4573_vm6  ;;  %2036 = vmatmul.mubr.msk.f32.gmra.mrb[28].mxu0 %vm3892_vm10, %v3886_v23 }
  0x8e   : > { %v888_v30 = vrot.slane %v720_v34, 2  ;;  %v4096_v5 = vsel %vm4582_vm15, %v784_v14, %v786_v63  ;;  %v4099_v25 = vsel %vm4583_vm0, %v865_v47, %v867_v46  ;;  %vm4584_vm6 = vmmov %vm4581_vm7  ;;  %v889_v37 = vrot.slane %v721_v2, 2  ;;  %1326 = vmatmul.mubr.f32.gmra.mrb[28].mxu1 %v4074_v19  ;;  %v1025_v46 = vld [vmem:[%s4426_s1 + $0x410] sm:$0xff]  ;;  %v1028_v34 = vld [vmem:[%s4426_s1 + $0x428] sm:$0xff] }
  0x8f   : > { %v4102_v9 = vsel %vm4584_vm6, %v872_v52, %v874_v8  ;;  %vm4585_vm5 = vmmov %vm4583_vm0  ;;  %v522_v49 = vmax.f32 %v492_v50, 0.0  ;;  %1185 = vmatprep.mubr.f32.mxu0 %v4096_v5  ;;  %2053 = vmatprep.mubr.msk.f32.mxu1 %vm3924_vm11, %v4005_v29  ;;  %v2613_v28 = vpack.c.bf16 %v1026_v22, %v1025_v46  ;;  %v4595_v2 = vld [vmem:[#allocation16_spill] sm:$0xff]  ;;  %v4599_v50 = vld [vmem:[#allocation15_spill] sm:$0xff] }
  0x90   : > { %v4105_v33 = vsel %vm4585_vm5, %v881_v43, %v882_v57  ;;  %vm4586_vm7 = vmmov %vm4584_vm6  ;;  %v1035_v8 = vld [vmem:[%s4426_s1 + $0x460] sm:$0xff]  ;;  %v1036_v43 = vld [vmem:[%s4426_s1 + $0x468] sm:$0xff]  ;;  %vm4609_vm5 = vnez %v4512_v53 }
  0x91   : > { %v4111_v3 = vsel %vm4586_vm7, %v888_v30, %v889_v37  ;;  %v722_v14 = vsel %vm3814_vm14, %v522_v49, 0.0  ;;  %vm4587_vm15 = vmmov %vm4584_vm6  ;;  %2037 = vmatmul.mubr.msk.f32.gmra.mrb[30].mxu0 %vm3782_vm12, %v3900_v6  ;;  %v4600_v30 = vld [vmem:[#allocation18_spill] sm:$0xff]  ;;  %v4602_v46 = vld [vmem:[#allocation7_spill] sm:$0xff]  ;;  %vm4611_vm7 = vnez %v4527_v41 }
  0x92   : > { %v4121_v47 = vsel %vm4587_vm15, %v841_v4, %v843_v45  ;;  %v884_v52 = vrot.slane %v722_v14, 1  ;;  %v891_v63 = vrot.slane %v722_v14, 2  ;;  %vm4588_vm14 = vmmov %vm4583_vm0  ;;  %1400 = vmatprep.mubr.f32.mxu0 %v3355_v1  ;;  %v1027_v45 = vld [vmem:[%s4426_s1 + $0x420] sm:$0xff]  ;;  %v1029_v1 = vld [vmem:[%s4426_s1 + $0x430] sm:$0xff] }
  0x93   : > { %vm4589_vm0 = vmmov %vm4584_vm6  ;;  %1331 = vmatmul.mubr.f32.gmra.mrb[30].mxu1 %v4121_v47  ;;  %v1037_v14 = vld [vmem:[%s4426_s1 + $0x470] sm:$0xff]  ;;  %v4604_v22 = vld [vmem:[#allocation17_spill] sm:$0xff] }
  0x94   : > { %v4133_v49 = vsel %vm4588_vm14, %v882_v57, %v884_v52  ;;  %v4136_v4 = vsel %vm4589_vm0, %v889_v37, %v891_v63  ;;  %1545 = vmatprep.mubr.f32.mxu1 %v3420_v26  ;;  %v4594_v37 = vld [vmem:[#allocation12_spill] sm:$0xff]  ;;  %v4597_v57 = vld [vmem:[#allocation9_spill] sm:$0xff]  ;;  %v1038_v52 = vld [vmem:[%s4426_s1 + $0x478] sm:$0xff] }
  0x95   : > { %1401 = vmatmul.mubr.f32.vlgmr.msra.gmra.mrb[32].mxu0 %v3320_v42  ;;  %v2617_v42 = vpack.c.bf16 %v1028_v34, %v1027_v45  ;;  %v4601_v63 = vld [vmem:[#allocation11_spill] sm:$0xff]  ;;  %v4605_v45 = vld [vmem:[#allocation14_spill] sm:$0xff]  ;;  %v4607_v34 = vld [vmem:[#allocation20_spill] sm:$0xff] }
  0x96   : > { %2612 = vmatpush3.bf16.msra.mxu0 %v3998_v55  ;;  %1405 = vmatprep.mubr.f32.mxu0 %v3397_v17  ;;  %v4591_v17 = vld [vmem:[#allocation13_spill] sm:$0xff]  ;;  %vm4606_vm6 = vnez %v4605_v45  ;;  %v4612_v53 = vld [vmem:[#allocation24_spill] sm:$0xff]  ;;  %v4615_v51 = vld [vmem:[#allocation23_spill] sm:$0xff] }
  0x97   : > { %2054 = vmatmul.mubr.msk.f32.vlgmr.msra.gmra.mrb[32].mxu1 %vm3268_vm2, %v3262_v15  ;;  %2614 = vmatprep.subr.bf16.mxu0 %v2613_v28  ;;  %v1030_v15 = vld [vmem:[%s4426_s1 + $0x438] sm:$0xff]  ;;  %vm4598_vm2 = vnez %v4597_v57  ;;  %v4294_v41 = vld [vmem:[%s4427_s2] ss:$0 sm:$0xff] }
  0x98   : > { %1550 = vmatprep.mubr.f32.mxu1 %v3526_v20  ;;  %2649 = vmatpush3.bf16.msra.mxu1 %v3998_v55  ;;  %v2621_v16 = vpack.c.bf16 %v1030_v15, %v1029_v1  ;;  %v1033_v55 = vld [vmem:[%s4426_s1 + $0x450] sm:$0xff]  ;;  %v4610_v1 = vld [vmem:[#allocation21_spill] sm:$0xff] }
  0x99   : > { %1406 = vmatmul.mubr.f32.gmra.mrb[34].mxu0 %v3358_v21  ;;  %2642 = vmatprep.subr.bf16.mxu1 %v2613_v28  ;;  %v1031_v21 = vld [vmem:[%s4426_s1 + $0x440] sm:$0xff] }
  0x9a   : > { %1410 = vmatprep.mubr.f32.mxu0 %v3509_v10  ;;  %2616 = vmatpush3.bf16.msra.mxu0 %v2613_v28 }
  0x9b   : > { %2055 = vmatmul.mubr.msk.f32.gmra.mrb[34].mxu1 %vm3232_vm1, %v3324_v44  ;;  %2618 = vmatprep.subr.bf16.mxu0 %v2617_v42  ;;  %v4590_v44 = vld [vmem:[#allocation10_spill] sm:$0xff] }
  0x9c   : > { %1555 = vmatprep.mubr.f32.mxu1 %v3554_v27  ;;  %2650 = vmatpush3.bf16.msra.mxu1 %v2613_v28  ;;  %v2637_v28 = vpack.c.bf16 %v1038_v52, %v1037_v14 }
  0x9d   : > { %1411 = vmatmul.mubr.f32.gmra.mrb[36].mxu0 %v3420_v26  ;;  %2643 = vmatprep.subr.bf16.mxu1 %v2617_v42  ;;  %v2625_v26 = vpack.c.bf16 %v1032_v59, %v1031_v21 }
  0x9e   : > { %1415 = vmatprep.mubr.f32.mxu0 %v4590_v44  ;;  %2620 = vmatpush3.bf16.msra.mxu0 %v2617_v42 }
  0x9f   : > { %2056 = vmatmul.mubr.msk.f32.gmra.mrb[36].mxu1 %vm3365_vm4, %v3399_v18  ;;  %2622 = vmatprep.subr.bf16.mxu0 %v2621_v16  ;;  %v4592_v18 = vld [vmem:[#allocation6_spill] sm:$0xff]  ;;  %vm4603_vm4 = vnez %v4602_v46 }
  0xa0   : > { %1560 = vmatprep.mubr.f32.mxu1 %v4591_v17  ;;  %2651 = vmatpush3.bf16.msra.mxu1 %v2617_v42  ;;  %vm4593_vm1 = vnez %v4592_v18  ;;  %v4608_v42 = vld [vmem:[#allocation22_spill] sm:$0xff] }
  0xa1   : > { %1416 = vmatmul.mubr.f32.gmra.mrb[38].mxu0 %v3526_v20  ;;  %2644 = vmatprep.subr.bf16.mxu1 %v2621_v16  ;;  %v2629_v20 = vpack.c.bf16 %v1034_v35, %v1033_v55 }
  0xa2   : > { %1420 = vmatprep.mubr.f32.mxu0 %v4594_v37  ;;  %2624 = vmatpush3.bf16.msra.mxu0 %v2621_v16 }
  0xa3   : > { %2057 = vmatmul.mubr.msk.f32.gmra.mrb[38].mxu1 %vm4593_vm1, %v3452_v48  ;;  %2626 = vmatprep.subr.bf16.mxu0 %v2625_v26  ;;  %v4596_v48 = vld [vmem:[#allocation8_spill] sm:$0xff] }
  0xa4   : > { %1565 = vmatprep.mubr.f32.mxu1 %v4595_v2  ;;  %2652 = vmatpush3.bf16.msra.mxu1 %v2621_v16 }
  0xa5   : > { %1421 = vmatmul.mubr.f32.gmra.mrb[40].mxu0 %v3554_v27  ;;  %2645 = vmatprep.subr.bf16.mxu1 %v2625_v26  ;;  %v2633_v27 = vpack.c.bf16 %v1036_v43, %v1035_v8 }
  0xa6   : > { %1425 = vmatprep.mubr.f32.mxu0 %v4599_v50  ;;  %2628 = vmatpush3.bf16.msra.mxu0 %v2625_v26 }
  0xa7   : > { %2058 = vmatmul.mubr.msk.f32.gmra.mrb[40].mxu1 %vm4598_vm2, %v4596_v48  ;;  %2630 = vmatprep.subr.bf16.mxu0 %v2629_v20 }
  0xa8   : > { %1570 = vmatprep.mubr.f32.mxu1 %v4600_v30  ;;  %2653 = vmatpush3.bf16.msra.mxu1 %v2625_v26 }
  0xa9   : > { %1426 = vmatmul.mubr.f32.gmra.mrb[42].mxu0 %v4591_v17  ;;  %2646 = vmatprep.subr.bf16.mxu1 %v2629_v20 }
  0xaa   : > { %1430 = vmatprep.mubr.f32.mxu0 %v4604_v22  ;;  %2632 = vmatpush3.bf16.msra.mxu0 %v2629_v20 }
  0xab   : > { %2059 = vmatmul.mubr.msk.f32.gmra.mrb[42].mxu1 %vm4603_vm4, %v4601_v63  ;;  %2634 = vmatprep.subr.bf16.mxu0 %v2633_v27 }
  0xac   : > { %1575 = vmatprep.mubr.f32.mxu1 %v3828_v61  ;;  %2654 = vmatpush3.bf16.msra.mxu1 %v2629_v20 }
  0xad   : > { %1431 = vmatmul.mubr.f32.gmra.mrb[44].mxu0 %v4595_v2  ;;  %2647 = vmatprep.subr.bf16.mxu1 %v2633_v27 }
  0xae   : > { %1435 = vmatprep.mubr.f32.mxu0 %v4607_v34  ;;  %2636 = vmatpush3.bf16.msra.mxu0 %v2633_v27 }
  0xaf   : > { %2060 = vmatmul.mubr.msk.f32.gmra.mrb[44].mxu1 %vm4606_vm6, %v3611_v12  ;;  %2638 = vmatprep.subr.bf16.mxu0 %v2637_v28  ;;  %v4613_v12 = vmax.f32 %v4043_v13, 0.0 }
  0xb0   : > { %1580 = vmatprep.mubr.f32.mxu1 %v4608_v42  ;;  %2655 = vmatpush3.bf16.msra.mxu1 %v2633_v27 }
  0xb1   : > { %1436 = vmatmul.mubr.f32.gmra.mrb[46].mxu0 %v4600_v30  ;;  %2648 = vmatprep.subr.bf16.mxu1 %v2637_v28 }
  0xb2   : > { %1440 = vmatprep.mubr.f32.mxu0 %v4610_v1  ;;  %2640 = vmatpush3.bf16.msra.mxu0 %v2637_v28 }
  0xb3   : > { %2061 = vmatmul.mubr.msk.f32.gmra.mrb[46].mxu1 %vm4609_vm5, %v3644_v31 }
  0xb4   : > { %1585 = vmatprep.mubr.f32.mxu1 %v3979_v0  ;;  %2656 = vmatpush3.bf16.msra.mxu1 %v2637_v28 }
  0xb5   : > { %1441 = vmatmul.mubr.f32.gmra.mrb[48].mxu0 %v3828_v61 }
  0xb6   : > { %1445 = vmatprep.mubr.f32.mxu0 %v3959_v7 }
  0xb7   : > { %2062 = vmatmul.mubr.msk.f32.gmra.mrb[48].mxu1 %vm4611_vm7, %v3724_v58  ;;  %v4616_v58 = vmax.f32 %v4615_v51, 0.0 }
  0xb8   : > { %1590 = vmatprep.mubr.f32.mxu1 %v4010_v54 }
  0xb9   : > { %1446 = vmatmul.mubr.f32.gmra.mrb[50].mxu0 %v4608_v42 }
  0xba   : > { %1450 = vmatprep.mubr.f32.mxu0 %v3987_v40 }
  0xbb   : > { %2063 = vmatmul.mubr.msk.f32.gmra.mrb[50].mxu1 %vm3670_vm3, %v3776_v56 }
  0xbc   : > { %1595 = vmatprep.mubr.f32.mxu1 %v4051_v32 }
  0xbd   : > { %1451 = vmatmul.mubr.f32.gmra.mrb[52].mxu0 %v3979_v0 }
  0xbe   : > { %1455 = vmatprep.mubr.f32.mxu0 %v4032_v36 }
  0xbf   : > { %2064 = vmatmul.mubr.msk.f32.gmra.mrb[52].mxu1 %vm3892_vm10, %v3886_v23 }
  0xc0   : > { %1600 = vmatprep.mubr.f32.mxu1 %v4096_v5 }
  0xc1   : > { %1456 = vmatmul.mubr.f32.gmra.mrb[54].mxu0 %v4010_v54 }
  0xc2   : > { %1460 = vmatprep.mubr.f32.mxu0 %v4074_v19 }
  0xc3   : > { %2065 = vmatmul.mubr.msk.f32.gmra.mrb[54].mxu1 %vm3782_vm12, %v3900_v6  ;;  %vm1845_vm12 = vcmask 1040384  }
  0xc4   : > { %1605 = vmatprep.mubr.f32.mxu1 %v4612_v53 }
  0xc5   : > { %1461 = vmatmul.mubr.f32.gmra.mrb[56].mxu0 %v4051_v32 }
  0xc6   : > { %1465 = vmatprep.mubr.f32.mxu0 %v4121_v47 }
  0xc7   : > { %2066 = vmatmul.mubr.msk.f32.gmra.mrb[56].mxu1 %vm3971_vm9, %v3941_v38 }
  0xc8   : > { %1610 = vmatprep.mubr.f32.mxu1 %v4099_v25 }
  0xc9   : > { %1466 = vmatmul.mubr.f32.gmra.mrb[58].mxu0 %v4096_v5 }
  0xca   : > { %1470 = vmatprep.mubr.f32.mxu0 %v4068_v62 }
  0xcb   : > { %2067 = vmatmul.mubr.msk.f32.gmra.mrb[58].mxu1 %vm3924_vm11, %v4005_v29 }
  0xcc   : > { %1615 = vmatprep.mubr.f32.mxu1 %v4105_v33 }
  0xcd   : > { %1471 = vmatmul.mubr.f32.gmra.mrb[60].mxu0 %v4612_v53 }
  0xce   : > { %1475 = vmatprep.mubr.f32.mxu0 %v4102_v9 }
  0xcf   : > { %2068 = vmatmul.mubr.msk.f32.gmra.mrb[60].mxu1 %vm4060_vm13, %v4613_v12 }
  0xd0   : > { %1620 = vmatprep.mubr.f32.mxu1 %v4133_v49 }
  0xd1   : > { %1476 = vmatmul.mubr.f32.gmra.mrb[62].mxu0 %v4099_v25 }
  0xd2   : > { %2457 = vmatprep.mubr.f32.mxu0 %v3509_v10 }
  0xd3   : > { %2069 = vmatmul.mubr.msk.f32.gmra.mrb[62].mxu1 %vm3793_vm8, %v4616_v58 }
  0xd4   : > { %2469 = vmatprep.mubr.f32.mxu1 %v3987_v40 }
  0xd5   : > { %2458 = vmatmul.mubr.f32.vlgmr.msra.gmra.mrb[64].mxu0 %v4590_v44 }
  0xd6   : > { %2460 = vmatprep.mubr.f32.mxu0 %v4594_v37 }
  0xd7   : > { %2470 = vmatmul.mubr.f32.vlgmr.msra.gmra.mrb[64].mxu1 %v4032_v36 }
  0xd8   : > { %2472 = vmatprep.mubr.f32.mxu1 %v4074_v19 }
  0xd9   : > { %2461 = vmatmul.mubr.f32.gmra.mrb[66].mxu0 %v4599_v50 }
  0xda   : > { %2463 = vmatprep.mubr.f32.mxu0 %v4604_v22 }
  0xdb   : > { %2473 = vmatmul.mubr.f32.gmra.mrb[66].mxu1 %v4121_v47 }
  0xdc   : > { %2475 = vmatprep.mubr.f32.mxu1 %v4068_v62 }
  0xdd   : > { %2464 = vmatmul.mubr.f32.gmra.mrb[68].mxu0 %v4607_v34 }
  0xde   : > { %2466 = vmatprep.mubr.f32.mxu0 %v4610_v1 }
  0xdf   : > { %2476 = vmatmul.mubr.f32.gmra.mrb[68].mxu1 %v4102_v9 }
  0xe0   : > { %2478 = vmatprep.mubr.f32.mxu1 %v4111_v3 }
  0xe1   : > { %2467 = vmatmul.mubr.f32.gmra.mrb[70].mxu0 %v3959_v7 }
  0xe3   : > { %2479 = vmatmul.mubr.f32.gmra.mrb[70].mxu1 %v4136_v4 }
 0x124   : > { %v2105_v10 = vpop.f32.mrb[0].mxu0 }
 0x125   : > { %v2106_v56 = vpop.f32.mrb[1].mxu0  ;;  %v2185_v60 = vpop.f32.mrb[0].mxu1 }
 0x126   : > { %v2107_v25 = vadd.f32 %v2106_v56, %v2105_v10  ;;  %v2186_v61 = vpop.f32.mrb[1].mxu1 }
 0x127   : > { %v2187_v23 = vadd.f32 %v2186_v61, %v2185_v60 }
 0x128   : > { %v1113_v24 = vadd.f32 %v2107_v25, %v4294_v41  ;;  %v2108_v6 = vpop.f32.mrb[2].mxu0 }
 0x129   : > { %v2109_v39 = vpop.f32.mrb[3].mxu0  ;;  %v2188_v38 = vpop.f32.mrb[2].mxu1 }
 0x12a   : > { %v4297_v11 = vadd.f32 %v2187_v23, %v1113_v24  ;;  %v2110_v7 = vadd.f32 %v2109_v39, %v2108_v6  ;;  %v2189_v0 = vpop.f32.mrb[3].mxu1 }
 0x12b   : > { %v2190_v40 = vadd.f32 %v2189_v0, %v2188_v38 }
 0x12c   : > { %v1118_v54 = vadd.f32 %v2110_v7, %v4294_v41  ;;  %v2111_v36 = vpop.f32.mrb[4].mxu0 }
 0x12d   : > { %v2112_v13 = vpop.f32.mrb[5].mxu0  ;;  %v2191_v33 = vpop.f32.mrb[4].mxu1 }
 0x12e   : > { %v4300_v32 = vadd.f32 %v2190_v40, %v1118_v54  ;;  %v2113_v62 = vadd.f32 %v2112_v13, %v2111_v36  ;;  %v2192_v5 = vpop.f32.mrb[5].mxu1 }
 0x12f   : > { %v2193_v19 = vadd.f32 %v2192_v5, %v2191_v33 }
 0x130   : > { %v1123_v9 = vadd.f32 %v2113_v62, %v4294_v41  ;;  %v2114_v3 = vpop.f32.mrb[6].mxu0 }
 0x131   : > { %v2115_v47 = vpop.f32.mrb[7].mxu0 }
 0x132   : > { %v2194_v49 = vpop.f32.mrb[6].mxu1  ;;  %v4303_v4 = vadd.f32 %v2193_v19, %v1123_v9  ;;  %v2116_v15 = vadd.f32 %v2115_v47, %v2114_v3 }
 0x133   : > { %v2195_v16 = vpop.f32.mrb[7].mxu1 }
 0x134   : > { %v2196_v21 = vadd.f32 %v2195_v16, %v2194_v49  ;;  %v1128_v59 = vadd.f32 %v2116_v15, %v4294_v41  ;;  %v2117_v44 = vpop.f32.mrb[8].mxu0 }
 0x135   : > { %v2118_v17 = vpop.f32.mrb[9].mxu0 }
 0x136   : > { %v2197_v26 = vpop.f32.mrb[8].mxu1  ;;  %v4306_v55 = vadd.f32 %v2196_v21, %v1128_v59  ;;  %v2119_v35 = vadd.f32 %v2118_v17, %v2117_v44 }
 0x137   : > { %v2198_v18 = vpop.f32.mrb[9].mxu1 }
 0x138   : > { %v2199_v37 = vadd.f32 %v2198_v18, %v2197_v26  ;;  %v1133_v2 = vadd.f32 %v2119_v35, %v4294_v41 }
 0x139   : > { %v2120_v20 = vpop.f32.mrb[10].mxu0 }
 0x13a   : > { %v2121_v8 = vpop.f32.mrb[11].mxu0  ;;  %v2200_v43 = vpop.f32.mrb[10].mxu1  ;;  %v4309_v48 = vadd.f32 %v2199_v37, %v1133_v2 }
 0x13b   : > { %v2122_v57 = vadd.f32 %v2121_v8, %v2120_v20  ;;  %v2201_v50 = vpop.f32.mrb[11].mxu1 }
 0x13c   : > { %v2202_v30 = vadd.f32 %v2201_v50, %v2200_v43 }
 0x13d   : > { %v1138_v27 = vadd.f32 %v2122_v57, %v4294_v41  ;;  %v2123_v14 = vpop.f32.mrb[12].mxu0 }
 0x13e   : > { %v2124_v52 = vpop.f32.mrb[13].mxu0  ;;  %v2203_v63 = vpop.f32.mrb[12].mxu1 }
 0x13f   : > { %v4312_v46 = vadd.f32 %v2202_v30, %v1138_v27  ;;  %v2125_v22 = vadd.f32 %v2124_v52, %v2123_v14  ;;  %v2204_v28 = vpop.f32.mrb[13].mxu1 }
 0x140   : > { %v2205_v45 = vadd.f32 %v2204_v28, %v2203_v63 }
 0x141   : > { %v1143_v34 = vadd.f32 %v2125_v22, %v4294_v41  ;;  %v2126_v42 = vpop.f32.mrb[14].mxu0 }
 0x142   : > { %v2127_v1 = vpop.f32.mrb[15].mxu0 }
 0x143   : > { %v2206_v53 = vpop.f32.mrb[14].mxu1  ;;  %v4315_v12 = vadd.f32 %v2205_v45, %v1143_v34  ;;  %v2128_v31 = vadd.f32 %v2127_v1, %v2126_v42 }
 0x144   : > { %v2207_v51 = vpop.f32.mrb[15].mxu1 }
 0x145   : > { %v2208_v58 = vadd.f32 %v2207_v51, %v2206_v53  ;;  %v1148_v29 = vadd.f32 %v2128_v31, %v4294_v41 }
 0x146   : > { %v2129_v10 = vpop.f32.mrb[16].mxu0 }
 0x147   : > { %v2130_v56 = vpop.f32.mrb[17].mxu0  ;;  %v4318_v25 = vadd.f32 %v2208_v58, %v1148_v29 }
 0x148   : > { %v2209_v60 = vpop.f32.mrb[16].mxu1  ;;  %v2131_v61 = vadd.f32 %v2130_v56, %v2129_v10 }
 0x149   : > { %v2210_v23 = vpop.f32.mrb[17].mxu1 }
 0x14a   : > { %v2211_v24 = vadd.f32 %v2210_v23, %v2209_v60  ;;  %v1153_v6 = vadd.f32 %v2131_v61, %v4294_v41  ;;  %v2132_v39 = vpop.f32.mrb[18].mxu0 }
 0x14b   : > { %v2133_v38 = vpop.f32.mrb[19].mxu0 }
 0x14c   : > { %v2212_v7 = vpop.f32.mrb[18].mxu1  ;;  %v4321_v0 = vadd.f32 %v2211_v24, %v1153_v6  ;;  %v2134_v40 = vadd.f32 %v2133_v38, %v2132_v39 }
 0x14d   : > { %v2213_v54 = vpop.f32.mrb[19].mxu1 }
 0x14e   : > { %v2214_v36 = vadd.f32 %v2213_v54, %v2212_v7  ;;  %v1158_v13 = vadd.f32 %v2134_v40, %v4294_v41  ;;  %v2135_v33 = vpop.f32.mrb[20].mxu0 }
 0x14f   : > { %v2136_v62 = vpop.f32.mrb[21].mxu0 }
 0x150   : > { %v2215_v5 = vpop.f32.mrb[20].mxu1  ;;  %v4324_v19 = vadd.f32 %v2214_v36, %v1158_v13  ;;  %v2137_v9 = vadd.f32 %v2136_v62, %v2135_v33 }
 0x151   : > { %v2216_v3 = vpop.f32.mrb[21].mxu1 }
 0x152   : > { %v2217_v47 = vadd.f32 %v2216_v3, %v2215_v5  ;;  %v1163_v49 = vadd.f32 %v2137_v9, %v4294_v41 }
 0x154   : > { %v2138_v15 = vpop.f32.mrb[22].mxu0  ;;  %v4327_v59 = vadd.f32 %v2217_v47, %v1163_v49 }
 0x155   : > { %v2139_v16 = vpop.f32.mrb[23].mxu0  ;;  %v2218_v21 = vpop.f32.mrb[22].mxu1 }
 0x156   : > { %v2140_v44 = vadd.f32 %v2139_v16, %v2138_v15  ;;  %v2219_v17 = vpop.f32.mrb[23].mxu1 }
 0x157   : > { %v2220_v26 = vadd.f32 %v2219_v17, %v2218_v21 }
 0x158   : > { %v1168_v35 = vadd.f32 %v2140_v44, %v4294_v41  ;;  %v2141_v18 = vpop.f32.mrb[24].mxu0 }
 0x159   : > { %v2142_v37 = vpop.f32.mrb[25].mxu0  ;;  %v2221_v2 = vpop.f32.mrb[24].mxu1 }
 0x15a   : > { %v4330_v20 = vadd.f32 %v2220_v26, %v1168_v35  ;;  %v2143_v8 = vadd.f32 %v2142_v37, %v2141_v18  ;;  %v2222_v43 = vpop.f32.mrb[25].mxu1 }
 0x15b   : > { %v2223_v57 = vadd.f32 %v2222_v43, %v2221_v2 }
 0x15c   : > { %v1173_v50 = vadd.f32 %v2143_v8, %v4294_v41  ;;  %v2144_v30 = vpop.f32.mrb[26].mxu0 }
 0x15d   : > { %v2145_v27 = vpop.f32.mrb[27].mxu0  ;;  %v2224_v14 = vpop.f32.mrb[26].mxu1 }
 0x15e   : > { %v4333_v52 = vadd.f32 %v2223_v57, %v1173_v50  ;;  %v2146_v63 = vadd.f32 %v2145_v27, %v2144_v30  ;;  %v2225_v22 = vpop.f32.mrb[27].mxu1 }
 0x15f   : > { %v2226_v28 = vadd.f32 %v2225_v22, %v2224_v14 }
 0x160   : > { %v1178_v45 = vadd.f32 %v2146_v63, %v4294_v41  ;;  %v2147_v34 = vpop.f32.mrb[28].mxu0 }
 0x161   : > { %v2148_v42 = vpop.f32.mrb[29].mxu0  ;;  %v2227_v1 = vpop.f32.mrb[28].mxu1 }
 0x162   : > { %v4336_v53 = vadd.f32 %v2226_v28, %v1178_v45  ;;  %v2149_v31 = vadd.f32 %v2148_v42, %v2147_v34  ;;  %v2228_v51 = vpop.f32.mrb[29].mxu1 }
 0x163   : > { %v2229_v58 = vadd.f32 %v2228_v51, %v2227_v1 }
 0x164   : > { %v1183_v29 = vadd.f32 %v2149_v31, %v4294_v41  ;;  %v2150_v10 = vpop.f32.mrb[30].mxu0 }
 0x165   : > { %v2151_v56 = vpop.f32.mrb[31].mxu0 }
 0x166   : > { %v2230_v60 = vpop.f32.mrb[30].mxu1  ;;  %v4339_v61 = vadd.f32 %v2229_v58, %v1183_v29  ;;  %v2152_v23 = vadd.f32 %v2151_v56, %v2150_v10 }
 0x167   : > { %v2231_v24 = vpop.f32.mrb[31].mxu1 }
 0x168   : > { %v2232_v6 = vadd.f32 %v2231_v24, %v2230_v60  ;;  %v1188_v39 = vadd.f32 %v2152_v23, %v4294_v41  ;;  %v2265_v38 = vpop.f32.mrb[32].mxu0 }
 0x169   : > { %v2266_v7 = vpop.f32.mrb[33].mxu0 }
 0x16a   : > { %v2345_v40 = vpop.f32.mrb[32].mxu1  ;;  %v4342_v54 = vadd.f32 %v2232_v6, %v1188_v39  ;;  %v2267_v36 = vadd.f32 %v2266_v7, %v2265_v38 }
 0x16b   : > { %v2346_v13 = vpop.f32.mrb[33].mxu1 }
 0x16c   : > { %v2347_v33 = vadd.f32 %v2346_v13, %v2345_v40  ;;  %v1403_v62 = vadd.f32 %v2267_v36, %v4297_v11  ;;  %v2268_v5 = vpop.f32.mrb[34].mxu0 }
 0x16d   : > { %v2269_v9 = vpop.f32.mrb[35].mxu0 }
 0x16e   : > { %v2348_v3 = vpop.f32.mrb[34].mxu1  ;;  %v2270_v47 = vadd.f32 %v2269_v9, %v2268_v5  ;;  %v4345_v15 = vadd.f32 %v2347_v33, %v1403_v62 }
 0x16f   : > { %v2349_v49 = vpop.f32.mrb[35].mxu1 }
 0x170   : > { %v2350_v16 = vadd.f32 %v2349_v49, %v2348_v3  ;;  %v1408_v41 = vadd.f32 %v2270_v47, %v4300_v32  ;;  %v2271_v21 = vpop.f32.mrb[36].mxu0 }
 0x171   : > { %v2272_v44 = vpop.f32.mrb[37].mxu0 }
 0x172   : > { %v2351_v17 = vpop.f32.mrb[36].mxu1  ;;  %v2273_v26 = vadd.f32 %v2272_v44, %v2271_v21  ;;  %v4348_v18 = vadd.f32 %v2350_v16, %v1408_v41 }
 0x173   : > { %v2352_v35 = vpop.f32.mrb[37].mxu1 }
 0x174   : > { %v2353_v37 = vadd.f32 %v2352_v35, %v2351_v17  ;;  %v1413_v11 = vadd.f32 %v2273_v26, %v4303_v4  ;;  %v2274_v2 = vpop.f32.mrb[38].mxu0 }
 0x175   : > { %v2275_v8 = vpop.f32.mrb[39].mxu0 }
 0x176   : > { %v2354_v43 = vpop.f32.mrb[38].mxu1  ;;  %v2276_v57 = vadd.f32 %v2275_v8, %v2274_v2  ;;  %v4351_v30 = vadd.f32 %v2353_v37, %v1413_v11 }
 0x177   : > { %v2355_v50 = vpop.f32.mrb[39].mxu1 }
 0x178   : > { %v2356_v27 = vadd.f32 %v2355_v50, %v2354_v43  ;;  %v1418_v32 = vadd.f32 %v2276_v57, %v4306_v55  ;;  %v2277_v14 = vpop.f32.mrb[40].mxu0 }
 0x179   : > { %v2278_v63 = vpop.f32.mrb[41].mxu0 }
 0x17a   : > { %v2357_v22 = vpop.f32.mrb[40].mxu1  ;;  %v2279_v28 = vadd.f32 %v2278_v63, %v2277_v14  ;;  %v4354_v34 = vadd.f32 %v2356_v27, %v1418_v32 }
 0x17b   : > { %v2358_v45 = vpop.f32.mrb[41].mxu1 }
 0x17c   : > { %v2359_v42 = vadd.f32 %v2358_v45, %v2357_v22  ;;  %v1423_v4 = vadd.f32 %v2279_v28, %v4309_v48  ;;  %v2280_v1 = vpop.f32.mrb[42].mxu0 }
 0x17d   : > { %v2281_v31 = vpop.f32.mrb[43].mxu0 }
 0x17e   : > { %v2360_v51 = vpop.f32.mrb[42].mxu1  ;;  %v2282_v58 = vadd.f32 %v2281_v31, %v2280_v1  ;;  %v4357_v10 = vadd.f32 %v2359_v42, %v1423_v4 }
 0x17f   : > { %v2361_v29 = vpop.f32.mrb[43].mxu1 }
 0x180   : > { %v2362_v56 = vadd.f32 %v2361_v29, %v2360_v51  ;;  %v1428_v55 = vadd.f32 %v2282_v58, %v4312_v46  ;;  %v2283_v60 = vpop.f32.mrb[44].mxu0 }
 0x181   : > { %v2284_v23 = vpop.f32.mrb[45].mxu0 }
 0x182   : > { %v2363_v24 = vpop.f32.mrb[44].mxu1  ;;  %v2285_v6 = vadd.f32 %v2284_v23, %v2283_v60  ;;  %v4360_v38 = vadd.f32 %v2362_v56, %v1428_v55 }
 0x183   : > { %v2364_v39 = vpop.f32.mrb[45].mxu1 }
 0x184   : > { %v2365_v7 = vadd.f32 %v2364_v39, %v2363_v24  ;;  %v1433_v48 = vadd.f32 %v2285_v6, %v4315_v12  ;;  %v2286_v40 = vpop.f32.mrb[46].mxu0 }
 0x185   : > { %v2287_v36 = vpop.f32.mrb[47].mxu0 }
 0x186   : > { %v2366_v13 = vpop.f32.mrb[46].mxu1  ;;  %v2288_v33 = vadd.f32 %v2287_v36, %v2286_v40  ;;  %v4363_v5 = vadd.f32 %v2365_v7, %v1433_v48 }
 0x187   : > { %v2367_v62 = vpop.f32.mrb[47].mxu1 }
 0x188   : > { %v2368_v9 = vadd.f32 %v2367_v62, %v2366_v13  ;;  %v1438_v46 = vadd.f32 %v2288_v33, %v4318_v25  ;;  %v2289_v3 = vpop.f32.mrb[48].mxu0 }
 0x189   : > { %v2290_v47 = vpop.f32.mrb[49].mxu0 }
 0x18a   : > { %v2369_v49 = vpop.f32.mrb[48].mxu1  ;;  %v2291_v16 = vadd.f32 %v2290_v47, %v2289_v3  ;;  %v4366_v21 = vadd.f32 %v2368_v9, %v1438_v46 }
 0x18b   : > { %v2370_v41 = vpop.f32.mrb[49].mxu1 }
 0x18c   : > { %v2371_v44 = vadd.f32 %v2370_v41, %v2369_v49  ;;  %v1443_v12 = vadd.f32 %v2291_v16, %v4321_v0  ;;  %v2292_v17 = vpop.f32.mrb[50].mxu0 }
 0x18d   : > { %v2293_v26 = vpop.f32.mrb[51].mxu0 }
 0x18e   : > { %v2372_v35 = vpop.f32.mrb[50].mxu1  ;;  %v2294_v37 = vadd.f32 %v2293_v26, %v2292_v17  ;;  %v1588_v2 = vadd.f32 %v2371_v44, %v1443_v12 }
 0x18f   : > { %v2373_v11 = vpop.f32.mrb[51].mxu1 }
 0x190   : > { %v2374_v8 = vadd.f32 %v2373_v11, %v2372_v35  ;;  %v1448_v43 = vadd.f32 %v2294_v37, %v4324_v19  ;;  %v2295_v25 = vpop.f32.mrb[52].mxu0 }
 0x191   : > { %v2296_v57 = vpop.f32.mrb[53].mxu0 }
 0x192   : > { %v2375_v50 = vpop.f32.mrb[52].mxu1  ;;  %v2297_v27 = vadd.f32 %v2296_v57, %v2295_v25  ;;  %v1593_v14 = vadd.f32 %v2374_v8, %v1448_v43 }
 0x193   : > { %v2376_v32 = vpop.f32.mrb[53].mxu1 }
 0x194   : > { %v2377_v63 = vadd.f32 %v2376_v32, %v2375_v50  ;;  %v1453_v22 = vadd.f32 %v2297_v27, %v4327_v59  ;;  %v2298_v28 = vpop.f32.mrb[54].mxu0 }
 0x195   : > { %v2299_v0 = vpop.f32.mrb[55].mxu0 }
 0x196   : > { %v2378_v45 = vpop.f32.mrb[54].mxu1  ;;  %v2300_v42 = vadd.f32 %v2299_v0, %v2298_v28  ;;  %v1598_v1 = vadd.f32 %v2377_v63, %v1453_v22 }
 0x197   : > { %v2379_v4 = vpop.f32.mrb[55].mxu1 }
 0x198   : > { %v2380_v31 = vadd.f32 %v2379_v4, %v2378_v45  ;;  %v1458_v51 = vadd.f32 %v2300_v42, %v4330_v20  ;;  %v2301_v58 = vpop.f32.mrb[56].mxu0 }
 0x199   : > { %v2302_v19 = vpop.f32.mrb[57].mxu0 }
 0x19a   : > { %v2381_v29 = vpop.f32.mrb[56].mxu1  ;;  %v2303_v56 = vadd.f32 %v2302_v19, %v2301_v58  ;;  %v1603_v60 = vadd.f32 %v2380_v31, %v1458_v51 }
 0x19b   : > { %v2382_v55 = vpop.f32.mrb[57].mxu1 }
 0x19c   : > { %v2383_v23 = vadd.f32 %v2382_v55, %v2381_v29  ;;  %v1463_v24 = vadd.f32 %v2303_v56, %v4333_v52  ;;  %v2304_v6 = vpop.f32.mrb[58].mxu0 }
 0x19d   : > { %v2305_v59 = vpop.f32.mrb[59].mxu0 }
 0x19e   : > { %v2384_v39 = vpop.f32.mrb[58].mxu1  ;;  %v2306_v7 = vadd.f32 %v2305_v59, %v2304_v6  ;;  %v1608_v40 = vadd.f32 %v2383_v23, %v1463_v24 }
 0x19f   : > { %v2385_v48 = vpop.f32.mrb[59].mxu1 }
 0x1a0   : > { %v2386_v36 = vadd.f32 %v2385_v48, %v2384_v39  ;;  %v1468_v13 = vadd.f32 %v2306_v7, %v4336_v53  ;;  %v2307_v33 = vpop.f32.mrb[60].mxu0 }
 0x1a1   : > { %v2308_v20 = vpop.f32.mrb[61].mxu0 }
 0x1a2   : > { %v2387_v62 = vpop.f32.mrb[60].mxu1  ;;  %v2309_v9 = vadd.f32 %v2308_v20, %v2307_v33  ;;  %v1613_v3 = vadd.f32 %v2386_v36, %v1468_v13 }
 0x1a3   : > { %v2388_v46 = vpop.f32.mrb[61].mxu1 }
 0x1a4   : > { %v2389_v47 = vadd.f32 %v2388_v46, %v2387_v62  ;;  %v1473_v49 = vadd.f32 %v2309_v9, %v4339_v61  ;;  %v2310_v16 = vpop.f32.mrb[62].mxu0 }
 0x1a5   : > { %v2311_v52 = vpop.f32.mrb[63].mxu0 }
 0x1a6   : > { %v2390_v41 = vpop.f32.mrb[62].mxu1  ;;  %v2312_v44 = vadd.f32 %v2311_v52, %v2310_v16  ;;  %v4375_v17 = vadd.f32 %v2389_v47, %v1473_v49 }
 0x1a7   : > { %v2391_v12 = vpop.f32.mrb[63].mxu1 }
 0x1a8   : > { %v2392_v53 = vadd.f32 %v2391_v12, %v2390_v41  ;;  %v1478_v26 = vadd.f32 %v2312_v44, %v4342_v54  ;;  %v2459_v35 = vpop.f32.mrb[64].mxu0 }
 0x1a9   : > { %v1698_v37 = vadd.f32 %v2459_v35, %v4348_v18  ;;  %v1692_v8 = vpop.f32.mrb[65].mxu0 }
 0x1aa   : > { %v2471_v11 = vpop.f32.mrb[64].mxu1  ;;  %v1693_v43 = vadd.f32 %v1692_v8, %v4345_v15  ;;  %v1623_v57 = vadd.f32 %v2392_v53, %v1478_v26 }
 0x1ab   : > { %v4379_v61 = vadd.f32 %v2471_v11, %v1593_v14  ;;  %v1732_v25 = vpop.f32.mrb[65].mxu1  ;;  %1772 = vst [vmem:[%s2821_s16 + $0x8] sm:$0xff] %v1698_v37  ;;  %v1809_v50 = vmul.f32 %v1698_v37, %v1698_v37 }
 0x1ac   : > { %v1733_v27 = vadd.f32 %v1732_v25, %v1588_v2  ;;  %1771 = vst [vmem:[%s2821_s16] sm:$0xff] %v1693_v43  ;;  %v1787_v54 = vadd.f32 %v1698_v37, %v1693_v43  ;;  %v1808_v32 = vmul.f32 %v1693_v43, %v1693_v43  ;;  %v2462_v18 = vpop.f32.mrb[66].mxu0 }
 0x1ad   : > { %1780 = vst [vmem:[%s2821_s16 + $0x48] sm:$0xff] %v4379_v61  ;;  %v1708_v14 = vadd.f32 %v2462_v18, %v4354_v34  ;;  %v1702_v15 = vpop.f32.mrb[67].mxu0 }
 0x1ae   : > { %1779 = vst [vmem:[%s2821_s16 + $0x40] sm:$0xff] %v1733_v27  ;;  %v2474_v63 = vpop.f32.mrb[66].mxu1  ;;  %v1824_v22 = vadd.f32 %v1809_v50, %v1808_v32  ;;  %v1703_v0 = vadd.f32 %v1702_v15, %v4351_v30  ;;  %v1816_v49 = vmul.f32 %v1733_v27, %v1733_v27 }
 0x1af   : > { %v1748_v28 = vadd.f32 %v2474_v63, %v1603_v60  ;;  %v1742_v45 = vpop.f32.mrb[67].mxu1  ;;  %1774 = vst [vmem:[%s2821_s16 + $0x18] sm:$0xff] %v1708_v14  ;;  %v1811_v51 = vmul.f32 %v1708_v14, %v1708_v14 }
 0x1b0   : > { %v1743_v2 = vadd.f32 %v1742_v45, %v1598_v1  ;;  %1773 = vst [vmem:[%s2821_s16 + $0x10] sm:$0xff] %v1703_v0  ;;  %v1788_v42 = vadd.f32 %v1787_v54, %v1703_v0  ;;  %v1810_v4 = vmul.f32 %v1703_v0, %v1703_v0  ;;  %v2465_v31 = vpop.f32.mrb[68].mxu0 }
 0x1b1   : > { %1782 = vst [vmem:[%s2821_s16 + $0x58] sm:$0xff] %v1748_v28  ;;  %v1718_v34 = vadd.f32 %v2465_v31, %v4360_v38  ;;  %v1712_v19 = vpop.f32.mrb[69].mxu0  ;;  %v1819_v26 = vmul.f32 %v1748_v28, %v1748_v28 }
 0x1b2   : > { %1781 = vst [vmem:[%s2821_s16 + $0x50] sm:$0xff] %v1743_v2  ;;  %v2477_v58 = vpop.f32.mrb[68].mxu1  ;;  %v1825_v29 = vadd.f32 %v1824_v22, %v1810_v4  ;;  %v1713_v56 = vadd.f32 %v1712_v19, %v4357_v10  ;;  %v1789_v1 = vadd.f32 %v1788_v42, %v1708_v14  ;;  %v1818_v12 = vmul.f32 %v1743_v2, %v1743_v2 }
 0x1b3   : > { %v1758_v30 = vadd.f32 %v2477_v58, %v1613_v3  ;;  %v1752_v55 = vpop.f32.mrb[69].mxu1  ;;  %1776 = vst [vmem:[%s2821_s16 + $0x28] sm:$0xff] %v1718_v34  ;;  %v1813_v59 = vmul.f32 %v1718_v34, %v1718_v34 }
 0x1b4   : > { %v1753_v60 = vadd.f32 %v1752_v55, %v1608_v40  ;;  %1775 = vst [vmem:[%s2821_s16 + $0x20] sm:$0xff] %v1713_v56  ;;  %v1790_v23 = vadd.f32 %v1789_v1, %v1713_v56  ;;  %v1812_v24 = vmul.f32 %v1713_v56, %v1713_v56  ;;  %v1826_v6 = vadd.f32 %v1825_v29, %v1811_v51  ;;  %v2468_v38 = vpop.f32.mrb[70].mxu0 }
 0x1b5   : > { %1784 = vst [vmem:[%s2821_s16 + $0x68] sm:$0xff] %v1758_v30  ;;  %v1728_v39 = vadd.f32 %v2468_v38, %v4366_v21  ;;  %v1722_v10 = vpop.f32.mrb[71].mxu0  ;;  %v1821_v25 = vmul.f32 %v1758_v30, %v1758_v30 }
 0x1b6   : > { %1783 = vst [vmem:[%s2821_s16 + $0x60] sm:$0xff] %v1753_v60  ;;  %v2480_v7 = vpop.f32.mrb[70].mxu1  ;;  %v1827_v48 = vadd.f32 %v1826_v6, %v1812_v24  ;;  %v1723_v40 = vadd.f32 %v1722_v10, %v4363_v5  ;;  %v1791_v13 = vadd.f32 %v1790_v23, %v1718_v34  ;;  %v1817_v5 = vmul.f32 %v4379_v61, %v4379_v61 }
 0x1b7   : > { %v1768_v36 = vadd.f32 %v2480_v7, %v1623_v57  ;;  %v1762_v33 = vpop.f32.mrb[71].mxu1  ;;  %1778 = vst [vmem:[%s2821_s16 + $0x38] sm:$0xff] %v1728_v39  ;;  %v1815_v3 = vmul.f32 %v1728_v39, %v1728_v39  ;;  %v1820_v11 = vmul.f32 %v1753_v60, %v1753_v60 }
 0x1b8   : > { %v1763_v20 = vadd.f32 %v1762_v33, %v4375_v17  ;;  %1777 = vst [vmem:[%s2821_s16 + $0x30] sm:$0xff] %v1723_v40  ;;  %v1792_v62 = vadd.f32 %v1791_v13, %v1723_v40  ;;  %v1814_v9 = vmul.f32 %v1723_v40, %v1723_v40  ;;  %v1828_v46 = vadd.f32 %v1827_v48, %v1813_v59 }
 0x1b9   : > { %1786 = vst [vmem:[%s2821_s16 + $0x78] sm:$0xff] %v1768_v36  ;;  %v1823_v18 = vmul.f32 %v1768_v36, %v1768_v36 }
 0x1ba   : > { %1785 = vst [vmem:[%s2821_s16 + $0x70] sm:$0xff] %v1763_v20  ;;  %v1793_v47 = vadd.f32 %v1792_v62, %v1728_v39  ;;  %v1829_v21 = vadd.f32 %v1828_v46, %v1814_v9  ;;  %v1822_v54 = vmul.f32 %v1763_v20, %v1763_v20 }
 0x1bc   : > { %v1794_v16 = vadd.f32 %v1793_v47, %v1733_v27  ;;  %v1830_v52 = vadd.f32 %v1829_v21, %v1815_v3 }
 0x1be   : > { %v1795_v41 = vadd.f32 %v1794_v16, %v4379_v61  ;;  %v1831_v44 = vadd.f32 %v1830_v52, %v1816_v49 }
 0x1c0   : > { %v1832_v17 = vadd.f32 %v1831_v44, %v1817_v5  ;;  %v1796_v53 = vadd.f32 %v1795_v41, %v1743_v2 }
 0x1c2   : > { %v1797_v35 = vadd.f32 %v1796_v53, %v1748_v28  ;;  %v1833_v37 = vadd.f32 %v1832_v17, %v1818_v12 }
 0x1c4   : > { %v1798_v8 = vadd.f32 %v1797_v35, %v1753_v60  ;;  %v1834_v43 = vadd.f32 %v1833_v37, %v1819_v26 }
 0x1c6   : > { %v1799_v57 = vadd.f32 %v1798_v8, %v1758_v30  ;;  %v1835_v50 = vadd.f32 %v1834_v43, %v1820_v11 }
 0x1c8   : > { %v1800_v27 = vadd.f32 %v1799_v57, %v1763_v20  ;;  %v1836_v32 = vadd.f32 %v1835_v50, %v1821_v25 }
 0x1ca   : > { %v1801_v14 = vadd.f32 %v1800_v27, %v1768_v36  ;;  %v1837_v63 = vadd.f32 %v1836_v32, %v1822_v54 }
 0x1cc   : > { %v1802_v61 = vrot.slane %v1801_v14, 4  ;;  %v1838_v15 = vadd.f32 %v1837_v63, %v1823_v18 }
 0x1ce   : > { %v1803_v22 = vadd.f32 %v1802_v61, %v1801_v14  ;;  %v1839_v0 = vrot.slane %v1838_v15, 4 }
 0x1d0   : > { %v1804_v45 = vrot.slane %v1803_v22, 2  ;;  %v1840_v28 = vadd.f32 %v1839_v0, %v1838_v15 }
 0x1d2   : > { %v1805_v2 = vadd.f32 %v1804_v45, %v1803_v22  ;;  %v1841_v42 = vrot.slane %v1840_v28, 2 }
 0x1d4   : > { %v1806_v4 = vrot.slane %v1805_v2, 1  ;;  %v1842_v31 = vadd.f32 %v1841_v42, %v1840_v28 }
 0x1d6   : > { %v1843_v51 = vrot.slane %v1842_v31, 1  ;;  %v1807_v34 = vadd.f32 %v1806_v4, %v1805_v2 }
 0x1d8   : > { %v1844_v58 = vadd.f32 %v1843_v51, %v1842_v31 }
 0x1da   : > { %v1846_v19 = vsel %vm1845_vm12, %v1807_v34, %v1844_v58 }
 0x1db   : > { %1847 = vst [vmem:[%s2838_s8] sm:$0x3] %v1846_v19 }
 0x1dc PF: > { %s17_s25 = sadd.s32 1, %s2737_s25   ;;  %s4618_s21 = smov %s2729_s23 }
 0x1dd   : > { %p14_p8 = scmp.ge.s32.totalorder %s17_s25, 6   ;;  %s4619_s22 = smov %s2733_s24 }
 0x1de   : > { %s4620_s23 = smov %s4623_s26  ;;  %s4621_s24 = smov %s4627_s27 }
 0x1df   :  { %16 = sbr.rel (!%p14_p8) target bundleno = 3 (0x3), region = 127 }
 0x1e6   :  { %1902 = vsyncmov [#allocation3] }
 0x1e9   :  { %s1903_s16 = vpop.sfrf %1902 }
 0x1ea   :  { %p2072_p9 = scmp.ne.s32.totalorder %s1903_s16, 0 }
 0x1ec   :  { %1907 = shalt.err (%p2072_p9)  }

</bundles_post_ra>
